<compile_context>
chip_gen: v5e
topology: v5e:2x2
jax: 0.10.0
libtpu: 0.0.40
codegen_flags: <defaults>
</compile_context>

<pallas_src>
import jax
import jax.numpy as jnp
from jax.experimental import pallas as pl
from jax.experimental.pallas import tpu as pltpu

try:
    _VMEM_SPACE = pltpu.MemorySpace.VMEM
except AttributeError:  # older JAX naming
    _VMEM_SPACE = pltpu.TPUMemorySpace.VMEM


# ---------------------------------------------------------------------------
# Fused kernel: all layers, both directions, linear head — one invocation.
# ---------------------------------------------------------------------------
def _make_fused_bilstm_kernel(num_layers, T, B, H, O):
    H2, H4 = 2 * H, 4 * H
    TB = T * B

    def kernel(x_ref, *refs):
        # refs layout:
        #   [w_ih, w_hh, b] * num_layers, lin_w, lin_b, out_ref, act0, act1
        n_w = 3 * num_layers
        w_refs = refs[:n_w]
        lin_w_ref = refs[n_w]
        lin_b_ref = refs[n_w + 1]
        out_ref = refs[n_w + 2]
        act_refs = refs[n_w + 3:]          # two (T*B, 2H) f32 VMEM scratch

        for layer in range(num_layers):
            w_ih_ref, w_hh_ref, b_ref = w_refs[3 * layer: 3 * layer + 3]
            w_ih = w_ih_ref[...]           # (IN_l, 8H) bf16, cols [fwd 4H|bwd 4H]
            w_hh = w_hh_ref[...]           # (2H, 8H)  bf16, block-diagonal
            b = b_ref[...]                 # (1, 8H)   f32  (= b_ih + b_hh per dir)

            if layer == 0:
                x_in = x_ref[...]                                   # (TB, IN) bf16
            else:
                x_in = act_refs[(layer - 1) % 2][...].astype(jnp.bfloat16)

            # Hoisted input projection + bias: one matmul, M = T*B rows.
            xproj = jnp.dot(x_in, w_ih,
                            preferred_element_type=jnp.float32) + b  # (TB, 8H)

            out_act = act_refs[layer % 2]

            h_cat = jnp.zeros((B, H2), jnp.float32)                  # [h_f | h_b]
            c_f = jnp.zeros((B, H), jnp.float32)
            c_b = jnp.zeros((B, H), jnp.float32)

            # Fully unrolled time loop; fwd & bwd chains share one MXU push.
            for step in range(T):
                tf = step
                tb = T - 1 - step

                # Single fused recurrent matmul (block-diagonal weight).
                rec = jnp.dot(h_cat.astype(jnp.bfloat16), w_hh,
                              preferred_element_type=jnp.float32)    # (B, 8H)

                # Fwd gates use x[tf], bwd gates use x[tb]; both halves are
                # 128-lane aligned so this concat is layout-free.
                xg = jnp.concatenate(
                    [xproj[tf * B:(tf + 1) * B, :H4],
                     xproj[tb * B:(tb + 1) * B, H4:]], axis=-1)      # (B, 8H)
                gates = xg + rec

                # Full-width nonlinearities (2 EUP passes for all 8 gates).
                sig = jax.nn.sigmoid(gates)
                tah = jnp.tanh(gates)

                # Gate order per direction: i | f | g | o.
                c_f = sig[:, H:2 * H] * c_f + sig[:, 0:H] * tah[:, 2 * H:3 * H]
                c_b = (sig[:, 5 * H:6 * H] * c_b
                       + sig[:, 4 * H:5 * H] * tah[:, 6 * H:7 * H])
                h_f = sig[:, 3 * H:4 * H] * jnp.tanh(c_f)
                h_b = sig[:, 7 * H:8 * H] * jnp.tanh(c_b)
                h_cat = jnp.concatenate([h_f, h_b], axis=-1)

                # Store per-timestep outputs into VMEM scratch (bounds vreg
                # live ranges; stores are off the recurrence critical path).
                out_act[tf * B:(tf + 1) * B, 0:H] = h_f
                out_act[tb * B:(tb + 1) * B, H:H2] = h_b

        # Linear head: ONE matmul over the stacked activations + one store.
        lin_w = lin_w_ref[...]             # (2H, O) bf16
        lin_b = lin_b_ref[...]             # (1, O)  f32
        acts = act_refs[(num_layers - 1) % 2][...].astype(jnp.bfloat16)
        out_ref[...] = (jnp.dot(acts, lin_w,
                                preferred_element_type=jnp.float32)
                        + lin_b).astype(out_ref.dtype)

    return kernel


# ---------------------------------------------------------------------------
# Forward wrapper (matches PyTorch BiLSTM.forward, eval mode)
# ---------------------------------------------------------------------------
@jax.jit
def bilstm_forward(x, packed):
    # x: (B, T, input_size) batch_first, like the PyTorch module.
    B, T, IN = x.shape
    num_layers = (len(packed) - 2) // 3
    H = packed[1].shape[0] // 2            # w_hh block-diag is (2H, 8H)
    O = packed[-2].shape[1]
    TB = T * B

    # Time-major, flattened to (T*B, IN), pre-cast to bf16 once here.
    x_flat = jnp.transpose(x, (1, 0, 2)).reshape(TB, IN).astype(jnp.bfloat16)

    kernel = _make_fused_bilstm_kernel(num_layers, T, B, H, O)
    vspec = pl.BlockSpec(memory_space=_VMEM_SPACE)

    out_flat = pl.pallas_call(
        kernel,
        out_shape=jax.ShapeDtypeStruct((TB, O), jnp.float32),
        in_specs=[vspec] * (1 + len(packed)),
        out_specs=vspec,
        scratch_shapes=[pltpu.VMEM((TB, 2 * H), jnp.float32),
                        pltpu.VMEM((TB, 2 * H), jnp.float32)],
    )(x_flat, *packed)

    return jnp.transpose(out_flat.reshape(T, B, O), (1, 0, 2))      # (B, T, O)


# ---------------------------------------------------------------------------
# Parameter construction (PyTorch layout) + conversion to the kernel layout.
# ---------------------------------------------------------------------------
def init_torch_params(key, input_size, hidden_size, num_layers, output_size):
    """Parameters in PyTorch's native shapes/orientation (gate order i|f|g|o)."""
    H = hidden_size
    k = 1.0 / jnp.sqrt(H)
    layers = []
    for layer in range(num_layers):
        in_l = input_size if layer == 0 else 2 * H
        dirs = []
        for _ in range(2):                 # (forward, backward)
            key, k1, k2, k3, k4 = jax.random.split(key, 5)
            dirs.append(dict(
                weight_ih=jax.random.uniform(k1, (4 * H, in_l), jnp.float32, -k, k),
                weight_hh=jax.random.uniform(k2, (4 * H, H), jnp.float32, -k, k),
                bias_ih=jax.random.uniform(k3, (4 * H,), jnp.float32, -k, k),
                bias_hh=jax.random.uniform(k4, (4 * H,), jnp.float32, -k, k)))
        layers.append(tuple(dirs))
    key, k1, k2 = jax.random.split(key, 3)
    lk = 1.0 / jnp.sqrt(2 * H)
    lin = dict(weight=jax.random.uniform(k1, (output_size, 2 * H), jnp.float32, -lk, lk),
               bias=jax.random.uniform(k2, (output_size,), jnp.float32, -lk, lk))
    return dict(lstm=layers, linear=lin)


def pack_params(tp):
    """Convert PyTorch-layout params into the fused kernel layout (bf16 weights).

    Per layer: w_ih_cat (IN, 8H) cols [fwd i|f|g|o | bwd i|f|g|o],
               w_hh_bd  (2H, 8H) block-diagonal, b_cat (1, 8H) = b_ih + b_hh.
    Runs ONCE outside jit, so weight casts are not re-done per call.
    """
    H = tp["lstm"][0][0]["weight_hh"].shape[1]
    packed = []
    for fwd, bwd in tp["lstm"]:
        w_ih_f, w_ih_b = fwd["weight_ih"].T, bwd["weight_ih"].T      # (IN, 4H)
        w_hh_f, w_hh_b = fwd["weight_hh"].T, bwd["weight_hh"].T      # (H, 4H)
        b_f = (fwd["bias_ih"] + fwd["bias_hh"])[None, :]
        b_b = (bwd["bias_ih"] + bwd["bias_hh"])[None, :]

        w_ih_cat = jnp.concatenate([w_ih_f, w_ih_b], axis=1).astype(jnp.bfloat16)
        w_hh_bd = jnp.zeros((2 * H, 8 * H), jnp.float32)
        w_hh_bd = w_hh_bd.at[:H, :4 * H].set(w_hh_f)
        w_hh_bd = w_hh_bd.at[H:, 4 * H:].set(w_hh_b)
        b_cat = jnp.concatenate([b_f, b_b], axis=1).astype(jnp.float32)
        packed += [w_ih_cat, w_hh_bd.astype(jnp.bfloat16), b_cat]

    packed += [tp["linear"]["weight"].T.astype(jnp.bfloat16),        # (2H, O)
               tp["linear"]["bias"][None, :].astype(jnp.float32)]    # (1, O)
    return tuple(jax.device_put(p) for p in packed)


# ---------------------------------------------------------------------------
# Pure-JAX f32 reference (from PyTorch-layout params)
# ---------------------------------------------------------------------------
def _lstm_dir_ref(x_tm, p, reverse):
    H = p["weight_hh"].shape[1]
    B = x_tm.shape[1]
    xs = x_tm[::-1] if reverse else x_tm

    def step(carry, x_t):
        h, c = carry
        g = x_t @ p["weight_ih"].T + h @ p["weight_hh"].T + p["bias_ih"] + p["bias_hh"]
        i = jax.nn.sigmoid(g[:, :H])
        f = jax.nn.sigmoid(g[:, H:2 * H])
        gg = jnp.tanh(g[:, 2 * H:3 * H])
        o = jax.nn.sigmoid(g[:, 3 * H:])
        c = f * c + i * gg
        h = o * jnp.tanh(c)
        return (h, c), h

    _, hs = jax.lax.scan(step, (jnp.zeros((B, H)), jnp.zeros((B, H))), xs)
    return hs[::-1] if reverse else hs


def bilstm_ref(x, tp):
    h = jnp.transpose(x, (1, 0, 2)).astype(jnp.float32)
    for fwd, bwd in tp["lstm"]:
        hs_f = _lstm_dir_ref(h, fwd, reverse=False)
        hs_b = _lstm_dir_ref(h, bwd, reverse=True)
        h = jnp.concatenate([hs_f, hs_b], axis=-1)
    out = h @ tp["linear"]["weight"].T + tp["linear"]["bias"]
    return jnp.transpose(out, (1, 0, 2))


if __name__ == "__main__":
    # config: input_size=16, hidden_size=32, lstm_layers=2,
    #         output_size=8, dropout_rate (eval-mode -> unused)
    B, T, INPUT, HIDDEN, LAYERS, OUTPUT = 2, 8, 16, 32, 2, 8

    key = jax.random.PRNGKey(0)
    key, kx = jax.random.split(key)
    x = jax.random.normal(kx, (B, T, INPUT), jnp.float32)

    torch_params = init_torch_params(key, INPUT, HIDDEN, LAYERS, OUTPUT)
    packed = pack_params(torch_params)     # layout conversion + bf16, once

    out = bilstm_forward(x, packed)
    out = jax.block_until_ready(out)
    assert out.shape == (B, T, OUTPUT), out.shape

    ref = jax.block_until_ready(bilstm_ref(x, torch_params))
    # Tolerance widened vs. pure-f32 because matmul operands (and the input)
    # are bf16 in the kernel (f32 accumulation); real bugs give O(0.1-1) errors.
    assert jnp.allclose(out, ref, rtol=5e-2, atol=5e-2), (
        float(jnp.max(jnp.abs(out - ref))))

    print("KERNEL_OK")
</pallas_src>

<mosaic_0001>
module attributes {stable_mosaic.version = 11 : i64} {
  func.func @kernel(%arg0: memref<16x16xbf16, #tpu.memory_space<vmem>>, %arg1: memref<16x256xbf16, #tpu.memory_space<vmem>>, %arg2: memref<64x256xbf16, #tpu.memory_space<vmem>>, %arg3: memref<1x256xf32, #tpu.memory_space<vmem>>, %arg4: memref<64x256xbf16, #tpu.memory_space<vmem>>, %arg5: memref<64x256xbf16, #tpu.memory_space<vmem>>, %arg6: memref<1x256xf32, #tpu.memory_space<vmem>>, %arg7: memref<64x8xbf16, #tpu.memory_space<vmem>>, %arg8: memref<1x8xf32, #tpu.memory_space<vmem>>, %arg9: memref<16x8xf32, #tpu.memory_space<vmem>>, %arg10: memref<16x64xf32, #tpu.memory_space<vmem>>, %arg11: memref<16x64xf32, #tpu.memory_space<vmem>>) attributes {dimension_semantics = [], scalar_prefetch = 0 : i64, scratch_operands = 2 : i64, tpu.core_type = #tpu.core_type<tc>} {
    %c0 = arith.constant 0 : index
    %c0_0 = arith.constant 0 : index
    %0 = vector.load %arg1[%c0, %c0_0] : memref<16x256xbf16, #tpu.memory_space<vmem>>, vector<16x256xbf16>
    %c0_1 = arith.constant 0 : index
    %c0_2 = arith.constant 0 : index
    %1 = vector.load %arg2[%c0_1, %c0_2] : memref<64x256xbf16, #tpu.memory_space<vmem>>, vector<64x256xbf16>
    %c0_3 = arith.constant 0 : index
    %c0_4 = arith.constant 0 : index
    %2 = vector.load %arg3[%c0_3, %c0_4] : memref<1x256xf32, #tpu.memory_space<vmem>>, vector<1x256xf32>
    %c0_5 = arith.constant 0 : index
    %c0_6 = arith.constant 0 : index
    %3 = vector.load %arg0[%c0_5, %c0_6] : memref<16x16xbf16, #tpu.memory_space<vmem>>, vector<16x16xbf16>
    %cst = arith.constant dense<0.000000e+00> : vector<16x256xf32>
    %4 = tpu.matmul %3, %0, %cst {dimension_numbers = #tpu.dot_dimension_numbers<[1], [0], [0], [1], [0, 0, 1, 1], [], []>} : vector<16x16xbf16>, vector<16x256xbf16>, vector<16x256xf32> -> vector<16x256xf32>
    %5 = vector.broadcast %2 : vector<1x256xf32> to vector<16x256xf32>
    %6 = arith.addf %4, %5 : vector<16x256xf32>
    %cst_7 = arith.constant 0.000000e+00 : f32
    %7 = vector.broadcast %cst_7 : f32 to vector<2x64xf32>
    %cst_8 = arith.constant 0.000000e+00 : f32
    %8 = vector.broadcast %cst_8 : f32 to vector<2x32xf32>
    %cst_9 = arith.constant 0.000000e+00 : f32
    %9 = vector.broadcast %cst_9 : f32 to vector<2x32xf32>
    %10 = arith.truncf %7 : vector<2x64xf32> to vector<2x64xbf16>
    %cst_10 = arith.constant dense<0.000000e+00> : vector<2x256xf32>
    %11 = tpu.matmul %10, %1, %cst_10 {dimension_numbers = #tpu.dot_dimension_numbers<[1], [0], [0], [1], [0, 0, 1, 1], [], []>} : vector<2x64xbf16>, vector<64x256xbf16>, vector<2x256xf32> -> vector<2x256xf32>
    %12 = vector.extract_strided_slice %6 {offsets = [0, 0], sizes = [2, 128], strides = [1, 1]} : vector<16x256xf32> to vector<2x128xf32>
    %13 = vector.extract_strided_slice %6 {offsets = [14, 128], sizes = [2, 128], strides = [1, 1]} : vector<16x256xf32> to vector<2x128xf32>
    %14 = tpu.concatenate %12, %13 in 1 : vector<2x128xf32>, vector<2x128xf32> -> vector<2x256xf32>
    %15 = arith.addf %14, %11 : vector<2x256xf32>
    %16 = arith.negf %15 : vector<2x256xf32>
    %17 = math.exp %16 : vector<2x256xf32>
    %cst_11 = arith.constant 1.000000e+00 : f32
    %18 = vector.broadcast %cst_11 : f32 to vector<2x256xf32>
    %19 = arith.addf %18, %17 : vector<2x256xf32>
    %20 = arith.divf %18, %19 : vector<2x256xf32>
    %21 = math.tanh %15 : vector<2x256xf32>
    %22 = vector.extract_strided_slice %20 {offsets = [0, 32], sizes = [2, 32], strides = [1, 1]} : vector<2x256xf32> to vector<2x32xf32>
    %23 = arith.mulf %22, %8 : vector<2x32xf32>
    %24 = vector.extract_strided_slice %20 {offsets = [0, 0], sizes = [2, 32], strides = [1, 1]} : vector<2x256xf32> to vector<2x32xf32>
    %25 = vector.extract_strided_slice %21 {offsets = [0, 64], sizes = [2, 32], strides = [1, 1]} : vector<2x256xf32> to vector<2x32xf32>
    %26 = arith.mulf %24, %25 : vector<2x32xf32>
    %27 = arith.addf %23, %26 : vector<2x32xf32>
    %28 = vector.extract_strided_slice %20 {offsets = [0, 160], sizes = [2, 32], strides = [1, 1]} : vector<2x256xf32> to vector<2x32xf32>
    %29 = arith.mulf %28, %9 : vector<2x32xf32>
    %30 = vector.extract_strided_slice %20 {offsets = [0, 128], sizes = [2, 32], strides = [1, 1]} : vector<2x256xf32> to vector<2x32xf32>
    %31 = vector.extract_strided_slice %21 {offsets = [0, 192], sizes = [2, 32], strides = [1, 1]} : vector<2x256xf32> to vector<2x32xf32>
    %32 = arith.mulf %30, %31 : vector<2x32xf32>
    %33 = arith.addf %29, %32 : vector<2x32xf32>
    %34 = vector.extract_strided_slice %20 {offsets = [0, 96], sizes = [2, 32], strides = [1, 1]} : vector<2x256xf32> to vector<2x32xf32>
    %35 = math.tanh %27 : vector<2x32xf32>
    %36 = arith.mulf %34, %35 : vector<2x32xf32>
    %37 = vector.extract_strided_slice %20 {offsets = [0, 224], sizes = [2, 32], strides = [1, 1]} : vector<2x256xf32> to vector<2x32xf32>
    %38 = math.tanh %33 : vector<2x32xf32>
    %39 = arith.mulf %37, %38 : vector<2x32xf32>
    %40 = tpu.concatenate %36, %39 in 1 : vector<2x32xf32>, vector<2x32xf32> -> vector<2x64xf32>
    %c0_12 = arith.constant 0 : index
    %c0_13 = arith.constant 0 : index
    %41 = vector.load %arg10[%c0_12, %c0_13] : memref<16x64xf32, #tpu.memory_space<vmem>>, vector<2x32xf32>
    tpu.vector_store %arg10[%c0_12, %c0_13], %36 {strides = array<i32>} : memref<16x64xf32, #tpu.memory_space<vmem>>, vector<2x32xf32>,
    %c14 = arith.constant 14 : index
    %c32 = arith.constant 32 : index
    %42 = vector.load %arg10[%c14, %c32] : memref<16x64xf32, #tpu.memory_space<vmem>>, vector<2x32xf32>
    tpu.vector_store %arg10[%c14, %c32], %39 {strides = array<i32>} : memref<16x64xf32, #tpu.memory_space<vmem>>, vector<2x32xf32>,
    %43 = arith.truncf %40 : vector<2x64xf32> to vector<2x64xbf16>
    %cst_14 = arith.constant dense<0.000000e+00> : vector<2x256xf32>
    %44 = tpu.matmul %43, %1, %cst_14 {dimension_numbers = #tpu.dot_dimension_numbers<[1], [0], [0], [1], [0, 0, 1, 1], [], []>} : vector<2x64xbf16>, vector<64x256xbf16>, vector<2x256xf32> -> vector<2x256xf32>
    %45 = vector.extract_strided_slice %6 {offsets = [2, 0], sizes = [2, 128], strides = [1, 1]} : vector<16x256xf32> to vector<2x128xf32>
    %46 = vector.extract_strided_slice %6 {offsets = [12, 128], sizes = [2, 128], strides = [1, 1]} : vector<16x256xf32> to vector<2x128xf32>
    %47 = tpu.concatenate %45, %46 in 1 : vector<2x128xf32>, vector<2x128xf32> -> vector<2x256xf32>
    %48 = arith.addf %47, %44 : vector<2x256xf32>
    %49 = arith.negf %48 : vector<2x256xf32>
    %50 = math.exp %49 : vector<2x256xf32>
    %cst_15 = arith.constant 1.000000e+00 : f32
    %51 = vector.broadcast %cst_15 : f32 to vector<2x256xf32>
    %52 = arith.addf %51, %50 : vector<2x256xf32>
    %53 = arith.divf %51, %52 : vector<2x256xf32>
    %54 = math.tanh %48 : vector<2x256xf32>
    %55 = vector.extract_strided_slice %53 {offsets = [0, 32], sizes = [2, 32], strides = [1, 1]} : vector<2x256xf32> to vector<2x32xf32>
    %56 = arith.mulf %55, %27 : vector<2x32xf32>
    %57 = vector.extract_strided_slice %53 {offsets = [0, 0], sizes = [2, 32], strides = [1, 1]} : vector<2x256xf32> to vector<2x32xf32>
    %58 = vector.extract_strided_slice %54 {offsets = [0, 64], sizes = [2, 32], strides = [1, 1]} : vector<2x256xf32> to vector<2x32xf32>
    %59 = arith.mulf %57, %58 : vector<2x32xf32>
    %60 = arith.addf %56, %59 : vector<2x32xf32>
    %61 = vector.extract_strided_slice %53 {offsets = [0, 160], sizes = [2, 32], strides = [1, 1]} : vector<2x256xf32> to vector<2x32xf32>
    %62 = arith.mulf %61, %33 : vector<2x32xf32>
    %63 = vector.extract_strided_slice %53 {offsets = [0, 128], sizes = [2, 32], strides = [1, 1]} : vector<2x256xf32> to vector<2x32xf32>
    %64 = vector.extract_strided_slice %54 {offsets = [0, 192], sizes = [2, 32], strides = [1, 1]} : vector<2x256xf32> to vector<2x32xf32>
    %65 = arith.mulf %63, %64 : vector<2x32xf32>
    %66 = arith.addf %62, %65 : vector<2x32xf32>
    %67 = vector.extract_strided_slice %53 {offsets = [0, 96], sizes = [2, 32], strides = [1, 1]} : vector<2x256xf32> to vector<2x32xf32>
    %68 = math.tanh %60 : vector<2x32xf32>
    %69 = arith.mulf %67, %68 : vector<2x32xf32>
    %70 = vector.extract_strided_slice %53 {offsets = [0, 224], sizes = [2, 32], strides = [1, 1]} : vector<2x256xf32> to vector<2x32xf32>
    %71 = math.tanh %66 : vector<2x32xf32>
    %72 = arith.mulf %70, %71 : vector<2x32xf32>
    %73 = tpu.concatenate %69, %72 in 1 : vector<2x32xf32>, vector<2x32xf32> -> vector<2x64xf32>
    %c2 = arith.constant 2 : index
    %c0_16 = arith.constant 0 : index
    %74 = vector.load %arg10[%c2, %c0_16] : memref<16x64xf32, #tpu.memory_space<vmem>>, vector<2x32xf32>
    tpu.vector_store %arg10[%c2, %c0_16], %69 {strides = array<i32>} : memref<16x64xf32, #tpu.memory_space<vmem>>, vector<2x32xf32>,
    %c12 = arith.constant 12 : index
    %c32_17 = arith.constant 32 : index
    %75 = vector.load %arg10[%c12, %c32_17] : memref<16x64xf32, #tpu.memory_space<vmem>>, vector<2x32xf32>
    tpu.vector_store %arg10[%c12, %c32_17], %72 {strides = array<i32>} : memref<16x64xf32, #tpu.memory_space<vmem>>, vector<2x32xf32>,
    %76 = arith.truncf %73 : vector<2x64xf32> to vector<2x64xbf16>
    %cst_18 = arith.constant dense<0.000000e+00> : vector<2x256xf32>
    %77 = tpu.matmul %76, %1, %cst_18 {dimension_numbers = #tpu.dot_dimension_numbers<[1], [0], [0], [1], [0, 0, 1, 1], [], []>} : vector<2x64xbf16>, vector<64x256xbf16>, vector<2x256xf32> -> vector<2x256xf32>
    %78 = vector.extract_strided_slice %6 {offsets = [4, 0], sizes = [2, 128], strides = [1, 1]} : vector<16x256xf32> to vector<2x128xf32>
    %79 = vector.extract_strided_slice %6 {offsets = [10, 128], sizes = [2, 128], strides = [1, 1]} : vector<16x256xf32> to vector<2x128xf32>
    %80 = tpu.concatenate %78, %79 in 1 : vector<2x128xf32>, vector<2x128xf32> -> vector<2x256xf32>
    %81 = arith.addf %80, %77 : vector<2x256xf32>
    %82 = arith.negf %81 : vector<2x256xf32>
    %83 = math.exp %82 : vector<2x256xf32>
    %cst_19 = arith.constant 1.000000e+00 : f32
    %84 = vector.broadcast %cst_19 : f32 to vector<2x256xf32>
    %85 = arith.addf %84, %83 : vector<2x256xf32>
    %86 = arith.divf %84, %85 : vector<2x256xf32>
    %87 = math.tanh %81 : vector<2x256xf32>
    %88 = vector.extract_strided_slice %86 {offsets = [0, 32], sizes = [2, 32], strides = [1, 1]} : vector<2x256xf32> to vector<2x32xf32>
    %89 = arith.mulf %88, %60 : vector<2x32xf32>
    %90 = vector.extract_strided_slice %86 {offsets = [0, 0], sizes = [2, 32], strides = [1, 1]} : vector<2x256xf32> to vector<2x32xf32>
    %91 = vector.extract_strided_slice %87 {offsets = [0, 64], sizes = [2, 32], strides = [1, 1]} : vector<2x256xf32> to vector<2x32xf32>
    %92 = arith.mulf %90, %91 : vector<2x32xf32>
    %93 = arith.addf %89, %92 : vector<2x32xf32>
    %94 = vector.extract_strided_slice %86 {offsets = [0, 160], sizes = [2, 32], strides = [1, 1]} : vector<2x256xf32> to vector<2x32xf32>
    %95 = arith.mulf %94, %66 : vector<2x32xf32>
    %96 = vector.extract_strided_slice %86 {offsets = [0, 128], sizes = [2, 32], strides = [1, 1]} : vector<2x256xf32> to vector<2x32xf32>
    %97 = vector.extract_strided_slice %87 {offsets = [0, 192], sizes = [2, 32], strides = [1, 1]} : vector<2x256xf32> to vector<2x32xf32>
    %98 = arith.mulf %96, %97 : vector<2x32xf32>
    %99 = arith.addf %95, %98 : vector<2x32xf32>
    %100 = vector.extract_strided_slice %86 {offsets = [0, 96], sizes = [2, 32], strides = [1, 1]} : vector<2x256xf32> to vector<2x32xf32>
    %101 = math.tanh %93 : vector<2x32xf32>
    %102 = arith.mulf %100, %101 : vector<2x32xf32>
    %103 = vector.extract_strided_slice %86 {offsets = [0, 224], sizes = [2, 32], strides = [1, 1]} : vector<2x256xf32> to vector<2x32xf32>
    %104 = math.tanh %99 : vector<2x32xf32>
    %105 = arith.mulf %103, %104 : vector<2x32xf32>
    %106 = tpu.concatenate %102, %105 in 1 : vector<2x32xf32>, vector<2x32xf32> -> vector<2x64xf32>
    %c4 = arith.constant 4 : index
    %c0_20 = arith.constant 0 : index
    %107 = vector.load %arg10[%c4, %c0_20] : memref<16x64xf32, #tpu.memory_space<vmem>>, vector<2x32xf32>
    tpu.vector_store %arg10[%c4, %c0_20], %102 {strides = array<i32>} : memref<16x64xf32, #tpu.memory_space<vmem>>, vector<2x32xf32>,
    %c10 = arith.constant 10 : index
    %c32_21 = arith.constant 32 : index
    %108 = vector.load %arg10[%c10, %c32_21] : memref<16x64xf32, #tpu.memory_space<vmem>>, vector<2x32xf32>
    tpu.vector_store %arg10[%c10, %c32_21], %105 {strides = array<i32>} : memref<16x64xf32, #tpu.memory_space<vmem>>, vector<2x32xf32>,
    %109 = arith.truncf %106 : vector<2x64xf32> to vector<2x64xbf16>
    %cst_22 = arith.constant dense<0.000000e+00> : vector<2x256xf32>
    %110 = tpu.matmul %109, %1, %cst_22 {dimension_numbers = #tpu.dot_dimension_numbers<[1], [0], [0], [1], [0, 0, 1, 1], [], []>} : vector<2x64xbf16>, vector<64x256xbf16>, vector<2x256xf32> -> vector<2x256xf32>
    %111 = vector.extract_strided_slice %6 {offsets = [6, 0], sizes = [2, 128], strides = [1, 1]} : vector<16x256xf32> to vector<2x128xf32>
    %112 = vector.extract_strided_slice %6 {offsets = [8, 128], sizes = [2, 128], strides = [1, 1]} : vector<16x256xf32> to vector<2x128xf32>
    %113 = tpu.concatenate %111, %112 in 1 : vector<2x128xf32>, vector<2x128xf32> -> vector<2x256xf32>
    %114 = arith.addf %113, %110 : vector<2x256xf32>
    %115 = arith.negf %114 : vector<2x256xf32>
    %116 = math.exp %115 : vector<2x256xf32>
    %cst_23 = arith.constant 1.000000e+00 : f32
    %117 = vector.broadcast %cst_23 : f32 to vector<2x256xf32>
    %118 = arith.addf %117, %116 : vector<2x256xf32>
    %119 = arith.divf %117, %118 : vector<2x256xf32>
    %120 = math.tanh %114 : vector<2x256xf32>
    %121 = vector.extract_strided_slice %119 {offsets = [0, 32], sizes = [2, 32], strides = [1, 1]} : vector<2x256xf32> to vector<2x32xf32>
    %122 = arith.mulf %121, %93 : vector<2x32xf32>
    %123 = vector.extract_strided_slice %119 {offsets = [0, 0], sizes = [2, 32], strides = [1, 1]} : vector<2x256xf32> to vector<2x32xf32>
    %124 = vector.extract_strided_slice %120 {offsets = [0, 64], sizes = [2, 32], strides = [1, 1]} : vector<2x256xf32> to vector<2x32xf32>
    %125 = arith.mulf %123, %124 : vector<2x32xf32>
    %126 = arith.addf %122, %125 : vector<2x32xf32>
    %127 = vector.extract_strided_slice %119 {offsets = [0, 160], sizes = [2, 32], strides = [1, 1]} : vector<2x256xf32> to vector<2x32xf32>
    %128 = arith.mulf %127, %99 : vector<2x32xf32>
    %129 = vector.extract_strided_slice %119 {offsets = [0, 128], sizes = [2, 32], strides = [1, 1]} : vector<2x256xf32> to vector<2x32xf32>
    %130 = vector.extract_strided_slice %120 {offsets = [0, 192], sizes = [2, 32], strides = [1, 1]} : vector<2x256xf32> to vector<2x32xf32>
    %131 = arith.mulf %129, %130 : vector<2x32xf32>
    %132 = arith.addf %128, %131 : vector<2x32xf32>
    %133 = vector.extract_strided_slice %119 {offsets = [0, 96], sizes = [2, 32], strides = [1, 1]} : vector<2x256xf32> to vector<2x32xf32>
    %134 = math.tanh %126 : vector<2x32xf32>
    %135 = arith.mulf %133, %134 : vector<2x32xf32>
    %136 = vector.extract_strided_slice %119 {offsets = [0, 224], sizes = [2, 32], strides = [1, 1]} : vector<2x256xf32> to vector<2x32xf32>
    %137 = math.tanh %132 : vector<2x32xf32>
    %138 = arith.mulf %136, %137 : vector<2x32xf32>
    %139 = tpu.concatenate %135, %138 in 1 : vector<2x32xf32>, vector<2x32xf32> -> vector<2x64xf32>
    %c6 = arith.constant 6 : index
    %c0_24 = arith.constant 0 : index
    %140 = vector.load %arg10[%c6, %c0_24] : memref<16x64xf32, #tpu.memory_space<vmem>>, vector<2x32xf32>
    tpu.vector_store %arg10[%c6, %c0_24], %135 {strides = array<i32>} : memref<16x64xf32, #tpu.memory_space<vmem>>, vector<2x32xf32>,
    %c8 = arith.constant 8 : index
    %c32_25 = arith.constant 32 : index
    %141 = vector.load %arg10[%c8, %c32_25] : memref<16x64xf32, #tpu.memory_space<vmem>>, vector<2x32xf32>
    tpu.vector_store %arg10[%c8, %c32_25], %138 {strides = array<i32>} : memref<16x64xf32, #tpu.memory_space<vmem>>, vector<2x32xf32>,
    %142 = arith.truncf %139 : vector<2x64xf32> to vector<2x64xbf16>
    %cst_26 = arith.constant dense<0.000000e+00> : vector<2x256xf32>
    %143 = tpu.matmul %142, %1, %cst_26 {dimension_numbers = #tpu.dot_dimension_numbers<[1], [0], [0], [1], [0, 0, 1, 1], [], []>} : vector<2x64xbf16>, vector<64x256xbf16>, vector<2x256xf32> -> vector<2x256xf32>
    %144 = vector.extract_strided_slice %6 {offsets = [8, 0], sizes = [2, 128], strides = [1, 1]} : vector<16x256xf32> to vector<2x128xf32>
    %145 = vector.extract_strided_slice %6 {offsets = [6, 128], sizes = [2, 128], strides = [1, 1]} : vector<16x256xf32> to vector<2x128xf32>
    %146 = tpu.concatenate %144, %145 in 1 : vector<2x128xf32>, vector<2x128xf32> -> vector<2x256xf32>
    %147 = arith.addf %146, %143 : vector<2x256xf32>
    %148 = arith.negf %147 : vector<2x256xf32>
    %149 = math.exp %148 : vector<2x256xf32>
    %cst_27 = arith.constant 1.000000e+00 : f32
    %150 = vector.broadcast %cst_27 : f32 to vector<2x256xf32>
    %151 = arith.addf %150, %149 : vector<2x256xf32>
    %152 = arith.divf %150, %151 : vector<2x256xf32>
    %153 = math.tanh %147 : vector<2x256xf32>
    %154 = vector.extract_strided_slice %152 {offsets = [0, 32], sizes = [2, 32], strides = [1, 1]} : vector<2x256xf32> to vector<2x32xf32>
    %155 = arith.mulf %154, %126 : vector<2x32xf32>
    %156 = vector.extract_strided_slice %152 {offsets = [0, 0], sizes = [2, 32], strides = [1, 1]} : vector<2x256xf32> to vector<2x32xf32>
    %157 = vector.extract_strided_slice %153 {offsets = [0, 64], sizes = [2, 32], strides = [1, 1]} : vector<2x256xf32> to vector<2x32xf32>
    %158 = arith.mulf %156, %157 : vector<2x32xf32>
    %159 = arith.addf %155, %158 : vector<2x32xf32>
    %160 = vector.extract_strided_slice %152 {offsets = [0, 160], sizes = [2, 32], strides = [1, 1]} : vector<2x256xf32> to vector<2x32xf32>
    %161 = arith.mulf %160, %132 : vector<2x32xf32>
    %162 = vector.extract_strided_slice %152 {offsets = [0, 128], sizes = [2, 32], strides = [1, 1]} : vector<2x256xf32> to vector<2x32xf32>
    %163 = vector.extract_strided_slice %153 {offsets = [0, 192], sizes = [2, 32], strides = [1, 1]} : vector<2x256xf32> to vector<2x32xf32>
    %164 = arith.mulf %162, %163 : vector<2x32xf32>
    %165 = arith.addf %161, %164 : vector<2x32xf32>
    %166 = vector.extract_strided_slice %152 {offsets = [0, 96], sizes = [2, 32], strides = [1, 1]} : vector<2x256xf32> to vector<2x32xf32>
    %167 = math.tanh %159 : vector<2x32xf32>
    %168 = arith.mulf %166, %167 : vector<2x32xf32>
    %169 = vector.extract_strided_slice %152 {offsets = [0, 224], sizes = [2, 32], strides = [1, 1]} : vector<2x256xf32> to vector<2x32xf32>
    %170 = math.tanh %165 : vector<2x32xf32>
    %171 = arith.mulf %169, %170 : vector<2x32xf32>
    %172 = tpu.concatenate %168, %171 in 1 : vector<2x32xf32>, vector<2x32xf32> -> vector<2x64xf32>
    %c8_28 = arith.constant 8 : index
    %c0_29 = arith.constant 0 : index
    %173 = vector.load %arg10[%c8_28, %c0_29] : memref<16x64xf32, #tpu.memory_space<vmem>>, vector<2x32xf32>
    tpu.vector_store %arg10[%c8_28, %c0_29], %168 {strides = array<i32>} : memref<16x64xf32, #tpu.memory_space<vmem>>, vector<2x32xf32>,
    %c6_30 = arith.constant 6 : index
    %c32_31 = arith.constant 32 : index
    %174 = vector.load %arg10[%c6_30, %c32_31] : memref<16x64xf32, #tpu.memory_space<vmem>>, vector<2x32xf32>
    tpu.vector_store %arg10[%c6_30, %c32_31], %171 {strides = array<i32>} : memref<16x64xf32, #tpu.memory_space<vmem>>, vector<2x32xf32>,
    %175 = arith.truncf %172 : vector<2x64xf32> to vector<2x64xbf16>
    %cst_32 = arith.constant dense<0.000000e+00> : vector<2x256xf32>
    %176 = tpu.matmul %175, %1, %cst_32 {dimension_numbers = #tpu.dot_dimension_numbers<[1], [0], [0], [1], [0, 0, 1, 1], [], []>} : vector<2x64xbf16>, vector<64x256xbf16>, vector<2x256xf32> -> vector<2x256xf32>
    %177 = vector.extract_strided_slice %6 {offsets = [10, 0], sizes = [2, 128], strides = [1, 1]} : vector<16x256xf32> to vector<2x128xf32>
    %178 = vector.extract_strided_slice %6 {offsets = [4, 128], sizes = [2, 128], strides = [1, 1]} : vector<16x256xf32> to vector<2x128xf32>
    %179 = tpu.concatenate %177, %178 in 1 : vector<2x128xf32>, vector<2x128xf32> -> vector<2x256xf32>
    %180 = arith.addf %179, %176 : vector<2x256xf32>
    %181 = arith.negf %180 : vector<2x256xf32>
    %182 = math.exp %181 : vector<2x256xf32>
    %cst_33 = arith.constant 1.000000e+00 : f32
    %183 = vector.broadcast %cst_33 : f32 to vector<2x256xf32>
    %184 = arith.addf %183, %182 : vector<2x256xf32>
    %185 = arith.divf %183, %184 : vector<2x256xf32>
    %186 = math.tanh %180 : vector<2x256xf32>
    %187 = vector.extract_strided_slice %185 {offsets = [0, 32], sizes = [2, 32], strides = [1, 1]} : vector<2x256xf32> to vector<2x32xf32>
    %188 = arith.mulf %187, %159 : vector<2x32xf32>
    %189 = vector.extract_strided_slice %185 {offsets = [0, 0], sizes = [2, 32], strides = [1, 1]} : vector<2x256xf32> to vector<2x32xf32>
    %190 = vector.extract_strided_slice %186 {offsets = [0, 64], sizes = [2, 32], strides = [1, 1]} : vector<2x256xf32> to vector<2x32xf32>
    %191 = arith.mulf %189, %190 : vector<2x32xf32>
    %192 = arith.addf %188, %191 : vector<2x32xf32>
    %193 = vector.extract_strided_slice %185 {offsets = [0, 160], sizes = [2, 32], strides = [1, 1]} : vector<2x256xf32> to vector<2x32xf32>
    %194 = arith.mulf %193, %165 : vector<2x32xf32>
    %195 = vector.extract_strided_slice %185 {offsets = [0, 128], sizes = [2, 32], strides = [1, 1]} : vector<2x256xf32> to vector<2x32xf32>
    %196 = vector.extract_strided_slice %186 {offsets = [0, 192], sizes = [2, 32], strides = [1, 1]} : vector<2x256xf32> to vector<2x32xf32>
    %197 = arith.mulf %195, %196 : vector<2x32xf32>
    %198 = arith.addf %194, %197 : vector<2x32xf32>
    %199 = vector.extract_strided_slice %185 {offsets = [0, 96], sizes = [2, 32], strides = [1, 1]} : vector<2x256xf32> to vector<2x32xf32>
    %200 = math.tanh %192 : vector<2x32xf32>
    %201 = arith.mulf %199, %200 : vector<2x32xf32>
    %202 = vector.extract_strided_slice %185 {offsets = [0, 224], sizes = [2, 32], strides = [1, 1]} : vector<2x256xf32> to vector<2x32xf32>
    %203 = math.tanh %198 : vector<2x32xf32>
    %204 = arith.mulf %202, %203 : vector<2x32xf32>
    %205 = tpu.concatenate %201, %204 in 1 : vector<2x32xf32>, vector<2x32xf32> -> vector<2x64xf32>
    %c10_34 = arith.constant 10 : index
    %c0_35 = arith.constant 0 : index
    %206 = vector.load %arg10[%c10_34, %c0_35] : memref<16x64xf32, #tpu.memory_space<vmem>>, vector<2x32xf32>
    tpu.vector_store %arg10[%c10_34, %c0_35], %201 {strides = array<i32>} : memref<16x64xf32, #tpu.memory_space<vmem>>, vector<2x32xf32>,
    %c4_36 = arith.constant 4 : index
    %c32_37 = arith.constant 32 : index
    %207 = vector.load %arg10[%c4_36, %c32_37] : memref<16x64xf32, #tpu.memory_space<vmem>>, vector<2x32xf32>
    tpu.vector_store %arg10[%c4_36, %c32_37], %204 {strides = array<i32>} : memref<16x64xf32, #tpu.memory_space<vmem>>, vector<2x32xf32>,
    %208 = arith.truncf %205 : vector<2x64xf32> to vector<2x64xbf16>
    %cst_38 = arith.constant dense<0.000000e+00> : vector<2x256xf32>
    %209 = tpu.matmul %208, %1, %cst_38 {dimension_numbers = #tpu.dot_dimension_numbers<[1], [0], [0], [1], [0, 0, 1, 1], [], []>} : vector<2x64xbf16>, vector<64x256xbf16>, vector<2x256xf32> -> vector<2x256xf32>
    %210 = vector.extract_strided_slice %6 {offsets = [12, 0], sizes = [2, 128], strides = [1, 1]} : vector<16x256xf32> to vector<2x128xf32>
    %211 = vector.extract_strided_slice %6 {offsets = [2, 128], sizes = [2, 128], strides = [1, 1]} : vector<16x256xf32> to vector<2x128xf32>
    %212 = tpu.concatenate %210, %211 in 1 : vector<2x128xf32>, vector<2x128xf32> -> vector<2x256xf32>
    %213 = arith.addf %212, %209 : vector<2x256xf32>
    %214 = arith.negf %213 : vector<2x256xf32>
    %215 = math.exp %214 : vector<2x256xf32>
    %cst_39 = arith.constant 1.000000e+00 : f32
    %216 = vector.broadcast %cst_39 : f32 to vector<2x256xf32>
    %217 = arith.addf %216, %215 : vector<2x256xf32>
    %218 = arith.divf %216, %217 : vector<2x256xf32>
    %219 = math.tanh %213 : vector<2x256xf32>
    %220 = vector.extract_strided_slice %218 {offsets = [0, 32], sizes = [2, 32], strides = [1, 1]} : vector<2x256xf32> to vector<2x32xf32>
    %221 = arith.mulf %220, %192 : vector<2x32xf32>
    %222 = vector.extract_strided_slice %218 {offsets = [0, 0], sizes = [2, 32], strides = [1, 1]} : vector<2x256xf32> to vector<2x32xf32>
    %223 = vector.extract_strided_slice %219 {offsets = [0, 64], sizes = [2, 32], strides = [1, 1]} : vector<2x256xf32> to vector<2x32xf32>
    %224 = arith.mulf %222, %223 : vector<2x32xf32>
    %225 = arith.addf %221, %224 : vector<2x32xf32>
    %226 = vector.extract_strided_slice %218 {offsets = [0, 160], sizes = [2, 32], strides = [1, 1]} : vector<2x256xf32> to vector<2x32xf32>
    %227 = arith.mulf %226, %198 : vector<2x32xf32>
    %228 = vector.extract_strided_slice %218 {offsets = [0, 128], sizes = [2, 32], strides = [1, 1]} : vector<2x256xf32> to vector<2x32xf32>
    %229 = vector.extract_strided_slice %219 {offsets = [0, 192], sizes = [2, 32], strides = [1, 1]} : vector<2x256xf32> to vector<2x32xf32>
    %230 = arith.mulf %228, %229 : vector<2x32xf32>
    %231 = arith.addf %227, %230 : vector<2x32xf32>
    %232 = vector.extract_strided_slice %218 {offsets = [0, 96], sizes = [2, 32], strides = [1, 1]} : vector<2x256xf32> to vector<2x32xf32>
    %233 = math.tanh %225 : vector<2x32xf32>
    %234 = arith.mulf %232, %233 : vector<2x32xf32>
    %235 = vector.extract_strided_slice %218 {offsets = [0, 224], sizes = [2, 32], strides = [1, 1]} : vector<2x256xf32> to vector<2x32xf32>
    %236 = math.tanh %231 : vector<2x32xf32>
    %237 = arith.mulf %235, %236 : vector<2x32xf32>
    %238 = tpu.concatenate %234, %237 in 1 : vector<2x32xf32>, vector<2x32xf32> -> vector<2x64xf32>
    %c12_40 = arith.constant 12 : index
    %c0_41 = arith.constant 0 : index
    %239 = vector.load %arg10[%c12_40, %c0_41] : memref<16x64xf32, #tpu.memory_space<vmem>>, vector<2x32xf32>
    tpu.vector_store %arg10[%c12_40, %c0_41], %234 {strides = array<i32>} : memref<16x64xf32, #tpu.memory_space<vmem>>, vector<2x32xf32>,
    %c2_42 = arith.constant 2 : index
    %c32_43 = arith.constant 32 : index
    %240 = vector.load %arg10[%c2_42, %c32_43] : memref<16x64xf32, #tpu.memory_space<vmem>>, vector<2x32xf32>
    tpu.vector_store %arg10[%c2_42, %c32_43], %237 {strides = array<i32>} : memref<16x64xf32, #tpu.memory_space<vmem>>, vector<2x32xf32>,
    %241 = arith.truncf %238 : vector<2x64xf32> to vector<2x64xbf16>
    %cst_44 = arith.constant dense<0.000000e+00> : vector<2x256xf32>
    %242 = tpu.matmul %241, %1, %cst_44 {dimension_numbers = #tpu.dot_dimension_numbers<[1], [0], [0], [1], [0, 0, 1, 1], [], []>} : vector<2x64xbf16>, vector<64x256xbf16>, vector<2x256xf32> -> vector<2x256xf32>
    %243 = vector.extract_strided_slice %6 {offsets = [14, 0], sizes = [2, 128], strides = [1, 1]} : vector<16x256xf32> to vector<2x128xf32>
    %244 = vector.extract_strided_slice %6 {offsets = [0, 128], sizes = [2, 128], strides = [1, 1]} : vector<16x256xf32> to vector<2x128xf32>
    %245 = tpu.concatenate %243, %244 in 1 : vector<2x128xf32>, vector<2x128xf32> -> vector<2x256xf32>
    %246 = arith.addf %245, %242 : vector<2x256xf32>
    %247 = arith.negf %246 : vector<2x256xf32>
    %248 = math.exp %247 : vector<2x256xf32>
    %cst_45 = arith.constant 1.000000e+00 : f32
    %249 = vector.broadcast %cst_45 : f32 to vector<2x256xf32>
    %250 = arith.addf %249, %248 : vector<2x256xf32>
    %251 = arith.divf %249, %250 : vector<2x256xf32>
    %252 = math.tanh %246 : vector<2x256xf32>
    %253 = vector.extract_strided_slice %251 {offsets = [0, 32], sizes = [2, 32], strides = [1, 1]} : vector<2x256xf32> to vector<2x32xf32>
    %254 = arith.mulf %253, %225 : vector<2x32xf32>
    %255 = vector.extract_strided_slice %251 {offsets = [0, 0], sizes = [2, 32], strides = [1, 1]} : vector<2x256xf32> to vector<2x32xf32>
    %256 = vector.extract_strided_slice %252 {offsets = [0, 64], sizes = [2, 32], strides = [1, 1]} : vector<2x256xf32> to vector<2x32xf32>
    %257 = arith.mulf %255, %256 : vector<2x32xf32>
    %258 = arith.addf %254, %257 : vector<2x32xf32>
    %259 = vector.extract_strided_slice %251 {offsets = [0, 160], sizes = [2, 32], strides = [1, 1]} : vector<2x256xf32> to vector<2x32xf32>
    %260 = arith.mulf %259, %231 : vector<2x32xf32>
    %261 = vector.extract_strided_slice %251 {offsets = [0, 128], sizes = [2, 32], strides = [1, 1]} : vector<2x256xf32> to vector<2x32xf32>
    %262 = vector.extract_strided_slice %252 {offsets = [0, 192], sizes = [2, 32], strides = [1, 1]} : vector<2x256xf32> to vector<2x32xf32>
    %263 = arith.mulf %261, %262 : vector<2x32xf32>
    %264 = arith.addf %260, %263 : vector<2x32xf32>
    %265 = vector.extract_strided_slice %251 {offsets = [0, 96], sizes = [2, 32], strides = [1, 1]} : vector<2x256xf32> to vector<2x32xf32>
    %266 = math.tanh %258 : vector<2x32xf32>
    %267 = arith.mulf %265, %266 : vector<2x32xf32>
    %268 = vector.extract_strided_slice %251 {offsets = [0, 224], sizes = [2, 32], strides = [1, 1]} : vector<2x256xf32> to vector<2x32xf32>
    %269 = math.tanh %264 : vector<2x32xf32>
    %270 = arith.mulf %268, %269 : vector<2x32xf32>
    %c14_46 = arith.constant 14 : index
    %c0_47 = arith.constant 0 : index
    %271 = vector.load %arg10[%c14_46, %c0_47] : memref<16x64xf32, #tpu.memory_space<vmem>>, vector<2x32xf32>
    tpu.vector_store %arg10[%c14_46, %c0_47], %267 {strides = array<i32>} : memref<16x64xf32, #tpu.memory_space<vmem>>, vector<2x32xf32>,
    %c0_48 = arith.constant 0 : index
    %c32_49 = arith.constant 32 : index
    %272 = vector.load %arg10[%c0_48, %c32_49] : memref<16x64xf32, #tpu.memory_space<vmem>>, vector<2x32xf32>
    tpu.vector_store %arg10[%c0_48, %c32_49], %270 {strides = array<i32>} : memref<16x64xf32, #tpu.memory_space<vmem>>, vector<2x32xf32>,
    %c0_50 = arith.constant 0 : index
    %c0_51 = arith.constant 0 : index
    %273 = vector.load %arg4[%c0_50, %c0_51] : memref<64x256xbf16, #tpu.memory_space<vmem>>, vector<64x256xbf16>
    %c0_52 = arith.constant 0 : index
    %c0_53 = arith.constant 0 : index
    %274 = vector.load %arg5[%c0_52, %c0_53] : memref<64x256xbf16, #tpu.memory_space<vmem>>, vector<64x256xbf16>
    %c0_54 = arith.constant 0 : index
    %c0_55 = arith.constant 0 : index
    %275 = vector.load %arg6[%c0_54, %c0_55] : memref<1x256xf32, #tpu.memory_space<vmem>>, vector<1x256xf32>
    %c0_56 = arith.constant 0 : index
    %c0_57 = arith.constant 0 : index
    %276 = vector.load %arg10[%c0_56, %c0_57] : memref<16x64xf32, #tpu.memory_space<vmem>>, vector<16x64xf32>
    %277 = arith.truncf %276 : vector<16x64xf32> to vector<16x64xbf16>
    %cst_58 = arith.constant dense<0.000000e+00> : vector<16x256xf32>
    %278 = tpu.matmul %277, %273, %cst_58 {dimension_numbers = #tpu.dot_dimension_numbers<[1], [0], [0], [1], [0, 0, 1, 1], [], []>} : vector<16x64xbf16>, vector<64x256xbf16>, vector<16x256xf32> -> vector<16x256xf32>
    %279 = vector.broadcast %275 : vector<1x256xf32> to vector<16x256xf32>
    %280 = arith.addf %278, %279 : vector<16x256xf32>
    %cst_59 = arith.constant 0.000000e+00 : f32
    %281 = vector.broadcast %cst_59 : f32 to vector<2x64xf32>
    %cst_60 = arith.constant 0.000000e+00 : f32
    %282 = vector.broadcast %cst_60 : f32 to vector<2x32xf32>
    %cst_61 = arith.constant 0.000000e+00 : f32
    %283 = vector.broadcast %cst_61 : f32 to vector<2x32xf32>
    %284 = arith.truncf %281 : vector<2x64xf32> to vector<2x64xbf16>
    %cst_62 = arith.constant dense<0.000000e+00> : vector<2x256xf32>
    %285 = tpu.matmul %284, %274, %cst_62 {dimension_numbers = #tpu.dot_dimension_numbers<[1], [0], [0], [1], [0, 0, 1, 1], [], []>} : vector<2x64xbf16>, vector<64x256xbf16>, vector<2x256xf32> -> vector<2x256xf32>
    %286 = vector.extract_strided_slice %280 {offsets = [0, 0], sizes = [2, 128], strides = [1, 1]} : vector<16x256xf32> to vector<2x128xf32>
    %287 = vector.extract_strided_slice %280 {offsets = [14, 128], sizes = [2, 128], strides = [1, 1]} : vector<16x256xf32> to vector<2x128xf32>
    %288 = tpu.concatenate %286, %287 in 1 : vector<2x128xf32>, vector<2x128xf32> -> vector<2x256xf32>
    %289 = arith.addf %288, %285 : vector<2x256xf32>
    %290 = arith.negf %289 : vector<2x256xf32>
    %291 = math.exp %290 : vector<2x256xf32>
    %cst_63 = arith.constant 1.000000e+00 : f32
    %292 = vector.broadcast %cst_63 : f32 to vector<2x256xf32>
    %293 = arith.addf %292, %291 : vector<2x256xf32>
    %294 = arith.divf %292, %293 : vector<2x256xf32>
    %295 = math.tanh %289 : vector<2x256xf32>
    %296 = vector.extract_strided_slice %294 {offsets = [0, 32], sizes = [2, 32], strides = [1, 1]} : vector<2x256xf32> to vector<2x32xf32>
    %297 = arith.mulf %296, %282 : vector<2x32xf32>
    %298 = vector.extract_strided_slice %294 {offsets = [0, 0], sizes = [2, 32], strides = [1, 1]} : vector<2x256xf32> to vector<2x32xf32>
    %299 = vector.extract_strided_slice %295 {offsets = [0, 64], sizes = [2, 32], strides = [1, 1]} : vector<2x256xf32> to vector<2x32xf32>
    %300 = arith.mulf %298, %299 : vector<2x32xf32>
    %301 = arith.addf %297, %300 : vector<2x32xf32>
    %302 = vector.extract_strided_slice %294 {offsets = [0, 160], sizes = [2, 32], strides = [1, 1]} : vector<2x256xf32> to vector<2x32xf32>
    %303 = arith.mulf %302, %283 : vector<2x32xf32>
    %304 = vector.extract_strided_slice %294 {offsets = [0, 128], sizes = [2, 32], strides = [1, 1]} : vector<2x256xf32> to vector<2x32xf32>
    %305 = vector.extract_strided_slice %295 {offsets = [0, 192], sizes = [2, 32], strides = [1, 1]} : vector<2x256xf32> to vector<2x32xf32>
    %306 = arith.mulf %304, %305 : vector<2x32xf32>
    %307 = arith.addf %303, %306 : vector<2x32xf32>
    %308 = vector.extract_strided_slice %294 {offsets = [0, 96], sizes = [2, 32], strides = [1, 1]} : vector<2x256xf32> to vector<2x32xf32>
    %309 = math.tanh %301 : vector<2x32xf32>
    %310 = arith.mulf %308, %309 : vector<2x32xf32>
    %311 = vector.extract_strided_slice %294 {offsets = [0, 224], sizes = [2, 32], strides = [1, 1]} : vector<2x256xf32> to vector<2x32xf32>
    %312 = math.tanh %307 : vector<2x32xf32>
    %313 = arith.mulf %311, %312 : vector<2x32xf32>
    %314 = tpu.concatenate %310, %313 in 1 : vector<2x32xf32>, vector<2x32xf32> -> vector<2x64xf32>
    %c0_64 = arith.constant 0 : index
    %c0_65 = arith.constant 0 : index
    %315 = vector.load %arg11[%c0_64, %c0_65] : memref<16x64xf32, #tpu.memory_space<vmem>>, vector<2x32xf32>
    tpu.vector_store %arg11[%c0_64, %c0_65], %310 {strides = array<i32>} : memref<16x64xf32, #tpu.memory_space<vmem>>, vector<2x32xf32>,
    %c14_66 = arith.constant 14 : index
    %c32_67 = arith.constant 32 : index
    %316 = vector.load %arg11[%c14_66, %c32_67] : memref<16x64xf32, #tpu.memory_space<vmem>>, vector<2x32xf32>
    tpu.vector_store %arg11[%c14_66, %c32_67], %313 {strides = array<i32>} : memref<16x64xf32, #tpu.memory_space<vmem>>, vector<2x32xf32>,
    %317 = arith.truncf %314 : vector<2x64xf32> to vector<2x64xbf16>
    %cst_68 = arith.constant dense<0.000000e+00> : vector<2x256xf32>
    %318 = tpu.matmul %317, %274, %cst_68 {dimension_numbers = #tpu.dot_dimension_numbers<[1], [0], [0], [1], [0, 0, 1, 1], [], []>} : vector<2x64xbf16>, vector<64x256xbf16>, vector<2x256xf32> -> vector<2x256xf32>
    %319 = vector.extract_strided_slice %280 {offsets = [2, 0], sizes = [2, 128], strides = [1, 1]} : vector<16x256xf32> to vector<2x128xf32>
    %320 = vector.extract_strided_slice %280 {offsets = [12, 128], sizes = [2, 128], strides = [1, 1]} : vector<16x256xf32> to vector<2x128xf32>
    %321 = tpu.concatenate %319, %320 in 1 : vector<2x128xf32>, vector<2x128xf32> -> vector<2x256xf32>
    %322 = arith.addf %321, %318 : vector<2x256xf32>
    %323 = arith.negf %322 : vector<2x256xf32>
    %324 = math.exp %323 : vector<2x256xf32>
    %cst_69 = arith.constant 1.000000e+00 : f32
    %325 = vector.broadcast %cst_69 : f32 to vector<2x256xf32>
    %326 = arith.addf %325, %324 : vector<2x256xf32>
    %327 = arith.divf %325, %326 : vector<2x256xf32>
    %328 = math.tanh %322 : vector<2x256xf32>
    %329 = vector.extract_strided_slice %327 {offsets = [0, 32], sizes = [2, 32], strides = [1, 1]} : vector<2x256xf32> to vector<2x32xf32>
    %330 = arith.mulf %329, %301 : vector<2x32xf32>
    %331 = vector.extract_strided_slice %327 {offsets = [0, 0], sizes = [2, 32], strides = [1, 1]} : vector<2x256xf32> to vector<2x32xf32>
    %332 = vector.extract_strided_slice %328 {offsets = [0, 64], sizes = [2, 32], strides = [1, 1]} : vector<2x256xf32> to vector<2x32xf32>
    %333 = arith.mulf %331, %332 : vector<2x32xf32>
    %334 = arith.addf %330, %333 : vector<2x32xf32>
    %335 = vector.extract_strided_slice %327 {offsets = [0, 160], sizes = [2, 32], strides = [1, 1]} : vector<2x256xf32> to vector<2x32xf32>
    %336 = arith.mulf %335, %307 : vector<2x32xf32>
    %337 = vector.extract_strided_slice %327 {offsets = [0, 128], sizes = [2, 32], strides = [1, 1]} : vector<2x256xf32> to vector<2x32xf32>
    %338 = vector.extract_strided_slice %328 {offsets = [0, 192], sizes = [2, 32], strides = [1, 1]} : vector<2x256xf32> to vector<2x32xf32>
    %339 = arith.mulf %337, %338 : vector<2x32xf32>
    %340 = arith.addf %336, %339 : vector<2x32xf32>
    %341 = vector.extract_strided_slice %327 {offsets = [0, 96], sizes = [2, 32], strides = [1, 1]} : vector<2x256xf32> to vector<2x32xf32>
    %342 = math.tanh %334 : vector<2x32xf32>
    %343 = arith.mulf %341, %342 : vector<2x32xf32>
    %344 = vector.extract_strided_slice %327 {offsets = [0, 224], sizes = [2, 32], strides = [1, 1]} : vector<2x256xf32> to vector<2x32xf32>
    %345 = math.tanh %340 : vector<2x32xf32>
    %346 = arith.mulf %344, %345 : vector<2x32xf32>
    %347 = tpu.concatenate %343, %346 in 1 : vector<2x32xf32>, vector<2x32xf32> -> vector<2x64xf32>
    %c2_70 = arith.constant 2 : index
    %c0_71 = arith.constant 0 : index
    %348 = vector.load %arg11[%c2_70, %c0_71] : memref<16x64xf32, #tpu.memory_space<vmem>>, vector<2x32xf32>
    tpu.vector_store %arg11[%c2_70, %c0_71], %343 {strides = array<i32>} : memref<16x64xf32, #tpu.memory_space<vmem>>, vector<2x32xf32>,
    %c12_72 = arith.constant 12 : index
    %c32_73 = arith.constant 32 : index
    %349 = vector.load %arg11[%c12_72, %c32_73] : memref<16x64xf32, #tpu.memory_space<vmem>>, vector<2x32xf32>
    tpu.vector_store %arg11[%c12_72, %c32_73], %346 {strides = array<i32>} : memref<16x64xf32, #tpu.memory_space<vmem>>, vector<2x32xf32>,
    %350 = arith.truncf %347 : vector<2x64xf32> to vector<2x64xbf16>
    %cst_74 = arith.constant dense<0.000000e+00> : vector<2x256xf32>
    %351 = tpu.matmul %350, %274, %cst_74 {dimension_numbers = #tpu.dot_dimension_numbers<[1], [0], [0], [1], [0, 0, 1, 1], [], []>} : vector<2x64xbf16>, vector<64x256xbf16>, vector<2x256xf32> -> vector<2x256xf32>
    %352 = vector.extract_strided_slice %280 {offsets = [4, 0], sizes = [2, 128], strides = [1, 1]} : vector<16x256xf32> to vector<2x128xf32>
    %353 = vector.extract_strided_slice %280 {offsets = [10, 128], sizes = [2, 128], strides = [1, 1]} : vector<16x256xf32> to vector<2x128xf32>
    %354 = tpu.concatenate %352, %353 in 1 : vector<2x128xf32>, vector<2x128xf32> -> vector<2x256xf32>
    %355 = arith.addf %354, %351 : vector<2x256xf32>
    %356 = arith.negf %355 : vector<2x256xf32>
    %357 = math.exp %356 : vector<2x256xf32>
    %cst_75 = arith.constant 1.000000e+00 : f32
    %358 = vector.broadcast %cst_75 : f32 to vector<2x256xf32>
    %359 = arith.addf %358, %357 : vector<2x256xf32>
    %360 = arith.divf %358, %359 : vector<2x256xf32>
    %361 = math.tanh %355 : vector<2x256xf32>
    %362 = vector.extract_strided_slice %360 {offsets = [0, 32], sizes = [2, 32], strides = [1, 1]} : vector<2x256xf32> to vector<2x32xf32>
    %363 = arith.mulf %362, %334 : vector<2x32xf32>
    %364 = vector.extract_strided_slice %360 {offsets = [0, 0], sizes = [2, 32], strides = [1, 1]} : vector<2x256xf32> to vector<2x32xf32>
    %365 = vector.extract_strided_slice %361 {offsets = [0, 64], sizes = [2, 32], strides = [1, 1]} : vector<2x256xf32> to vector<2x32xf32>
    %366 = arith.mulf %364, %365 : vector<2x32xf32>
    %367 = arith.addf %363, %366 : vector<2x32xf32>
    %368 = vector.extract_strided_slice %360 {offsets = [0, 160], sizes = [2, 32], strides = [1, 1]} : vector<2x256xf32> to vector<2x32xf32>
    %369 = arith.mulf %368, %340 : vector<2x32xf32>
    %370 = vector.extract_strided_slice %360 {offsets = [0, 128], sizes = [2, 32], strides = [1, 1]} : vector<2x256xf32> to vector<2x32xf32>
    %371 = vector.extract_strided_slice %361 {offsets = [0, 192], sizes = [2, 32], strides = [1, 1]} : vector<2x256xf32> to vector<2x32xf32>
    %372 = arith.mulf %370, %371 : vector<2x32xf32>
    %373 = arith.addf %369, %372 : vector<2x32xf32>
    %374 = vector.extract_strided_slice %360 {offsets = [0, 96], sizes = [2, 32], strides = [1, 1]} : vector<2x256xf32> to vector<2x32xf32>
    %375 = math.tanh %367 : vector<2x32xf32>
    %376 = arith.mulf %374, %375 : vector<2x32xf32>
    %377 = vector.extract_strided_slice %360 {offsets = [0, 224], sizes = [2, 32], strides = [1, 1]} : vector<2x256xf32> to vector<2x32xf32>
    %378 = math.tanh %373 : vector<2x32xf32>
    %379 = arith.mulf %377, %378 : vector<2x32xf32>
    %380 = tpu.concatenate %376, %379 in 1 : vector<2x32xf32>, vector<2x32xf32> -> vector<2x64xf32>
    %c4_76 = arith.constant 4 : index
    %c0_77 = arith.constant 0 : index
    %381 = vector.load %arg11[%c4_76, %c0_77] : memref<16x64xf32, #tpu.memory_space<vmem>>, vector<2x32xf32>
    tpu.vector_store %arg11[%c4_76, %c0_77], %376 {strides = array<i32>} : memref<16x64xf32, #tpu.memory_space<vmem>>, vector<2x32xf32>,
    %c10_78 = arith.constant 10 : index
    %c32_79 = arith.constant 32 : index
    %382 = vector.load %arg11[%c10_78, %c32_79] : memref<16x64xf32, #tpu.memory_space<vmem>>, vector<2x32xf32>
    tpu.vector_store %arg11[%c10_78, %c32_79], %379 {strides = array<i32>} : memref<16x64xf32, #tpu.memory_space<vmem>>, vector<2x32xf32>,
    %383 = arith.truncf %380 : vector<2x64xf32> to vector<2x64xbf16>
    %cst_80 = arith.constant dense<0.000000e+00> : vector<2x256xf32>
    %384 = tpu.matmul %383, %274, %cst_80 {dimension_numbers = #tpu.dot_dimension_numbers<[1], [0], [0], [1], [0, 0, 1, 1], [], []>} : vector<2x64xbf16>, vector<64x256xbf16>, vector<2x256xf32> -> vector<2x256xf32>
    %385 = vector.extract_strided_slice %280 {offsets = [6, 0], sizes = [2, 128], strides = [1, 1]} : vector<16x256xf32> to vector<2x128xf32>
    %386 = vector.extract_strided_slice %280 {offsets = [8, 128], sizes = [2, 128], strides = [1, 1]} : vector<16x256xf32> to vector<2x128xf32>
    %387 = tpu.concatenate %385, %386 in 1 : vector<2x128xf32>, vector<2x128xf32> -> vector<2x256xf32>
    %388 = arith.addf %387, %384 : vector<2x256xf32>
    %389 = arith.negf %388 : vector<2x256xf32>
    %390 = math.exp %389 : vector<2x256xf32>
    %cst_81 = arith.constant 1.000000e+00 : f32
    %391 = vector.broadcast %cst_81 : f32 to vector<2x256xf32>
    %392 = arith.addf %391, %390 : vector<2x256xf32>
    %393 = arith.divf %391, %392 : vector<2x256xf32>
    %394 = math.tanh %388 : vector<2x256xf32>
    %395 = vector.extract_strided_slice %393 {offsets = [0, 32], sizes = [2, 32], strides = [1, 1]} : vector<2x256xf32> to vector<2x32xf32>
    %396 = arith.mulf %395, %367 : vector<2x32xf32>
    %397 = vector.extract_strided_slice %393 {offsets = [0, 0], sizes = [2, 32], strides = [1, 1]} : vector<2x256xf32> to vector<2x32xf32>
    %398 = vector.extract_strided_slice %394 {offsets = [0, 64], sizes = [2, 32], strides = [1, 1]} : vector<2x256xf32> to vector<2x32xf32>
    %399 = arith.mulf %397, %398 : vector<2x32xf32>
    %400 = arith.addf %396, %399 : vector<2x32xf32>
    %401 = vector.extract_strided_slice %393 {offsets = [0, 160], sizes = [2, 32], strides = [1, 1]} : vector<2x256xf32> to vector<2x32xf32>
    %402 = arith.mulf %401, %373 : vector<2x32xf32>
    %403 = vector.extract_strided_slice %393 {offsets = [0, 128], sizes = [2, 32], strides = [1, 1]} : vector<2x256xf32> to vector<2x32xf32>
    %404 = vector.extract_strided_slice %394 {offsets = [0, 192], sizes = [2, 32], strides = [1, 1]} : vector<2x256xf32> to vector<2x32xf32>
    %405 = arith.mulf %403, %404 : vector<2x32xf32>
    %406 = arith.addf %402, %405 : vector<2x32xf32>
    %407 = vector.extract_strided_slice %393 {offsets = [0, 96], sizes = [2, 32], strides = [1, 1]} : vector<2x256xf32> to vector<2x32xf32>
    %408 = math.tanh %400 : vector<2x32xf32>
    %409 = arith.mulf %407, %408 : vector<2x32xf32>
    %410 = vector.extract_strided_slice %393 {offsets = [0, 224], sizes = [2, 32], strides = [1, 1]} : vector<2x256xf32> to vector<2x32xf32>
    %411 = math.tanh %406 : vector<2x32xf32>
    %412 = arith.mulf %410, %411 : vector<2x32xf32>
    %413 = tpu.concatenate %409, %412 in 1 : vector<2x32xf32>, vector<2x32xf32> -> vector<2x64xf32>
    %c6_82 = arith.constant 6 : index
    %c0_83 = arith.constant 0 : index
    %414 = vector.load %arg11[%c6_82, %c0_83] : memref<16x64xf32, #tpu.memory_space<vmem>>, vector<2x32xf32>
    tpu.vector_store %arg11[%c6_82, %c0_83], %409 {strides = array<i32>} : memref<16x64xf32, #tpu.memory_space<vmem>>, vector<2x32xf32>,
    %c8_84 = arith.constant 8 : index
    %c32_85 = arith.constant 32 : index
    %415 = vector.load %arg11[%c8_84, %c32_85] : memref<16x64xf32, #tpu.memory_space<vmem>>, vector<2x32xf32>
    tpu.vector_store %arg11[%c8_84, %c32_85], %412 {strides = array<i32>} : memref<16x64xf32, #tpu.memory_space<vmem>>, vector<2x32xf32>,
    %416 = arith.truncf %413 : vector<2x64xf32> to vector<2x64xbf16>
    %cst_86 = arith.constant dense<0.000000e+00> : vector<2x256xf32>
    %417 = tpu.matmul %416, %274, %cst_86 {dimension_numbers = #tpu.dot_dimension_numbers<[1], [0], [0], [1], [0, 0, 1, 1], [], []>} : vector<2x64xbf16>, vector<64x256xbf16>, vector<2x256xf32> -> vector<2x256xf32>
    %418 = vector.extract_strided_slice %280 {offsets = [8, 0], sizes = [2, 128], strides = [1, 1]} : vector<16x256xf32> to vector<2x128xf32>
    %419 = vector.extract_strided_slice %280 {offsets = [6, 128], sizes = [2, 128], strides = [1, 1]} : vector<16x256xf32> to vector<2x128xf32>
    %420 = tpu.concatenate %418, %419 in 1 : vector<2x128xf32>, vector<2x128xf32> -> vector<2x256xf32>
    %421 = arith.addf %420, %417 : vector<2x256xf32>
    %422 = arith.negf %421 : vector<2x256xf32>
    %423 = math.exp %422 : vector<2x256xf32>
    %cst_87 = arith.constant 1.000000e+00 : f32
    %424 = vector.broadcast %cst_87 : f32 to vector<2x256xf32>
    %425 = arith.addf %424, %423 : vector<2x256xf32>
    %426 = arith.divf %424, %425 : vector<2x256xf32>
    %427 = math.tanh %421 : vector<2x256xf32>
    %428 = vector.extract_strided_slice %426 {offsets = [0, 32], sizes = [2, 32], strides = [1, 1]} : vector<2x256xf32> to vector<2x32xf32>
    %429 = arith.mulf %428, %400 : vector<2x32xf32>
    %430 = vector.extract_strided_slice %426 {offsets = [0, 0], sizes = [2, 32], strides = [1, 1]} : vector<2x256xf32> to vector<2x32xf32>
    %431 = vector.extract_strided_slice %427 {offsets = [0, 64], sizes = [2, 32], strides = [1, 1]} : vector<2x256xf32> to vector<2x32xf32>
    %432 = arith.mulf %430, %431 : vector<2x32xf32>
    %433 = arith.addf %429, %432 : vector<2x32xf32>
    %434 = vector.extract_strided_slice %426 {offsets = [0, 160], sizes = [2, 32], strides = [1, 1]} : vector<2x256xf32> to vector<2x32xf32>
    %435 = arith.mulf %434, %406 : vector<2x32xf32>
    %436 = vector.extract_strided_slice %426 {offsets = [0, 128], sizes = [2, 32], strides = [1, 1]} : vector<2x256xf32> to vector<2x32xf32>
    %437 = vector.extract_strided_slice %427 {offsets = [0, 192], sizes = [2, 32], strides = [1, 1]} : vector<2x256xf32> to vector<2x32xf32>
    %438 = arith.mulf %436, %437 : vector<2x32xf32>
    %439 = arith.addf %435, %438 : vector<2x32xf32>
    %440 = vector.extract_strided_slice %426 {offsets = [0, 96], sizes = [2, 32], strides = [1, 1]} : vector<2x256xf32> to vector<2x32xf32>
    %441 = math.tanh %433 : vector<2x32xf32>
    %442 = arith.mulf %440, %441 : vector<2x32xf32>
    %443 = vector.extract_strided_slice %426 {offsets = [0, 224], sizes = [2, 32], strides = [1, 1]} : vector<2x256xf32> to vector<2x32xf32>
    %444 = math.tanh %439 : vector<2x32xf32>
    %445 = arith.mulf %443, %444 : vector<2x32xf32>
    %446 = tpu.concatenate %442, %445 in 1 : vector<2x32xf32>, vector<2x32xf32> -> vector<2x64xf32>
    %c8_88 = arith.constant 8 : index
    %c0_89 = arith.constant 0 : index
    %447 = vector.load %arg11[%c8_88, %c0_89] : memref<16x64xf32, #tpu.memory_space<vmem>>, vector<2x32xf32>
    tpu.vector_store %arg11[%c8_88, %c0_89], %442 {strides = array<i32>} : memref<16x64xf32, #tpu.memory_space<vmem>>, vector<2x32xf32>,
    %c6_90 = arith.constant 6 : index
    %c32_91 = arith.constant 32 : index
    %448 = vector.load %arg11[%c6_90, %c32_91] : memref<16x64xf32, #tpu.memory_space<vmem>>, vector<2x32xf32>
    tpu.vector_store %arg11[%c6_90, %c32_91], %445 {strides = array<i32>} : memref<16x64xf32, #tpu.memory_space<vmem>>, vector<2x32xf32>,
    %449 = arith.truncf %446 : vector<2x64xf32> to vector<2x64xbf16>
    %cst_92 = arith.constant dense<0.000000e+00> : vector<2x256xf32>
    %450 = tpu.matmul %449, %274, %cst_92 {dimension_numbers = #tpu.dot_dimension_numbers<[1], [0], [0], [1], [0, 0, 1, 1], [], []>} : vector<2x64xbf16>, vector<64x256xbf16>, vector<2x256xf32> -> vector<2x256xf32>
    %451 = vector.extract_strided_slice %280 {offsets = [10, 0], sizes = [2, 128], strides = [1, 1]} : vector<16x256xf32> to vector<2x128xf32>
    %452 = vector.extract_strided_slice %280 {offsets = [4, 128], sizes = [2, 128], strides = [1, 1]} : vector<16x256xf32> to vector<2x128xf32>
    %453 = tpu.concatenate %451, %452 in 1 : vector<2x128xf32>, vector<2x128xf32> -> vector<2x256xf32>
    %454 = arith.addf %453, %450 : vector<2x256xf32>
    %455 = arith.negf %454 : vector<2x256xf32>
    %456 = math.exp %455 : vector<2x256xf32>
    %cst_93 = arith.constant 1.000000e+00 : f32
    %457 = vector.broadcast %cst_93 : f32 to vector<2x256xf32>
    %458 = arith.addf %457, %456 : vector<2x256xf32>
    %459 = arith.divf %457, %458 : vector<2x256xf32>
    %460 = math.tanh %454 : vector<2x256xf32>
    %461 = vector.extract_strided_slice %459 {offsets = [0, 32], sizes = [2, 32], strides = [1, 1]} : vector<2x256xf32> to vector<2x32xf32>
    %462 = arith.mulf %461, %433 : vector<2x32xf32>
    %463 = vector.extract_strided_slice %459 {offsets = [0, 0], sizes = [2, 32], strides = [1, 1]} : vector<2x256xf32> to vector<2x32xf32>
    %464 = vector.extract_strided_slice %460 {offsets = [0, 64], sizes = [2, 32], strides = [1, 1]} : vector<2x256xf32> to vector<2x32xf32>
    %465 = arith.mulf %463, %464 : vector<2x32xf32>
    %466 = arith.addf %462, %465 : vector<2x32xf32>
    %467 = vector.extract_strided_slice %459 {offsets = [0, 160], sizes = [2, 32], strides = [1, 1]} : vector<2x256xf32> to vector<2x32xf32>
    %468 = arith.mulf %467, %439 : vector<2x32xf32>
    %469 = vector.extract_strided_slice %459 {offsets = [0, 128], sizes = [2, 32], strides = [1, 1]} : vector<2x256xf32> to vector<2x32xf32>
    %470 = vector.extract_strided_slice %460 {offsets = [0, 192], sizes = [2, 32], strides = [1, 1]} : vector<2x256xf32> to vector<2x32xf32>
    %471 = arith.mulf %469, %470 : vector<2x32xf32>
    %472 = arith.addf %468, %471 : vector<2x32xf32>
    %473 = vector.extract_strided_slice %459 {offsets = [0, 96], sizes = [2, 32], strides = [1, 1]} : vector<2x256xf32> to vector<2x32xf32>
    %474 = math.tanh %466 : vector<2x32xf32>
    %475 = arith.mulf %473, %474 : vector<2x32xf32>
    %476 = vector.extract_strided_slice %459 {offsets = [0, 224], sizes = [2, 32], strides = [1, 1]} : vector<2x256xf32> to vector<2x32xf32>
    %477 = math.tanh %472 : vector<2x32xf32>
    %478 = arith.mulf %476, %477 : vector<2x32xf32>
    %479 = tpu.concatenate %475, %478 in 1 : vector<2x32xf32>, vector<2x32xf32> -> vector<2x64xf32>
    %c10_94 = arith.constant 10 : index
    %c0_95 = arith.constant 0 : index
    %480 = vector.load %arg11[%c10_94, %c0_95] : memref<16x64xf32, #tpu.memory_space<vmem>>, vector<2x32xf32>
    tpu.vector_store %arg11[%c10_94, %c0_95], %475 {strides = array<i32>} : memref<16x64xf32, #tpu.memory_space<vmem>>, vector<2x32xf32>,
    %c4_96 = arith.constant 4 : index
    %c32_97 = arith.constant 32 : index
    %481 = vector.load %arg11[%c4_96, %c32_97] : memref<16x64xf32, #tpu.memory_space<vmem>>, vector<2x32xf32>
    tpu.vector_store %arg11[%c4_96, %c32_97], %478 {strides = array<i32>} : memref<16x64xf32, #tpu.memory_space<vmem>>, vector<2x32xf32>,
    %482 = arith.truncf %479 : vector<2x64xf32> to vector<2x64xbf16>
    %cst_98 = arith.constant dense<0.000000e+00> : vector<2x256xf32>
    %483 = tpu.matmul %482, %274, %cst_98 {dimension_numbers = #tpu.dot_dimension_numbers<[1], [0], [0], [1], [0, 0, 1, 1], [], []>} : vector<2x64xbf16>, vector<64x256xbf16>, vector<2x256xf32> -> vector<2x256xf32>
    %484 = vector.extract_strided_slice %280 {offsets = [12, 0], sizes = [2, 128], strides = [1, 1]} : vector<16x256xf32> to vector<2x128xf32>
    %485 = vector.extract_strided_slice %280 {offsets = [2, 128], sizes = [2, 128], strides = [1, 1]} : vector<16x256xf32> to vector<2x128xf32>
    %486 = tpu.concatenate %484, %485 in 1 : vector<2x128xf32>, vector<2x128xf32> -> vector<2x256xf32>
    %487 = arith.addf %486, %483 : vector<2x256xf32>
    %488 = arith.negf %487 : vector<2x256xf32>
    %489 = math.exp %488 : vector<2x256xf32>
    %cst_99 = arith.constant 1.000000e+00 : f32
    %490 = vector.broadcast %cst_99 : f32 to vector<2x256xf32>
    %491 = arith.addf %490, %489 : vector<2x256xf32>
    %492 = arith.divf %490, %491 : vector<2x256xf32>
    %493 = math.tanh %487 : vector<2x256xf32>
    %494 = vector.extract_strided_slice %492 {offsets = [0, 32], sizes = [2, 32], strides = [1, 1]} : vector<2x256xf32> to vector<2x32xf32>
    %495 = arith.mulf %494, %466 : vector<2x32xf32>
    %496 = vector.extract_strided_slice %492 {offsets = [0, 0], sizes = [2, 32], strides = [1, 1]} : vector<2x256xf32> to vector<2x32xf32>
    %497 = vector.extract_strided_slice %493 {offsets = [0, 64], sizes = [2, 32], strides = [1, 1]} : vector<2x256xf32> to vector<2x32xf32>
    %498 = arith.mulf %496, %497 : vector<2x32xf32>
    %499 = arith.addf %495, %498 : vector<2x32xf32>
    %500 = vector.extract_strided_slice %492 {offsets = [0, 160], sizes = [2, 32], strides = [1, 1]} : vector<2x256xf32> to vector<2x32xf32>
    %501 = arith.mulf %500, %472 : vector<2x32xf32>
    %502 = vector.extract_strided_slice %492 {offsets = [0, 128], sizes = [2, 32], strides = [1, 1]} : vector<2x256xf32> to vector<2x32xf32>
    %503 = vector.extract_strided_slice %493 {offsets = [0, 192], sizes = [2, 32], strides = [1, 1]} : vector<2x256xf32> to vector<2x32xf32>
    %504 = arith.mulf %502, %503 : vector<2x32xf32>
    %505 = arith.addf %501, %504 : vector<2x32xf32>
    %506 = vector.extract_strided_slice %492 {offsets = [0, 96], sizes = [2, 32], strides = [1, 1]} : vector<2x256xf32> to vector<2x32xf32>
    %507 = math.tanh %499 : vector<2x32xf32>
    %508 = arith.mulf %506, %507 : vector<2x32xf32>
    %509 = vector.extract_strided_slice %492 {offsets = [0, 224], sizes = [2, 32], strides = [1, 1]} : vector<2x256xf32> to vector<2x32xf32>
    %510 = math.tanh %505 : vector<2x32xf32>
    %511 = arith.mulf %509, %510 : vector<2x32xf32>
    %512 = tpu.concatenate %508, %511 in 1 : vector<2x32xf32>, vector<2x32xf32> -> vector<2x64xf32>
    %c12_100 = arith.constant 12 : index
    %c0_101 = arith.constant 0 : index
    %513 = vector.load %arg11[%c12_100, %c0_101] : memref<16x64xf32, #tpu.memory_space<vmem>>, vector<2x32xf32>
    tpu.vector_store %arg11[%c12_100, %c0_101], %508 {strides = array<i32>} : memref<16x64xf32, #tpu.memory_space<vmem>>, vector<2x32xf32>,
    %c2_102 = arith.constant 2 : index
    %c32_103 = arith.constant 32 : index
    %514 = vector.load %arg11[%c2_102, %c32_103] : memref<16x64xf32, #tpu.memory_space<vmem>>, vector<2x32xf32>
    tpu.vector_store %arg11[%c2_102, %c32_103], %511 {strides = array<i32>} : memref<16x64xf32, #tpu.memory_space<vmem>>, vector<2x32xf32>,
    %515 = arith.truncf %512 : vector<2x64xf32> to vector<2x64xbf16>
    %cst_104 = arith.constant dense<0.000000e+00> : vector<2x256xf32>
    %516 = tpu.matmul %515, %274, %cst_104 {dimension_numbers = #tpu.dot_dimension_numbers<[1], [0], [0], [1], [0, 0, 1, 1], [], []>} : vector<2x64xbf16>, vector<64x256xbf16>, vector<2x256xf32> -> vector<2x256xf32>
    %517 = vector.extract_strided_slice %280 {offsets = [14, 0], sizes = [2, 128], strides = [1, 1]} : vector<16x256xf32> to vector<2x128xf32>
    %518 = vector.extract_strided_slice %280 {offsets = [0, 128], sizes = [2, 128], strides = [1, 1]} : vector<16x256xf32> to vector<2x128xf32>
    %519 = tpu.concatenate %517, %518 in 1 : vector<2x128xf32>, vector<2x128xf32> -> vector<2x256xf32>
    %520 = arith.addf %519, %516 : vector<2x256xf32>
    %521 = arith.negf %520 : vector<2x256xf32>
    %522 = math.exp %521 : vector<2x256xf32>
    %cst_105 = arith.constant 1.000000e+00 : f32
    %523 = vector.broadcast %cst_105 : f32 to vector<2x256xf32>
    %524 = arith.addf %523, %522 : vector<2x256xf32>
    %525 = arith.divf %523, %524 : vector<2x256xf32>
    %526 = math.tanh %520 : vector<2x256xf32>
    %527 = vector.extract_strided_slice %525 {offsets = [0, 32], sizes = [2, 32], strides = [1, 1]} : vector<2x256xf32> to vector<2x32xf32>
    %528 = arith.mulf %527, %499 : vector<2x32xf32>
    %529 = vector.extract_strided_slice %525 {offsets = [0, 0], sizes = [2, 32], strides = [1, 1]} : vector<2x256xf32> to vector<2x32xf32>
    %530 = vector.extract_strided_slice %526 {offsets = [0, 64], sizes = [2, 32], strides = [1, 1]} : vector<2x256xf32> to vector<2x32xf32>
    %531 = arith.mulf %529, %530 : vector<2x32xf32>
    %532 = arith.addf %528, %531 : vector<2x32xf32>
    %533 = vector.extract_strided_slice %525 {offsets = [0, 160], sizes = [2, 32], strides = [1, 1]} : vector<2x256xf32> to vector<2x32xf32>
    %534 = arith.mulf %533, %505 : vector<2x32xf32>
    %535 = vector.extract_strided_slice %525 {offsets = [0, 128], sizes = [2, 32], strides = [1, 1]} : vector<2x256xf32> to vector<2x32xf32>
    %536 = vector.extract_strided_slice %526 {offsets = [0, 192], sizes = [2, 32], strides = [1, 1]} : vector<2x256xf32> to vector<2x32xf32>
    %537 = arith.mulf %535, %536 : vector<2x32xf32>
    %538 = arith.addf %534, %537 : vector<2x32xf32>
    %539 = vector.extract_strided_slice %525 {offsets = [0, 96], sizes = [2, 32], strides = [1, 1]} : vector<2x256xf32> to vector<2x32xf32>
    %540 = math.tanh %532 : vector<2x32xf32>
    %541 = arith.mulf %539, %540 : vector<2x32xf32>
    %542 = vector.extract_strided_slice %525 {offsets = [0, 224], sizes = [2, 32], strides = [1, 1]} : vector<2x256xf32> to vector<2x32xf32>
    %543 = math.tanh %538 : vector<2x32xf32>
    %544 = arith.mulf %542, %543 : vector<2x32xf32>
    %c14_106 = arith.constant 14 : index
    %c0_107 = arith.constant 0 : index
    %545 = vector.load %arg11[%c14_106, %c0_107] : memref<16x64xf32, #tpu.memory_space<vmem>>, vector<2x32xf32>
    tpu.vector_store %arg11[%c14_106, %c0_107], %541 {strides = array<i32>} : memref<16x64xf32, #tpu.memory_space<vmem>>, vector<2x32xf32>,
    %c0_108 = arith.constant 0 : index
    %c32_109 = arith.constant 32 : index
    %546 = vector.load %arg11[%c0_108, %c32_109] : memref<16x64xf32, #tpu.memory_space<vmem>>, vector<2x32xf32>
    tpu.vector_store %arg11[%c0_108, %c32_109], %544 {strides = array<i32>} : memref<16x64xf32, #tpu.memory_space<vmem>>, vector<2x32xf32>,
    %c0_110 = arith.constant 0 : index
    %c0_111 = arith.constant 0 : index
    %547 = vector.load %arg7[%c0_110, %c0_111] : memref<64x8xbf16, #tpu.memory_space<vmem>>, vector<64x8xbf16>
    %c0_112 = arith.constant 0 : index
    %c0_113 = arith.constant 0 : index
    %548 = vector.load %arg8[%c0_112, %c0_113] : memref<1x8xf32, #tpu.memory_space<vmem>>, vector<1x8xf32>
    %c0_114 = arith.constant 0 : index
    %c0_115 = arith.constant 0 : index
    %549 = vector.load %arg11[%c0_114, %c0_115] : memref<16x64xf32, #tpu.memory_space<vmem>>, vector<16x64xf32>
    %550 = arith.truncf %549 : vector<16x64xf32> to vector<16x64xbf16>
    %cst_116 = arith.constant dense<0.000000e+00> : vector<16x8xf32>
    %551 = tpu.matmul %550, %547, %cst_116 {dimension_numbers = #tpu.dot_dimension_numbers<[1], [0], [0], [1], [0, 0, 1, 1], [], []>} : vector<16x64xbf16>, vector<64x8xbf16>, vector<16x8xf32> -> vector<16x8xf32>
    %552 = vector.broadcast %548 : vector<1x8xf32> to vector<16x8xf32>
    %553 = arith.addf %551, %552 : vector<16x8xf32>
    %c0_117 = arith.constant 0 : index
    %c0_118 = arith.constant 0 : index
    %554 = vector.load %arg9[%c0_117, %c0_118] : memref<16x8xf32, #tpu.memory_space<vmem>>, vector<16x8xf32>
    tpu.vector_store %arg9[%c0_117, %c0_118], %553 {strides = array<i32>} : memref<16x8xf32, #tpu.memory_space<vmem>>, vector<16x8xf32>,
    return
  }
}

</mosaic_0001>

<bundles_post_ra>
// kernel: bilstm_forward.1
= control target key start
LH: loop header
LB: loop body
LE: loop exit
PB: predicated region body
PF: predicated region fallthrough
CT: control target
= control target key end

     0   :  { %14 = vsyncpa [#allocation5], 0  ;;  %s3702_s0 = inlined_call_operand.vmem [shape: bf16[16,16], index: 0, kind: input, shape index: {}]   ;;  %s3703_s1 = inlined_call_operand.vmem [shape: bf16[16,256], index: 1, kind: input, shape index: {}]   ;;  %s3704_s2 = inlined_call_operand.hbm [shape: bf16[64,256], index: 2, kind: input, shape index: {}]   ;;  %s3705_s3 = inlined_call_operand.vmem [shape: f32[1,256], index: 3, kind: input, shape index: {}]   ;;  %s3706_s4 = inlined_call_operand.hbm [shape: bf16[64,256], index: 4, kind: input, shape index: {}]   ;;  %s3707_s5 = inlined_call_operand.hbm [shape: bf16[64,256], index: 5, kind: input, shape index: {}]   ;;  %s3708_s6 = inlined_call_operand.vmem [shape: f32[1,256], index: 6, kind: input, shape index: {}]   ;;  %s3709_s7 = inlined_call_operand.vmem [shape: bf16[64,8], index: 7, kind: input, shape index: {}]   ;;  %s3710_s8 = inlined_call_operand.vmem [shape: f32[1,8], index: 8, kind: input, shape index: {}]   ;;  %s3711_s9 = inlined_call_operand.vmem [shape: f32[16,8], index: 9, kind: output, shape index: {}]  }
   0x1   :  { %15 = vsyncpa [#allocation7], 0  ;;  %s39_s11 = sshll.u32 %s3706_s4, 4  ;;  %s3018_s12 = smov [#allocation6]   ;;  %s40_s11 = int_to_ptr.hbm [resolvable:$true] %s39_s11 }
   0x2   :  { %s41_s13 = sshll.u32 %s3018_s12, 4  ;;  %s24_s16 = sshll.u32 %s3704_s2, 4  ;;  %s42_s13 = int_to_ptr.vmem [resolvable:$true] %s41_s13  ;;  %s25_s16 = int_to_ptr.hbm [resolvable:$true] %s24_s16 }
   0x3   :  { %s3019_s17 = smov 128   ;;  %s3020_s18 = smov 8  }
   0x4   :  { %47 = dma.hbm_to_vmem [thread:$0]  %s40_s11, 1024, %s42_s13, [#allocation7], %s3019_s17, %s3019_s17, %s3020_s18  }
   0x5   :  { %s3021_s19 = smov [#allocation4]   ;;  %s52_s23 = sshll.u32 %s3707_s5, 4  ;;  %s53_s23 = int_to_ptr.hbm [resolvable:$true] %s52_s23 }
   0x6   :  { %s26_s20 = sshll.u32 %s3021_s19, 4  ;;  %s3022_s4 = smov [#allocation8]   ;;  %s27_s20 = int_to_ptr.vmem [resolvable:$true] %s26_s20 }
   0x7   :  { %32 = dma.hbm_to_vmem [thread:$0]  %s25_s16, 1024, %s27_s20, [#allocation5], %s3019_s17, %s3019_s17, %s3020_s18  }
   0x8   :  { %s54_s24 = sshll.u32 %s3022_s4, 4  ;;  %s55_s24 = int_to_ptr.vmem [resolvable:$true] %s54_s24 }
   0x9   :  { %60 = dma.hbm_to_vmem [thread:$0]  %s53_s23, 1024, %s55_s24, [#allocation7], %s3019_s17, %s3019_s17, %s3020_s18  }
   0xa   :  { %3014 = dma.done.wait [#allocation5], 1024  }
   0xb   :  { %3015 = vsyncadd [#allocation5], 4294966272 }
   0xc   :  { %3016 = dma.done.wait [#allocation7], 2048  }
   0xd   :  { %3017 = vsyncadd [#allocation7], 4294965248  ;;  %v2497_v0 = vld [vmem:[#allocation4 + $0x30] sm:$0xf]  ;;  %v2655_v1 = vld [vmem:[#allocation4 + $0x34] sm:$0xf0] }
   0xe   :  { %v2654_v2 = vld [vmem:[#allocation4 + $0x34] sm:$0xf]  ;;  %v3085_v3 = vor.u32 %v2655_v1, %v2497_v0  ;;  %v2499_v4 = vld [vmem:[#allocation4 + $0x38] sm:$0xf0]  ;;  %v2489_v5 = vld [vmem:[#allocation4 + $0x20] sm:$0xf] }
   0xf   :  { %v2653_v6 = vld [vmem:[#allocation4 + $0x24] sm:$0xf0]  ;;  %v3087_v7 = vor.u32 %v2654_v2, %v2499_v4  ;;  %v2652_v8 = vld [vmem:[#allocation4 + $0x24] sm:$0xf]  ;;  %v2491_v9 = vld [vmem:[#allocation4 + $0x28] sm:$0xf0] }
  0x10   :  { %v2646_v10 = vld [vmem:[%s3703_s1 + $0x4] sm:$0xf]  ;;  %193 = vmatpush.bf16.msra.mxu2 %v3085_v3  ;;  %v3093_v11 = vor.u32 %v2653_v6, %v2489_v5  ;;  %v2465_v12 = vld [vmem:[%s3703_s1 + $0x8] sm:$0xf0]  ;;  %v2463_v13 = vld [vmem:[%s3703_s1] sm:$0xf]  ;;  %v3105_v15 = vor.u32 %v2652_v8, %v2491_v9 }
  0x11   :  { %v2647_v14 = vld [vmem:[%s3703_s1 + $0x4] sm:$0xf0]  ;;  %206 = vmatpush.bf16.msra.mxu3 %v3087_v7  ;;  %v2468_v16 = vor.u32 %v2646_v10, %v2465_v12  ;;  %v2481_v18 = vld [vmem:[#allocation4 + $0x10] sm:$0xf]  ;;  %v2651_v19 = vld [vmem:[#allocation4 + $0x14] sm:$0xf0] }
  0x12   :  { %v2464_v17 = vor.u32 %v2647_v14, %v2463_v13  ;;  %v2650_v20 = vld [vmem:[#allocation4 + $0x14] sm:$0xf]  ;;  %v2483_v21 = vld [vmem:[#allocation4 + $0x18] sm:$0xf0]  ;;  %v2656_v22 = vld [vmem:[%s3702_s0] sm:$0xff]  ;;  %vm113_vm0 = vcmask 130048   ;;  %v3111_v23 = vor.u32 %v2651_v19, %v2481_v18 }
  0x13   :  { %138 = vmatpush.bf16.msra.mxu1 %v2468_v16  ;;  %v3115_v24 = vor.u32 %v2650_v20, %v2483_v21  ;;  %v2473_v25 = vld [vmem:[#allocation4] sm:$0xf]  ;;  %v2649_v26 = vld [vmem:[#allocation4 + $0x4] sm:$0xf0]  ;;  %v2648_v27 = vld [vmem:[#allocation4 + $0x4] sm:$0xf] }
  0x14   :  { %124 = vmatpush.bf16.msra.mxu0 %v2464_v17  ;;  %194 = vmatpush.bf16.msra.mxu2 %v3093_v11  ;;  %v2475_v28 = vld [vmem:[#allocation4 + $0x8] sm:$0xf0]  ;;  %v3119_v29 = vor.u32 %v2649_v26, %v2473_v25  ;;  %v3023_v31 = vmov 0   ;;  %v3161_v32 = vld [vmem:[%s3705_s3] sm:$0x3]  ;;  %s3024_s3 = smov 64  }
  0x15   :  { %207 = vmatpush.bf16.msra.mxu3 %v3105_v15  ;;  %v3123_v30 = vor.u32 %v2648_v27, %v2475_v28  ;;  %v95_v33 = vperm.slane %v3161_v32, 1  ;;  %v94_v36 = vperm.slane %v3161_v32, 0  ;;  %s3025_s12 = smov 32   ;;  %vm304_vm9 = vcmask 254976  }
  0x16   :  { %2470 = vmatmul.msk.bf16.vlgmr.msra.gmra.mxu1 %vm113_vm0, %v2656_v22  ;;  %vm302_vm10 = vcmask 261120   ;;  %vm306_vm11 = vcmask 517376   ;;  %vm185_vm12 = vcmask 523264  }
  0x17   :  { %329 = vmatpush.bf16.msrb.mxu1 %v3087_v7  ;;  %2469 = vmatmul.msk.bf16.vlgmr.msra.gmra.mxu0 %vm113_vm0, %v2656_v22 }
  0x18   :  { %316 = vmatpush.bf16.msrb.mxu0 %v3085_v3  ;;  %195 = vmatpush.bf16.msra.mxu2 %v3111_v23 }
  0x19   :  { %208 = vmatpush.bf16.msra.mxu3 %v3115_v24 }
  0x1b   :  { %330 = vmatpush.bf16.msrb.mxu1 %v3105_v15 }
  0x1c   :  { %317 = vmatpush.bf16.msrb.mxu0 %v3093_v11  ;;  %196 = vmatpush.bf16.msra.mxu2 %v3119_v29 }
  0x1d   :  { %209 = vmatpush.bf16.msra.mxu3 %v3123_v30 }
  0x1f   :  { %331 = vmatpush.bf16.msrb.mxu1 %v3115_v24  ;;  %197 = vmatmul.bf16.vlgmr.msra.gmra.mxu2 %v3023_v31 }
  0x20   :  { %318 = vmatpush.bf16.msrb.mxu0 %v3111_v23  ;;  %451 = vmatpush.bf16.msrb.mxu2 %v3085_v3 }
  0x21   :  { %464 = vmatpush.bf16.msrb.mxu3 %v3087_v7 }
  0x22   :  { %210 = vmatmul.bf16.vlgmr.msra.gmra.mxu3 %v3023_v31 }
  0x23   :  { %332 = vmatpush.bf16.msrb.mxu1 %v3123_v30 }
  0x24   :  { %319 = vmatpush.bf16.msrb.mxu0 %v3119_v29  ;;  %452 = vmatpush.bf16.msrb.mxu2 %v3093_v11 }
  0x25   :  { %465 = vmatpush.bf16.msrb.mxu3 %v3105_v15 }
  0x27   :  { %597 = vmatpush.bf16.msra.mxu1 %v3087_v7 }
  0x28   :  { %584 = vmatpush.bf16.msra.mxu0 %v3085_v3  ;;  %453 = vmatpush.bf16.msrb.mxu2 %v3111_v23 }
  0x29   :  { %466 = vmatpush.bf16.msrb.mxu3 %v3115_v24 }
  0x2b   :  { %598 = vmatpush.bf16.msra.mxu1 %v3105_v15 }
  0x2c   :  { %585 = vmatpush.bf16.msra.mxu0 %v3093_v11  ;;  %454 = vmatpush.bf16.msrb.mxu2 %v3119_v29 }
  0x2d   :  { %467 = vmatpush.bf16.msrb.mxu3 %v3123_v30 }
  0x2f   :  { %599 = vmatpush.bf16.msra.mxu1 %v3115_v24 }
  0x30   :  { %586 = vmatpush.bf16.msra.mxu0 %v3111_v23  ;;  %717 = vmatpush.bf16.msra.mxu2 %v3085_v3 }
  0x31   :  { %730 = vmatpush.bf16.msra.mxu3 %v3087_v7 }
  0x33   :  { %600 = vmatpush.bf16.msra.mxu1 %v3123_v30 }
  0x34   :  { %587 = vmatpush.bf16.msra.mxu0 %v3119_v29  ;;  %718 = vmatpush.bf16.msra.mxu2 %v3093_v11 }
  0x35   :  { %731 = vmatpush.bf16.msra.mxu3 %v3105_v15 }
  0x38   :  { %719 = vmatpush.bf16.msra.mxu2 %v3111_v23 }
  0x39   :  { %732 = vmatpush.bf16.msra.mxu3 %v3115_v24 }
  0x3c   :  { %720 = vmatpush.bf16.msra.mxu2 %v3119_v29 }
  0x3d   :  { %733 = vmatpush.bf16.msra.mxu3 %v3123_v30 }
  0x93   :  { %v140_v34 = vpop.f32.mrf.mxu1 }
  0x94   :  { %v3164_v35 = vadd.f32 %v140_v34, %v95_v33  ;;  %v126_v37 = vpop.f32.mrf.mxu0 }
  0x95   :  { %v3169_v39 = vadd.f32 %v126_v37, %v94_v36 }
  0x9b   :  { %v142_v38 = vpop.f32.mrf.mxu1 }
  0x9c   :  { %v3171_v40 = vadd.f32 %v142_v38, %v95_v33 }
  0x9e   :  { %v216_v44 = vrot.slane %v3171_v40, 6 }
  0xa2   :  { %v198_v41 = vpop.f32.mrf.mxu2 }
  0xa3   :  { %v218_v42 = vadd.f32 %v198_v41, %v3169_v39 }
  0xa5   :  { %v211_v43 = vpop.f32.mrf.mxu3  ;;  %2686 = vtanh.f32 %v218_v42  ;;  %v2503_v50 = vmul.f32 -1.442695, %v218_v42 }
  0xa6   :  { %v219_v45 = vadd.f32 %v216_v44, %v211_v43 }
  0xa8   :  { %2688 = vtanh.f32 %v219_v45  ;;  %v2504_v51 = vmul.f32 -1.442695, %v219_v45 }
  0xa9   :  { %2690 = vpow2.f32 %v2503_v50  ;;  %v338_v50 = vrot.slane %v3171_v40, 2 }
  0xaa   :  { %v200_v46 = vpop.f32.mrf.mxu2  ;;  %2692 = vpow2.f32 %v2504_v51 }
  0xab   :  { %v2687_v47 = vpop.eup %2686 }
  0xac   :  { %262 = vrot.lane.b32.xlu0 %v2687_v47, %s3024_s3  ;;  %v3204_v47 = vpop.f32.mrf.mxu0 }
  0xad   :  { %v213_v48 = vpop.f32.mrf.mxu3 }
  0xae   :  { %v2689_v49 = vpop.eup %2688 }
  0xaf   :  { %v2691_v52 = vpop.eup %2690 }
  0xb0   :  { %v226_v53 = vadd.f32 1.0, %v2691_v52  ;;  %v2693_v54 = vpop.eup %2692 }
  0xb1   :  { %v227_v55 = vadd.f32 1.0, %v2693_v54 }
  0xb2   :  { %2694 = vrcp.f32 %v226_v53  ;;  %v239_v0 = vand.u32 2147483648, %v226_v53  ;;  %vm233_vm2 = vweird.f32 %v226_v53  ;;  %v237_v1 = vand.u32 2147483647, %v226_v53 }
  0xb3   :  { %2696 = vrcp.f32 %v227_v55  ;;  %v254_v12 = vand.u32 2147483648, %v227_v55  ;;  %vm248_vm6 = vweird.f32 %v227_v55  ;;  %v252_v13 = vand.u32 2147483647, %v227_v55 }
  0xb4   :  { %273 = vrot.lane.b32.xlu0 %v2689_v49, %s3024_s3  ;;  %v240_v5 = vor.u32 1.1754944e-38, %v239_v0  ;;  %vm238_vm4 = vcmp.eq.f32.partialorder %v237_v1, 8.507059e+37 }
  0xb5   :  { %v255_v16 = vor.u32 1.1754944e-38, %v254_v12  ;;  %vm253_vm8 = vcmp.eq.f32.partialorder %v252_v13, 8.507059e+37 }
  0xb8   :  { %v2695_v56 = vpop.eup %2694 }
  0xb9   :  { %v229_v57 = vmul.f32 %v2695_v56, %v226_v53  ;;  %v2697_v59 = vpop.eup %2696  ;;  %vm234_vm1 = vweird.f32 %v2695_v56 }
  0xba   :  { %v244_v61 = vmul.f32 %v2697_v59, %v227_v55  ;;  %vm235_vm3 = vmor %vm233_vm2, %vm234_vm1  ;;  %vm249_vm5 = vweird.f32 %v2697_v59 }
  0xbb   :  { %v230_v58 = vsub.f32 1.0, %v229_v57  ;;  %vm250_vm7 = vmor %vm248_vm6, %vm249_vm5  ;;  %vm437_vm5 = vcmask 257026   ;;  %vm3713_vm6 = vcmask 519426  }
  0xbc   :  { %v245_v63 = vsub.f32 1.0, %v244_v61 }
  0xbd   :  { %v231_v60 = vmul.f32 %v2695_v56, %v230_v58 }
  0xbe   :  { %v246_v4 = vmul.f32 %v2697_v59, %v245_v63 }
  0xbf   :  { %v232_v62 = vadd.f32 %v2695_v56, %v231_v60 }
  0xc0   :  { %v247_v10 = vadd.f32 %v2697_v59, %v246_v4 }
  0xc1   :  { %v236_v2 = vsel %vm235_vm3, %v2695_v56, %v232_v62 }
  0xc2   :  { %v241_v8 = vsel %vm238_vm4, %v240_v5, %v236_v2  ;;  %v251_v14 = vsel %vm250_vm7, %v2697_v59, %v247_v10 }
  0xc3   :  { %v256_v18 = vsel %vm253_vm8, %v255_v16, %v251_v14  ;;  %v260_v20 = vmul.f32 0.0, %v241_v8 }
  0xc4   :  { %v271_v25 = vmul.f32 0.0, %v256_v18 }
 0x11e   :  { %v263_v6 = vpop.permute.xlu0 %262 }
 0x11f   :  { %v265_v9 = vmul.f32 %v263_v6, %v241_v8 }
 0x121   :  { %267 = vrot.lane.b32.xlu1 %v265_v9, %s3025_s12 }
 0x126   :  { %v274_v17 = vpop.permute.xlu0 %273 }
 0x127   :  { %v276_v19 = vmul.f32 %v274_v17, %v256_v18 }
 0x129   :  { %278 = vrot.lane.b32.xlu1 %v276_v19, %s3025_s12 }
 0x193   :  { %v268_v21 = vpop.permute.xlu1 %267 }
 0x194   :  { %v3181_v22 = vadd.f32 %v268_v21, %v260_v20 }
 0x196   :  { %2698 = vtanh.f32 %v3181_v22 }
 0x19b   :  { %v279_v26 = vpop.permute.xlu1 %278 }
 0x19c   :  { %v2699_v27 = vpop.eup %2698  ;;  %v3184_v28 = vadd.f32 %v279_v26, %v271_v25 }
 0x19d   :  { %284 = vrot.lane.b32.xlu2 %v2699_v27, %s3024_s3 }
 0x19e   :  { %2700 = vtanh.f32 %v3184_v28 }
 0x1a4   :  { %v2701_v33 = vpop.eup %2700 }
 0x1a5   :  { %290 = vrot.lane.b32.xlu2 %v2701_v33, %s3024_s3 }
 0x1f7   :  { %v285_v34 = vpop.permute.xlu2 %284 }
 0x1f8   :  { %v287_v37 = vmul.f32 %v285_v34, %v241_v8 }
 0x1fa   :  { %295 = vrot.lane.b32.xlu0 %v287_v37, %s3025_s12 }
 0x1ff   :  { %v291_v38 = vpop.permute.xlu2 %290 }
 0x200   :  { %v293_v41 = vmul.f32 %v291_v38, %v256_v18 }
 0x202   :  { %299 = vrot.lane.b32.xlu1 %v293_v41, %s3024_s3  ;;  %v389_v41 = vrot.slane %v3181_v22, 6 }
 0x26c   :  { %v296_v42 = vpop.permute.xlu0 %295 }
 0x26d   :  { %305 = vst.msk [vmem:[#allocation2] sm:$0x3] %vm304_vm9, %v296_v42 }
 0x274   :  { %v300_v43 = vpop.permute.xlu1 %299 }
 0x275   :  { %v303_v45 = vsel %vm302_vm10, %v296_v42, %v300_v43  ;;  %307 = vst.msk [vmem:[#allocation2 + $0xe] sm:$0x3] %vm306_vm11, %v300_v43  ;;  %v403_v42 = vrot.slane %v3184_v28, 6 }
 0x276   :  { %v308_v46 = vpack.c.bf16 %v303_v45, %v303_v45 }
 0x278   :  { %2505 = vmatmul.msk.bf16.vlgmr.msrb.gmra.mxu0 %vm185_vm12, %v308_v46  ;;  %2506 = vmatmul.msk.bf16.vlgmr.msrb.gmra.mxu1 %vm185_vm12, %v308_v46 }
 0x279   :  { %843 = vmatpush.bf16.msrb.mxu0 %v3085_v3  ;;  %856 = vmatpush.bf16.msrb.mxu1 %v3087_v7 }
 0x27d   :  { %844 = vmatpush.bf16.msrb.mxu0 %v3093_v11  ;;  %857 = vmatpush.bf16.msrb.mxu1 %v3105_v15 }
 0x281   :  { %845 = vmatpush.bf16.msrb.mxu0 %v3111_v23  ;;  %858 = vmatpush.bf16.msrb.mxu1 %v3115_v24 }
 0x285   :  { %846 = vmatpush.bf16.msrb.mxu0 %v3119_v29  ;;  %859 = vmatpush.bf16.msrb.mxu1 %v3123_v30 }
 0x2f5   :  { %v321_v48 = vpop.f32.mrf.mxu0  ;;  %v334_v49 = vpop.f32.mrf.mxu1 }
 0x2f6   :  { %v342_v51 = vrot.slane %v321_v48, 6  ;;  %v343_v52 = vrot.slane %v334_v49, 6 }
 0x2f8   :  { %v346_v53 = vadd.f32 %v342_v51, %v3169_v39  ;;  %v347_v54 = vadd.f32 %v343_v52, %v338_v50 }
 0x2fa   :  { %2702 = vtanh.f32 %v346_v53  ;;  %v2507_v59 = vmul.f32 -1.442695, %v346_v53  ;;  %v2508_v63 = vmul.f32 -1.442695, %v347_v54 }
 0x2fb   :  { %2704 = vtanh.f32 %v347_v54 }
 0x2fc   :  { %2706 = vpow2.f32 %v2507_v59 }
 0x2fd   :  { %v323_v55 = vpop.f32.mrf.mxu0  ;;  %v336_v56 = vpop.f32.mrf.mxu1 }
 0x300   :  { %v2703_v57 = vpop.eup %2702 }
 0x301   :  { %v2705_v58 = vpop.eup %2704  ;;  %393 = vrot.lane.b32.xlu2 %v2703_v57, %s3024_s3 }
 0x302   :  { %407 = vrot.lane.b32.xlu0 %v2705_v58, %s3024_s3  ;;  %v2707_v60 = vpop.eup %2706 }
 0x303   :  { %v354_v61 = vadd.f32 1.0, %v2707_v60 }
 0x305   :  { %2708 = vrcp.f32 %v354_v61  ;;  %v367_v8 = vand.u32 2147483648, %v354_v61  ;;  %vm361_vm14 = vweird.f32 %v354_v61  ;;  %v365_v9 = vand.u32 2147483647, %v354_v61 }
 0x306   :  { %2710 = vpow2.f32 %v2508_v63 }
 0x307   :  { %v368_v12 = vor.u32 1.1754944e-38, %v367_v8  ;;  %vm366_vm0 = vcmp.eq.f32.partialorder %v365_v9, 8.507059e+37 }
 0x30b   :  { %v2709_v62 = vpop.eup %2708 }
 0x30c   :  { %v357_v0 = vmul.f32 %v2709_v62, %v354_v61  ;;  %v2711_v4 = vpop.eup %2710  ;;  %vm362_vm13 = vweird.f32 %v2709_v62 }
 0x30d   :  { %v355_v5 = vadd.f32 1.0, %v2711_v4  ;;  %vm363_vm15 = vmor %vm361_vm14, %vm362_vm13 }
 0x30e   :  { %v358_v1 = vsub.f32 1.0, %v357_v0 }
 0x30f   :  { %2712 = vrcp.f32 %v355_v5  ;;  %v382_v25 = vand.u32 2147483648, %v355_v5  ;;  %vm376_vm2 = vweird.f32 %v355_v5  ;;  %v380_v26 = vand.u32 2147483647, %v355_v5 }
 0x310   :  { %v359_v2 = vmul.f32 %v2709_v62, %v358_v1 }
 0x311   :  { %v383_v33 = vor.u32 1.1754944e-38, %v382_v25  ;;  %vm381_vm4 = vcmp.eq.f32.partialorder %v380_v26, 8.507059e+37 }
 0x312   :  { %v360_v6 = vadd.f32 %v2709_v62, %v359_v2 }
 0x314   :  { %v364_v10 = vsel %vm363_vm15, %v2709_v62, %v360_v6 }
 0x315   :  { %v369_v14 = vsel %vm366_vm0, %v368_v12, %v364_v10  ;;  %v2713_v17 = vpop.eup %2712 }
 0x316   :  { %v372_v18 = vmul.f32 %v2713_v17, %v355_v5  ;;  %vm377_vm1 = vweird.f32 %v2713_v17  ;;  %v391_v43 = vmul.f32 %v389_v41, %v369_v14 }
 0x317   :  { %vm378_vm3 = vmor %vm376_vm2, %vm377_vm1 }
 0x318   :  { %v373_v19 = vsub.f32 1.0, %v372_v18 }
 0x31a   :  { %v374_v20 = vmul.f32 %v2713_v17, %v373_v19 }
 0x31c   :  { %v375_v21 = vadd.f32 %v2713_v17, %v374_v20 }
 0x31e   :  { %v379_v27 = vsel %vm378_vm3, %v2713_v17, %v375_v21  ;;  %vm572_vm3 = vcmask 521476  }
 0x31f   :  { %v384_v37 = vsel %vm381_vm4, %v383_v33, %v379_v27  ;;  %vm570_vm4 = vcmask 259076  }
 0x320   :  { %v405_v45 = vmul.f32 %v403_v42, %v384_v37 }
 0x35b   :  { %v394_v13 = vpop.permute.xlu2 %393 }
 0x35c   :  { %v396_v16 = vmul.f32 %v394_v13, %v369_v14 }
 0x35e   :  { %398 = vrot.lane.b32.xlu1 %v396_v16, %s3025_s12 }
 0x374   :  { %v408_v34 = vpop.permute.xlu0 %407 }
 0x375   :  { %v410_v38 = vmul.f32 %v408_v34, %v384_v37 }
 0x377   :  { %412 = vrot.lane.b32.xlu2 %v410_v38, %s3025_s12 }
 0x3d0   :  { %v399_v46 = vpop.permute.xlu1 %398 }
 0x3d1   :  { %v413_v48 = vpop.permute.xlu2 %412  ;;  %v3216_v49 = vadd.f32 %v399_v46, %v391_v43 }
 0x3d2   :  { %v3218_v51 = vadd.f32 %v413_v48, %v405_v45 }
 0x3d3   :  { %2714 = vtanh.f32 %v3216_v49 }
 0x3d4   :  { %2716 = vtanh.f32 %v3218_v51 }
 0x3d9   :  { %v2715_v52 = vpop.eup %2714 }
 0x3da   :  { %v2717_v53 = vpop.eup %2716  ;;  %418 = vrot.lane.b32.xlu0 %v2715_v52, %s3024_s3 }
 0x3db   :  { %424 = vrot.lane.b32.xlu1 %v2717_v53, %s3024_s3 }
 0x44c   :  { %v419_v22 = vpop.permute.xlu0 %418 }
 0x44d   :  { %v425_v28 = vpop.permute.xlu1 %424  ;;  %v421_v54 = vmul.f32 %v419_v22, %v369_v14 }
 0x44e   :  { %v427_v55 = vmul.f32 %v425_v28, %v384_v37 }
 0x44f   :  { %429 = vrot.lane.b32.xlu2 %v421_v54, %s3025_s12 }
 0x450   :  { %433 = vrot.lane.b32.xlu0 %v427_v55, %s3024_s3  ;;  %v536_v55 = vrot.slane %v3218_v51, 6 }
 0x4a9   :  { %v430_v56 = vpop.permute.xlu2 %429 }
 0x4aa   :  { %438 = vst.msk [vmem:[#allocation2] sm:$0xc] %vm437_vm5, %v430_v56 }
 0x4c2   :  { %v434_v57 = vpop.permute.xlu0 %433 }
 0x4c3   :  { %v436_v58 = vsel %vm302_vm10, %v430_v56, %v434_v57  ;;  %440 = vst.msk [vmem:[#allocation2 + $0xa] sm:$0xc] %vm3713_vm6, %v434_v57 }
 0x4c4   :  { %v441_v59 = vpack.c.bf16 %v436_v58, %v436_v58 }
 0x4c6   :  { %v443_v60 = vrot.slane %v441_v59, 1 }
 0x4c8   :  { %2509 = vmatmul.msk.bf16.vlgmr.msrb.gmra.mxu2 %vm185_vm12, %v443_v60  ;;  %2510 = vmatmul.msk.bf16.vlgmr.msrb.gmra.mxu3 %vm185_vm12, %v443_v60  ;;  %v522_v60 = vrot.slane %v3216_v49, 6 }
 0x4c9   :  { %976 = vmatpush.bf16.msrb.mxu2 %v3085_v3  ;;  %989 = vmatpush.bf16.msrb.mxu3 %v3087_v7 }
 0x4cd   :  { %977 = vmatpush.bf16.msrb.mxu2 %v3093_v11  ;;  %990 = vmatpush.bf16.msrb.mxu3 %v3105_v15 }
 0x4d1   :  { %978 = vmatpush.bf16.msrb.mxu2 %v3111_v23  ;;  %991 = vmatpush.bf16.msrb.mxu3 %v3115_v24 }
 0x4d5   :  { %979 = vmatpush.bf16.msrb.mxu2 %v3119_v29  ;;  %992 = vmatpush.bf16.msrb.mxu3 %v3123_v30 }
 0x54b   :  { %v456_v61 = vpop.f32.mrf.mxu2  ;;  %v469_v62 = vpop.f32.mrf.mxu3 }
 0x54c   :  { %v475_v63 = vrot.slane %v456_v61, 4  ;;  %v476_v0 = vrot.slane %v469_v62, 4 }
 0x54e   :  { %v479_v1 = vadd.f32 %v475_v63, %v3169_v39  ;;  %v480_v2 = vadd.f32 %v476_v0, %v216_v44 }
 0x550   :  { %2718 = vtanh.f32 %v479_v1  ;;  %v2512_v9 = vmul.f32 -1.442695, %v480_v2  ;;  %v2511_v14 = vmul.f32 -1.442695, %v479_v1 }
 0x551   :  { %2720 = vtanh.f32 %v480_v2 }
 0x552   :  { %2722 = vpow2.f32 %v2512_v9 }
 0x553   :  { %v458_v4 = vpop.f32.mrf.mxu2  ;;  %v471_v5 = vpop.f32.mrf.mxu3 }
 0x556   :  { %v2719_v6 = vpop.eup %2718 }
 0x557   :  { %v2721_v8 = vpop.eup %2720  ;;  %526 = vrot.lane.b32.xlu1 %v2719_v6, %s3024_s3 }
 0x558   :  { %540 = vrot.lane.b32.xlu2 %v2721_v8, %s3024_s3  ;;  %v2723_v10 = vpop.eup %2722 }
 0x559   :  { %v488_v12 = vadd.f32 1.0, %v2723_v10 }
 0x55b   :  { %2724 = vrcp.f32 %v488_v12  ;;  %v515_v21 = vand.u32 2147483648, %v488_v12  ;;  %vm509_vm8 = vweird.f32 %v488_v12  ;;  %v513_v25 = vand.u32 2147483647, %v488_v12 }
 0x55c   :  { %2726 = vpow2.f32 %v2511_v14 }
 0x55d   :  { %v516_v27 = vor.u32 1.1754944e-38, %v515_v21  ;;  %vm514_vm14 = vcmp.eq.f32.partialorder %v513_v25, 8.507059e+37 }
 0x561   :  { %v2725_v13 = vpop.eup %2724 }
 0x562   :  { %v505_v16 = vmul.f32 %v2725_v13, %v488_v12  ;;  %v2727_v17 = vpop.eup %2726  ;;  %vm510_vm7 = vweird.f32 %v2725_v13 }
 0x563   :  { %v487_v19 = vadd.f32 1.0, %v2727_v17  ;;  %vm511_vm13 = vmor %vm509_vm8, %vm510_vm7 }
 0x564   :  { %v506_v44 = vsub.f32 1.0, %v505_v16 }
 0x565   :  { %2728 = vrcp.f32 %v487_v19  ;;  %v500_v46 = vand.u32 2147483648, %v487_v19  ;;  %vm494_vm0 = vweird.f32 %v487_v19  ;;  %v498_v48 = vand.u32 2147483647, %v487_v19 }
 0x566   :  { %v507_v18 = vmul.f32 %v2725_v13, %v506_v44 }
 0x567   :  { %v501_v53 = vor.u32 1.1754944e-38, %v500_v46  ;;  %vm499_vm2 = vcmp.eq.f32.partialorder %v498_v48, 8.507059e+37 }
 0x568   :  { %v508_v20 = vadd.f32 %v2725_v13, %v507_v18 }
 0x56a   :  { %v512_v26 = vsel %vm511_vm13, %v2725_v13, %v508_v20 }
 0x56b   :  { %v517_v34 = vsel %vm514_vm14, %v516_v27, %v512_v26  ;;  %v2729_v37 = vpop.eup %2728 }
 0x56c   :  { %v490_v41 = vmul.f32 %v2729_v37, %v487_v19  ;;  %vm495_vm15 = vweird.f32 %v2729_v37  ;;  %v538_v56 = vmul.f32 %v536_v55, %v517_v34 }
 0x56d   :  { %vm496_vm1 = vmor %vm494_vm0, %vm495_vm15 }
 0x56e   :  { %v491_v42 = vsub.f32 1.0, %v490_v41 }
 0x570   :  { %v492_v43 = vmul.f32 %v2729_v37, %v491_v42 }
 0x572   :  { %v493_v45 = vadd.f32 %v2729_v37, %v492_v43 }
 0x574   :  { %v497_v52 = vsel %vm496_vm1, %v2729_v37, %v493_v45 }
 0x575   :  { %v502_v28 = vsel %vm499_vm2, %v501_v53, %v497_v52 }
 0x576   :  { %v524_v61 = vmul.f32 %v522_v60, %v502_v28 }
 0x5b2   :  { %v541_v33 = vpop.permute.xlu2 %540 }
 0x5b3   :  { %v543_v38 = vmul.f32 %v541_v33, %v517_v34 }
 0x5b5   :  { %545 = vrot.lane.b32.xlu1 %v543_v38, %s3025_s12 }
 0x5c9   :  { %v527_v22 = vpop.permute.xlu1 %526 }
 0x5ca   :  { %v529_v54 = vmul.f32 %v527_v22, %v502_v28 }
 0x5cc   :  { %531 = vrot.lane.b32.xlu0 %v529_v54, %s3025_s12 }
 0x627   :  { %v546_v57 = vpop.permute.xlu1 %545 }
 0x628   :  { %v3247_v58 = vadd.f32 %v546_v57, %v538_v56 }
 0x62a   :  { %2730 = vtanh.f32 %v3247_v58 }
 0x630   :  { %v2731_v59 = vpop.eup %2730 }
 0x631   :  { %557 = vrot.lane.b32.xlu0 %v2731_v59, %s3024_s3 }
 0x63e   :  { %v532_v62 = vpop.permute.xlu0 %531 }
 0x63f   :  { %v3252_v63 = vadd.f32 %v532_v62, %v524_v61  ;;  %v669_v61 = vrot.slane %v3247_v58, 6 }
 0x641   :  { %2732 = vtanh.f32 %v3252_v63  ;;  %v655_v55 = vrot.slane %v3252_v63, 6 }
 0x647   :  { %v2733_v0 = vpop.eup %2732 }
 0x648   :  { %551 = vrot.lane.b32.xlu2 %v2733_v0, %s3024_s3 }
 0x6a2   :  { %v552_v51 = vpop.permute.xlu2 %551 }
 0x6a3   :  { %v558_v1 = vpop.permute.xlu0 %557  ;;  %v554_v2 = vmul.f32 %v552_v51, %v502_v28 }
 0x6a4   :  { %v560_v4 = vmul.f32 %v558_v1, %v517_v34 }
 0x6a5   :  { %562 = vrot.lane.b32.xlu1 %v554_v2, %s3025_s12 }
 0x6a6   :  { %566 = vrot.lane.b32.xlu2 %v560_v4, %s3024_s3 }
 0x700   :  { %v567_v5 = vpop.permute.xlu2 %566 }
 0x701   :  { %573 = vst.msk [vmem:[#allocation2 + $0x6] sm:$0x30] %vm572_vm3, %v567_v5 }
 0x717   :  { %v563_v49 = vpop.permute.xlu1 %562 }
 0x718   :  { %v569_v6 = vsel %vm302_vm10, %v563_v49, %v567_v5  ;;  %571 = vst.msk [vmem:[#allocation2] sm:$0x30] %vm570_vm4, %v563_v49 }
 0x719   :  { %v574_v8 = vpack.c.bf16 %v569_v6, %v569_v6 }
 0x71b   :  { %v576_v9 = vrot.slane %v574_v8, 2 }
 0x71d   :  { %2513 = vmatmul.msk.bf16.vlgmr.msra.gmra.mxu0 %vm185_vm12, %v576_v9  ;;  %2514 = vmatmul.msk.bf16.vlgmr.msra.gmra.mxu1 %vm185_vm12, %v576_v9 }
 0x71e   :  { %1120 = vmatpush.bf16.msra.mxu1 %v3087_v7  ;;  %1107 = vmatpush.bf16.msra.mxu0 %v3085_v3 }
 0x722   :  { %1121 = vmatpush.bf16.msra.mxu1 %v3105_v15  ;;  %1108 = vmatpush.bf16.msra.mxu0 %v3093_v11 }
 0x726   :  { %1122 = vmatpush.bf16.msra.mxu1 %v3115_v24  ;;  %1109 = vmatpush.bf16.msra.mxu0 %v3111_v23 }
 0x72a   :  { %1123 = vmatpush.bf16.msra.mxu1 %v3123_v30  ;;  %1110 = vmatpush.bf16.msra.mxu0 %v3119_v29 }
 0x79a   :  { %v589_v10 = vpop.f32.mrf.mxu0  ;;  %v602_v12 = vpop.f32.mrf.mxu1 }
 0x79b   :  { %v608_v13 = vrot.slane %v589_v10, 2  ;;  %v609_v14 = vrot.slane %v602_v12, 2  ;;  %v3298_v10 = vadd.f32 %v3204_v47, %v94_v36  ;;  %v740_v12 = vrot.slane %v3164_v35, 6 }
 0x79d   :  { %v612_v7 = vadd.f32 %v608_v13, %v3169_v39  ;;  %v613_v3 = vadd.f32 %v609_v14, %v338_v50 }
 0x79f   :  { %2734 = vtanh.f32 %v612_v7  ;;  %v2515_v23 = vmul.f32 -1.442695, %v612_v7  ;;  %v2516_v29 = vmul.f32 -1.442695, %v613_v3 }
 0x7a0   :  { %2736 = vtanh.f32 %v613_v3 }
 0x7a1   :  { %2738 = vpow2.f32 %v2515_v23 }
 0x7a2   :  { %v591_v11 = vpop.f32.mrf.mxu0  ;;  %v604_v15 = vpop.f32.mrf.mxu1  ;;  %2740 = vpow2.f32 %v2516_v29 }
 0x7a5   :  { %v2735_v24 = vpop.eup %2734 }
 0x7a6   :  { %v2737_v16 = vpop.eup %2736  ;;  %659 = vrot.lane.b32.xlu0 %v2735_v24, %s3024_s3 }
 0x7a7   :  { %673 = vrot.lane.b32.xlu1 %v2737_v16, %s3024_s3  ;;  %v2739_v30 = vpop.eup %2738 }
 0x7a8   :  { %v2741_v44 = vpop.eup %2740  ;;  %v620_v39 = vadd.f32 1.0, %v2739_v30 }
 0x7a9   :  { %v621_v17 = vadd.f32 1.0, %v2741_v44 }
 0x7aa   :  { %2742 = vrcp.f32 %v620_v39  ;;  %v633_v34 = vand.u32 2147483648, %v620_v39  ;;  %vm627_vm13 = vweird.f32 %v620_v39  ;;  %v631_v38 = vand.u32 2147483647, %v620_v39 }
 0x7ab   :  { %2744 = vrcp.f32 %v621_v17  ;;  %v648_v37 = vand.u32 2147483648, %v621_v17  ;;  %vm642_vm14 = vweird.f32 %v621_v17  ;;  %v646_v41 = vand.u32 2147483647, %v621_v17 }
 0x7ac   :  { %v634_v45 = vor.u32 1.1754944e-38, %v633_v34  ;;  %vm632_vm1 = vcmp.eq.f32.partialorder %v631_v38, 8.507059e+37 }
 0x7ad   :  { %v649_v46 = vor.u32 1.1754944e-38, %v648_v37  ;;  %vm647_vm2 = vcmp.eq.f32.partialorder %v646_v41, 8.507059e+37 }
 0x7b0   :  { %v2743_v40 = vpop.eup %2742 }
 0x7b1   :  { %v2745_v50 = vpop.eup %2744  ;;  %v623_v18 = vmul.f32 %v2743_v40, %v620_v39  ;;  %vm628_vm7 = vweird.f32 %v2743_v40 }
 0x7b2   :  { %v638_v19 = vmul.f32 %v2745_v50, %v621_v17  ;;  %vm643_vm8 = vweird.f32 %v2745_v50  ;;  %vm629_vm15 = vmor %vm627_vm13, %vm628_vm7  ;;  %vm703_vm7 = vcmask 261126  }
 0x7b3   :  { %v624_v20 = vsub.f32 1.0, %v623_v18  ;;  %vm644_vm0 = vmor %vm642_vm14, %vm643_vm8  ;;  %vm3712_vm8 = vcmask 523526  }
 0x7b4   :  { %v639_v21 = vsub.f32 1.0, %v638_v19 }
 0x7b5   :  { %v625_v25 = vmul.f32 %v2743_v40, %v624_v20 }
 0x7b6   :  { %v640_v26 = vmul.f32 %v2745_v50, %v639_v21 }
 0x7b7   :  { %v626_v27 = vadd.f32 %v2743_v40, %v625_v25 }
 0x7b8   :  { %v641_v33 = vadd.f32 %v2745_v50, %v640_v26 }
 0x7b9   :  { %v630_v42 = vsel %vm629_vm15, %v2743_v40, %v626_v27 }
 0x7ba   :  { %v645_v43 = vsel %vm644_vm0, %v2745_v50, %v641_v33  ;;  %v635_v52 = vsel %vm632_vm1, %v634_v45, %v630_v42 }
 0x7bb   :  { %v650_v22 = vsel %vm647_vm2, %v649_v46, %v645_v43  ;;  %v657_v56 = vmul.f32 %v655_v55, %v635_v52 }
 0x7bc   :  { %v671_v62 = vmul.f32 %v669_v61, %v650_v22 }
 0x818   :  { %v660_v48 = vpop.permute.xlu0 %659 }
 0x819   :  { %v674_v53 = vpop.permute.xlu1 %673  ;;  %v662_v28 = vmul.f32 %v660_v48, %v635_v52 }
 0x81a   :  { %v676_v54 = vmul.f32 %v674_v53, %v650_v22 }
 0x81b   :  { %664 = vrot.lane.b32.xlu2 %v662_v28, %s3025_s12 }
 0x81c   :  { %678 = vrot.lane.b32.xlu0 %v676_v54, %s3025_s12 }
 0x875   :  { %v665_v57 = vpop.permute.xlu2 %664 }
 0x876   :  { %v3279_v59 = vadd.f32 %v665_v57, %v657_v56 }
 0x878   :  { %2746 = vtanh.f32 %v3279_v59 }
 0x87e   :  { %v2747_v60 = vpop.eup %2746 }
 0x87f   :  { %684 = vrot.lane.b32.xlu1 %v2747_v60, %s3024_s3 }
 0x88e   :  { %v679_v0 = vpop.permute.xlu0 %678 }
 0x88f   :  { %v3284_v51 = vadd.f32 %v679_v0, %v671_v62 }
 0x891   :  { %2748 = vtanh.f32 %v3284_v51  ;;  %v799_v28 = vrot.slane %v3284_v51, 6 }
 0x897   :  { %v2749_v1 = vpop.eup %2748 }
 0x898   :  { %690 = vrot.lane.b32.xlu2 %v2749_v1, %s3024_s3 }
 0x8f1   :  { %v685_v63 = vpop.permute.xlu1 %684 }
 0x8f2   :  { %v691_v2 = vpop.permute.xlu2 %690  ;;  %v687_v4 = vmul.f32 %v685_v63, %v635_v52 }
 0x8f3   :  { %v693_v5 = vmul.f32 %v691_v2, %v650_v22  ;;  %v785_v22 = vrot.slane %v3279_v59, 6 }
 0x8f4   :  { %695 = vrot.lane.b32.xlu0 %v687_v4, %s3025_s12 }
 0x8f5   :  { %699 = vrot.lane.b32.xlu1 %v693_v5, %s3024_s3 }
 0x966   :  { %v696_v58 = vpop.permute.xlu0 %695 }
 0x967   :  { %704 = vst.msk [vmem:[#allocation2] sm:$0xc0] %vm703_vm7, %v696_v58  ;;  %v700_v49 = vpop.permute.xlu1 %699 }
 0x968   :  { %v702_v6 = vsel %vm302_vm10, %v696_v58, %v700_v49  ;;  %706 = vst.msk [vmem:[#allocation2 + $0x2] sm:$0xc0] %vm3712_vm8, %v700_v49 }
 0x969   :  { %v707_v8 = vpack.c.bf16 %v702_v6, %v702_v6 }
 0x96b   :  { %v709_v9 = vrot.slane %v707_v8, 3  ;;  %v865_v8 = vrot.slane %v3164_v35, 2 }
 0x96d   :  { %2517 = vmatmul.msk.bf16.vlgmr.msra.gmra.mxu2 %vm185_vm12, %v709_v9  ;;  %2518 = vmatmul.msk.bf16.vlgmr.msra.gmra.mxu3 %vm185_vm12, %v709_v9 }
 0x9f0   :  { %v722_v13 = vpop.f32.mrf.mxu2  ;;  %v735_v14 = vpop.f32.mrf.mxu3 }
 0x9f1   :  { %v742_v7 = vadd.f32 %v722_v13, %v3298_v10  ;;  %v743_v3 = vadd.f32 %v740_v12, %v735_v14 }
 0x9f3   :  { %2750 = vtanh.f32 %v742_v7  ;;  %v2519_v32 = vmul.f32 -1.442695, %v742_v7  ;;  %v2520_v29 = vmul.f32 -1.442695, %v743_v3 }
 0x9f4   :  { %2752 = vtanh.f32 %v743_v3 }
 0x9f5   :  { %2754 = vpow2.f32 %v2519_v32 }
 0x9f8   :  { %v724_v11 = vpop.f32.mrf.mxu2  ;;  %v737_v15 = vpop.f32.mrf.mxu3 }
 0x9f9   :  { %v2751_v24 = vpop.eup %2750 }
 0x9fa   :  { %v2753_v16 = vpop.eup %2752  ;;  %789 = vrot.lane.b32.xlu2 %v2751_v24, %s3024_s3 }
 0x9fb   :  { %803 = vrot.lane.b32.xlu0 %v2753_v16, %s3024_s3  ;;  %v2755_v36 = vpop.eup %2754 }
 0x9fc   :  { %v750_v47 = vadd.f32 1.0, %v2755_v36 }
 0x9fe   :  { %2756 = vrcp.f32 %v750_v47  ;;  %v763_v18 = vand.u32 2147483648, %v750_v47  ;;  %vm757_vm14 = vweird.f32 %v750_v47  ;;  %v761_v19 = vand.u32 2147483647, %v750_v47 }
 0x9ff   :  { %2758 = vpow2.f32 %v2520_v29 }
 0xa00   :  { %v764_v21 = vor.u32 1.1754944e-38, %v763_v18  ;;  %vm762_vm0 = vcmp.eq.f32.partialorder %v761_v19, 8.507059e+37 }
 0xa04   :  { %v2757_v23 = vpop.eup %2756 }
 0xa05   :  { %v753_v30 = vmul.f32 %v2757_v23, %v750_v47  ;;  %v2759_v17 = vpop.eup %2758  ;;  %vm758_vm13 = vweird.f32 %v2757_v23 }
 0xa06   :  { %v751_v40 = vadd.f32 1.0, %v2759_v17  ;;  %vm759_vm15 = vmor %vm757_vm14, %vm758_vm13 }
 0xa07   :  { %v754_v44 = vsub.f32 1.0, %v753_v30 }
 0xa08   :  { %2760 = vrcp.f32 %v751_v40  ;;  %v778_v42 = vand.u32 2147483648, %v751_v40  ;;  %vm772_vm2 = vweird.f32 %v751_v40  ;;  %v776_v43 = vand.u32 2147483647, %v751_v40 }
 0xa09   :  { %v755_v39 = vmul.f32 %v2757_v23, %v754_v44 }
 0xa0a   :  { %v779_v46 = vor.u32 1.1754944e-38, %v778_v42  ;;  %vm777_vm13 = vcmp.eq.f32.partialorder %v776_v43, 8.507059e+37 }
 0xa0b   :  { %v756_v50 = vadd.f32 %v2757_v23, %v755_v39 }
 0xa0d   :  { %v760_v20 = vsel %vm759_vm15, %v2757_v23, %v756_v50 }
 0xa0e   :  { %v765_v26 = vsel %vm762_vm0, %v764_v21, %v760_v20  ;;  %v2761_v33 = vpop.eup %2760 }
 0xa0f   :  { %v768_v34 = vmul.f32 %v2761_v33, %v751_v40  ;;  %vm773_vm1 = vweird.f32 %v2761_v33  ;;  %v787_v54 = vmul.f32 %v785_v22, %v765_v26 }
 0xa10   :  { %vm774_vm8 = vmor %vm772_vm2, %vm773_vm1 }
 0xa11   :  { %v769_v37 = vsub.f32 1.0, %v768_v34 }
 0xa13   :  { %v770_v38 = vmul.f32 %v2761_v33, %v769_v37 }
 0xa15   :  { %v771_v41 = vadd.f32 %v2761_v33, %v770_v38 }
 0xa17   :  { %v775_v45 = vsel %vm774_vm8, %v2761_v33, %v771_v41 }
 0xa18   :  { %v780_v52 = vsel %vm777_vm13, %v779_v46, %v775_v45 }
 0xa19   :  { %v801_v56 = vmul.f32 %v799_v28, %v780_v52 }
 0xa54   :  { %v790_v25 = vpop.permute.xlu2 %789 }
 0xa55   :  { %v792_v27 = vmul.f32 %v790_v25, %v765_v26 }
 0xa57   :  { %794 = vrot.lane.b32.xlu1 %v792_v27, %s3025_s12 }
 0xa6d   :  { %v804_v48 = vpop.permute.xlu0 %803 }
 0xa6e   :  { %v806_v53 = vmul.f32 %v804_v48, %v780_v52 }
 0xa70   :  { %808 = vrot.lane.b32.xlu2 %v806_v53, %s3025_s12 }
 0xac9   :  { %v795_v55 = vpop.permute.xlu1 %794 }
 0xaca   :  { %v3310_v57 = vadd.f32 %v795_v55, %v787_v54  ;;  %v809_v60 = vpop.permute.xlu2 %808 }
 0xacb   :  { %v3312_v61 = vadd.f32 %v809_v60, %v801_v56 }
 0xacc   :  { %2762 = vtanh.f32 %v3310_v57  ;;  %v916_v56 = vrot.slane %v3310_v57, 6 }
 0xacd   :  { %2764 = vtanh.f32 %v3312_v61  ;;  %v930_v53 = vrot.slane %v3312_v61, 6 }
 0xad2   :  { %v2763_v62 = vpop.eup %2762 }
 0xad3   :  { %v2765_v0 = vpop.eup %2764  ;;  %814 = vrot.lane.b32.xlu0 %v2763_v62, %s3024_s3 }
 0xad4   :  { %820 = vrot.lane.b32.xlu1 %v2765_v0, %s3024_s3 }
 0xb45   :  { %v815_v59 = vpop.permute.xlu0 %814 }
 0xb46   :  { %v817_v51 = vmul.f32 %v815_v59, %v765_v26  ;;  %v821_v1 = vpop.permute.xlu1 %820 }
 0xb47   :  { %v823_v63 = vmul.f32 %v821_v1, %v780_v52 }
 0xb48   :  { %825 = vrot.lane.b32.xlu2 %v817_v51, %s3025_s12 }
 0xb49   :  { %829 = vrot.lane.b32.xlu0 %v823_v63, %s3024_s3 }
 0xba2   :  { %v826_v2 = vpop.permute.xlu2 %825 }
 0xba3   :  { %833 = vst.msk [vmem:[#allocation2 + $0x8] sm:$0x3] %vm304_vm9, %v826_v2 }
 0xbbb   :  { %v830_v4 = vpop.permute.xlu0 %829 }
 0xbbc   :  { %v832_v5 = vsel %vm302_vm10, %v826_v2, %v830_v4  ;;  %834 = vst.msk [vmem:[#allocation2 + $0x6] sm:$0x3] %vm306_vm11, %v830_v4 }
 0xbbd   :  { %v835_v58 = vpack.c.bf16 %v832_v5, %v832_v5 }
 0xbbf   :  { %2521 = vmatmul.msk.bf16.vlgmr.msrb.gmra.mxu0 %vm185_vm12, %v835_v58  ;;  %2522 = vmatmul.msk.bf16.vlgmr.msrb.gmra.mxu1 %vm185_vm12, %v835_v58 }
 0xc3c   :  { %v848_v49 = vpop.f32.mrf.mxu0  ;;  %v861_v6 = vpop.f32.mrf.mxu1 }
 0xc3d   :  { %v869_v9 = vrot.slane %v848_v49, 6  ;;  %v870_v13 = vrot.slane %v861_v6, 6 }
 0xc3f   :  { %v873_v14 = vadd.f32 %v869_v9, %v3298_v10  ;;  %v874_v7 = vadd.f32 %v870_v13, %v865_v8 }
 0xc41   :  { %2766 = vtanh.f32 %v873_v14  ;;  %v2524_v16 = vmul.f32 -1.442695, %v874_v7  ;;  %v2523_v23 = vmul.f32 -1.442695, %v873_v14 }
 0xc42   :  { %2768 = vtanh.f32 %v874_v7 }
 0xc43   :  { %2770 = vpow2.f32 %v2524_v16 }
 0xc44   :  { %v850_v3 = vpop.f32.mrf.mxu0  ;;  %v863_v11 = vpop.f32.mrf.mxu1 }
 0xc47   :  { %v2767_v15 = vpop.eup %2766 }
 0xc48   :  { %v2769_v24 = vpop.eup %2768  ;;  %920 = vrot.lane.b32.xlu1 %v2767_v15, %s3024_s3 }
 0xc49   :  { %934 = vrot.lane.b32.xlu2 %v2769_v24, %s3024_s3  ;;  %v2771_v32 = vpop.eup %2770 }
 0xc4a   :  { %v882_v36 = vadd.f32 1.0, %v2771_v32 }
 0xc4c   :  { %2772 = vrcp.f32 %v882_v36  ;;  %v909_v50 = vand.u32 2147483648, %v882_v36  ;;  %vm903_vm14 = vweird.f32 %v882_v36  ;;  %v907_v18 = vand.u32 2147483647, %v882_v36 }
 0xc4d   :  { %2774 = vpow2.f32 %v2523_v23 }
 0xc4e   :  { %v910_v20 = vor.u32 1.1754944e-38, %v909_v50  ;;  %vm908_vm0 = vcmp.eq.f32.partialorder %v907_v18, 8.507059e+37 }
 0xc52   :  { %v2773_v47 = vpop.eup %2772 }
 0xc53   :  { %v899_v29 = vmul.f32 %v2773_v47, %v882_v36  ;;  %v2775_v44 = vpop.eup %2774  ;;  %vm904_vm8 = vweird.f32 %v2773_v47 }
 0xc54   :  { %v881_v17 = vadd.f32 1.0, %v2775_v44  ;;  %vm905_vm15 = vmor %vm903_vm14, %vm904_vm8 }
 0xc55   :  { %v900_v30 = vsub.f32 1.0, %v899_v29 }
 0xc56   :  { %2776 = vrcp.f32 %v881_v17  ;;  %v894_v41 = vand.u32 2147483648, %v881_v17  ;;  %vm888_vm2 = vweird.f32 %v881_v17  ;;  %v892_v42 = vand.u32 2147483647, %v881_v17 }
 0xc57   :  { %v901_v39 = vmul.f32 %v2773_v47, %v900_v30 }
 0xc58   :  { %v895_v45 = vor.u32 1.1754944e-38, %v894_v41  ;;  %vm893_vm8 = vcmp.eq.f32.partialorder %v892_v42, 8.507059e+37 }
 0xc59   :  { %v902_v40 = vadd.f32 %v2773_v47, %v901_v39 }
 0xc5b   :  { %v906_v19 = vsel %vm905_vm15, %v2773_v47, %v902_v40 }
 0xc5c   :  { %v911_v25 = vsel %vm908_vm0, %v910_v20, %v906_v19  ;;  %v2777_v26 = vpop.eup %2776 }
 0xc5d   :  { %v884_v33 = vmul.f32 %v2777_v26, %v881_v17  ;;  %vm889_vm1 = vweird.f32 %v2777_v26  ;;  %v932_v22 = vmul.f32 %v930_v53, %v911_v25 }
 0xc5e   :  { %vm890_vm13 = vmor %vm888_vm2, %vm889_vm1 }
 0xc5f   :  { %v885_v34 = vsub.f32 1.0, %v884_v33 }
 0xc61   :  { %v886_v37 = vmul.f32 %v2777_v26, %v885_v34 }
 0xc63   :  { %v887_v38 = vadd.f32 %v2777_v26, %v886_v37 }
 0xc65   :  { %v891_v43 = vsel %vm890_vm13, %v2777_v26, %v887_v38 }
 0xc66   :  { %v896_v48 = vsel %vm893_vm8, %v895_v45, %v891_v43 }
 0xc67   :  { %v918_v60 = vmul.f32 %v916_v56, %v896_v48 }
 0xca3   :  { %v935_v21 = vpop.permute.xlu2 %934 }
 0xca4   :  { %v937_v27 = vmul.f32 %v935_v21, %v911_v25 }
 0xca6   :  { %939 = vrot.lane.b32.xlu1 %v937_v27, %s3025_s12 }
 0xcba   :  { %v921_v46 = vpop.permute.xlu1 %920 }
 0xcbb   :  { %v923_v52 = vmul.f32 %v921_v46, %v896_v48 }
 0xcbd   :  { %925 = vrot.lane.b32.xlu0 %v923_v52, %s3025_s12 }
 0xd18   :  { %v940_v28 = vpop.permute.xlu1 %939 }
 0xd19   :  { %v3334_v54 = vadd.f32 %v940_v28, %v932_v22 }
 0xd1b   :  { %2778 = vtanh.f32 %v3334_v54  ;;  %v1061_v56 = vrot.slane %v3334_v54, 6 }
 0xd21   :  { %v2779_v55 = vpop.eup %2778 }
 0xd22   :  { %951 = vrot.lane.b32.xlu0 %v2779_v55, %s3024_s3 }
 0xd2f   :  { %v926_v62 = vpop.permute.xlu0 %925 }
 0xd30   :  { %v3339_v0 = vadd.f32 %v926_v62, %v918_v60 }
 0xd32   :  { %2780 = vtanh.f32 %v3339_v0  ;;  %v1047_v52 = vrot.slane %v3339_v0, 6 }
 0xd38   :  { %v2781_v59 = vpop.eup %2780 }
 0xd39   :  { %945 = vrot.lane.b32.xlu2 %v2781_v59, %s3024_s3 }
 0xd93   :  { %v946_v61 = vpop.permute.xlu2 %945 }
 0xd94   :  { %v952_v51 = vpop.permute.xlu0 %951  ;;  %v948_v1 = vmul.f32 %v946_v61, %v896_v48 }
 0xd95   :  { %v954_v63 = vmul.f32 %v952_v51, %v911_v25 }
 0xd96   :  { %956 = vrot.lane.b32.xlu1 %v948_v1, %s3025_s12 }
 0xd97   :  { %960 = vrot.lane.b32.xlu2 %v954_v63, %s3024_s3 }
 0xdf1   :  { %v961_v2 = vpop.permute.xlu2 %960 }
 0xdf2   :  { %965 = vst.msk [vmem:[#allocation2 + $0x2] sm:$0xc] %vm3713_vm6, %v961_v2 }
 0xe08   :  { %v957_v57 = vpop.permute.xlu1 %956 }
 0xe09   :  { %v963_v4 = vsel %vm302_vm10, %v957_v57, %v961_v2  ;;  %964 = vst.msk [vmem:[#allocation2 + $0x8] sm:$0xc] %vm437_vm5, %v957_v57 }
 0xe0a   :  { %v966_v5 = vpack.c.bf16 %v963_v4, %v963_v4 }
 0xe0c   :  { %v968_v58 = vrot.slane %v966_v5, 1 }
 0xe0e   :  { %2525 = vmatmul.msk.bf16.vlgmr.msrb.gmra.mxu2 %vm185_vm12, %v968_v58  ;;  %2526 = vmatmul.msk.bf16.vlgmr.msrb.gmra.mxu3 %vm185_vm12, %v968_v58 }
 0xe91   :  { %v981_v49 = vpop.f32.mrf.mxu2  ;;  %v994_v6 = vpop.f32.mrf.mxu3 }
 0xe92   :  { %v1000_v9 = vrot.slane %v981_v49, 4  ;;  %v1001_v13 = vrot.slane %v994_v6, 4 }
 0xe94   :  { %v1004_v14 = vadd.f32 %v1000_v9, %v3298_v10  ;;  %v1005_v7 = vadd.f32 %v1001_v13, %v740_v12 }
 0xe96   :  { %2782 = vtanh.f32 %v1004_v14  ;;  %v2527_v16 = vmul.f32 -1.442695, %v1004_v14  ;;  %v2528_v32 = vmul.f32 -1.442695, %v1005_v7 }
 0xe97   :  { %2784 = vtanh.f32 %v1005_v7 }
 0xe98   :  { %2786 = vpow2.f32 %v2527_v16 }
 0xe99   :  { %v983_v3 = vpop.f32.mrf.mxu2  ;;  %v996_v11 = vpop.f32.mrf.mxu3  ;;  %2788 = vpow2.f32 %v2528_v32 }
 0xe9c   :  { %v2783_v15 = vpop.eup %2782 }
 0xe9d   :  { %v2785_v24 = vpop.eup %2784  ;;  %1051 = vrot.lane.b32.xlu0 %v2783_v15, %s3024_s3 }
 0xe9e   :  { %1065 = vrot.lane.b32.xlu1 %v2785_v24, %s3024_s3  ;;  %v2787_v36 = vpop.eup %2786 }
 0xe9f   :  { %v2789_v47 = vpop.eup %2788  ;;  %v1012_v23 = vadd.f32 1.0, %v2787_v36 }
 0xea0   :  { %v1013_v29 = vadd.f32 1.0, %v2789_v47 }
 0xea1   :  { %2790 = vrcp.f32 %v1012_v23  ;;  %v1025_v21 = vand.u32 2147483648, %v1012_v23  ;;  %vm1019_vm0 = vweird.f32 %v1012_v23  ;;  %v1023_v26 = vand.u32 2147483647, %v1012_v23 }
 0xea2   :  { %2792 = vrcp.f32 %v1013_v29  ;;  %v1040_v25 = vand.u32 2147483648, %v1013_v29  ;;  %vm1034_vm1 = vweird.f32 %v1013_v29  ;;  %v1038_v27 = vand.u32 2147483647, %v1013_v29 }
 0xea3   :  { %v1026_v37 = vor.u32 1.1754944e-38, %v1025_v21  ;;  %vm1024_vm8 = vcmp.eq.f32.partialorder %v1023_v26, 8.507059e+37 }
 0xea4   :  { %v1041_v38 = vor.u32 1.1754944e-38, %v1040_v25  ;;  %vm1039_vm6 = vcmp.eq.f32.partialorder %v1038_v27, 8.507059e+37 }
 0xea7   :  { %v2791_v12 = vpop.eup %2790 }
 0xea8   :  { %v2793_v30 = vpop.eup %2792  ;;  %v1015_v44 = vmul.f32 %v2791_v12, %v1012_v23  ;;  %vm1020_vm14 = vweird.f32 %v2791_v12 }
 0xea9   :  { %v1030_v39 = vmul.f32 %v2793_v30, %v1013_v29  ;;  %vm1035_vm15 = vweird.f32 %v2793_v30  ;;  %vm1021_vm2 = vmor %vm1019_vm0, %vm1020_vm14 }
 0xeaa   :  { %v1016_v17 = vsub.f32 1.0, %v1015_v44  ;;  %vm1036_vm13 = vmor %vm1034_vm1, %vm1035_vm15 }
 0xeab   :  { %v1031_v40 = vsub.f32 1.0, %v1030_v39 }
 0xeac   :  { %v1017_v50 = vmul.f32 %v2791_v12, %v1016_v17 }
 0xead   :  { %v1032_v18 = vmul.f32 %v2793_v30, %v1031_v40 }
 0xeae   :  { %v1018_v19 = vadd.f32 %v2791_v12, %v1017_v50 }
 0xeaf   :  { %v1033_v20 = vadd.f32 %v2793_v30, %v1032_v18 }
 0xeb0   :  { %v1022_v33 = vsel %vm1021_vm2, %v2791_v12, %v1018_v19 }
 0xeb1   :  { %v1037_v34 = vsel %vm1036_vm13, %v2793_v30, %v1033_v20  ;;  %v1027_v42 = vsel %vm1024_vm8, %v1026_v37, %v1022_v33 }
 0xeb2   :  { %v1042_v45 = vsel %vm1039_vm6, %v1041_v38, %v1037_v34  ;;  %v1049_v53 = vmul.f32 %v1047_v52, %v1027_v42 }
 0xeb3   :  { %v1063_v60 = vmul.f32 %v1061_v56, %v1042_v45 }
 0xf0f   :  { %v1052_v41 = vpop.permute.xlu0 %1051 }
 0xf10   :  { %v1066_v43 = vpop.permute.xlu1 %1065  ;;  %v1054_v46 = vmul.f32 %v1052_v41, %v1027_v42 }
 0xf11   :  { %v1068_v48 = vmul.f32 %v1066_v43, %v1042_v45 }
 0xf12   :  { %1056 = vrot.lane.b32.xlu2 %v1054_v46, %s3025_s12 }
 0xf13   :  { %1070 = vrot.lane.b32.xlu0 %v1068_v48, %s3025_s12 }
 0xf6c   :  { %v1057_v22 = vpop.permute.xlu2 %1056 }
 0xf6d   :  { %v3358_v28 = vadd.f32 %v1057_v22, %v1049_v53 }
 0xf6f   :  { %2794 = vtanh.f32 %v3358_v28  ;;  %v1178_v43 = vrot.slane %v3358_v28, 6 }
 0xf75   :  { %v2795_v55 = vpop.eup %2794 }
 0xf76   :  { %1076 = vrot.lane.b32.xlu1 %v2795_v55, %s3024_s3 }
 0xf85   :  { %v1071_v62 = vpop.permute.xlu0 %1070 }
 0xf86   :  { %v3363_v59 = vadd.f32 %v1071_v62, %v1063_v60 }
 0xf88   :  { %2796 = vtanh.f32 %v3363_v59 }
 0xf8e   :  { %v2797_v61 = vpop.eup %2796 }
 0xf8f   :  { %1082 = vrot.lane.b32.xlu2 %v2797_v61, %s3024_s3 }
 0xfe8   :  { %v1077_v0 = vpop.permute.xlu1 %1076 }
 0xfe9   :  { %v1083_v51 = vpop.permute.xlu2 %1082  ;;  %v1079_v1 = vmul.f32 %v1077_v0, %v1027_v42 }
 0xfea   :  { %v1085_v63 = vmul.f32 %v1083_v51, %v1042_v45  ;;  %v1192_v45 = vrot.slane %v3363_v59, 6  ;;  %v2559_v59 = vld [vmem:[#allocation6 + $0x30] sm:$0xf]  ;;  %v2664_v51 = vld [vmem:[#allocation6 + $0x34] sm:$0xf0] }
 0xfeb   :  { %1087 = vrot.lane.b32.xlu0 %v1079_v1, %s3025_s12  ;;  %v2663_v1 = vld [vmem:[#allocation6 + $0x34] sm:$0xf] }
 0xfec   :  { %1091 = vrot.lane.b32.xlu1 %v1085_v63, %s3024_s3  ;;  %v2560_v63 = vor.u32 %v2664_v51, %v2559_v59 }
 0xfee   :  { %1299 = vmatpush.bf16.msra.mxu2 %v2560_v63 }
0x105d   :  { %v1088_v2 = vpop.permute.xlu0 %1087 }
0x105e   :  { %1095 = vst.msk [vmem:[#allocation2 + $0x8] sm:$0x30] %vm570_vm4, %v1088_v2  ;;  %v1092_v54 = vpop.permute.xlu1 %1091 }
0x105f   :  { %v1094_v57 = vsel %vm302_vm10, %v1088_v2, %v1092_v54  ;;  %1096 = vst.msk [vmem:[#allocation2 - $0x2] sm:$0x30] %vm572_vm3, %v1092_v54  ;;  %v2561_v2 = vld [vmem:[#allocation6 + $0x38] sm:$0xf0]  ;;  %v2593_v54 = vld [vmem:[#allocation8 + $0x30] sm:$0xf] }
0x1060   :  { %v1097_v4 = vpack.c.bf16 %v1094_v57, %v1094_v57  ;;  %v2672_v57 = vld [vmem:[#allocation8 + $0x34] sm:$0xf0] }
0x1062   :  { %v1099_v5 = vrot.slane %v1097_v4, 2  ;;  %v2564_v4 = vor.u32 %v2663_v1, %v2561_v2 }
0x1064   :  { %2529 = vmatmul.msk.bf16.vlgmr.msra.gmra.mxu0 %vm185_vm12, %v1099_v5  ;;  %2530 = vmatmul.msk.bf16.vlgmr.msra.gmra.mxu1 %vm185_vm12, %v1099_v5  ;;  %v3387_v5 = vor.u32 %v2672_v57, %v2593_v54 }
0x1065   :  { %1313 = vmatpush.bf16.msra.mxu3 %v2564_v4 }
0x1066   :  { %1367 = vmatpush.bf16.msrb.mxu0 %v3387_v5 }
0x10e1   :  { %v1112_v58 = vpop.f32.mrf.mxu0  ;;  %v1125_v49 = vpop.f32.mrf.mxu1 }
0x10e2   :  { %v1131_v6 = vrot.slane %v1112_v58, 2  ;;  %v1132_v9 = vrot.slane %v1125_v49, 2  ;;  %v2551_v58 = vld [vmem:[#allocation6 + $0x20] sm:$0xf]  ;;  %v2662_v49 = vld [vmem:[#allocation6 + $0x24] sm:$0xf0] }
0x10e4   :  { %v1135_v13 = vadd.f32 %v1131_v6, %v3298_v10  ;;  %v1136_v14 = vadd.f32 %v1132_v9, %v865_v8  ;;  %v2661_v6 = vld [vmem:[#allocation6 + $0x24] sm:$0xf]  ;;  %v2552_v9 = vor.u32 %v2662_v49, %v2551_v58 }
0x10e6   :  { %2798 = vtanh.f32 %v1135_v13  ;;  %v2531_v24 = vmul.f32 -1.442695, %v1135_v13  ;;  %v2532_v10 = vmul.f32 -1.442695, %v1136_v14  ;;  %v2553_v13 = vld [vmem:[#allocation6 + $0x28] sm:$0xf0]  ;;  %1300 = vmatpush.bf16.msra.mxu2 %v2552_v9 }
0x10e7   :  { %2800 = vtanh.f32 %v1136_v14  ;;  %v2585_v14 = vld [vmem:[#allocation8 + $0x20] sm:$0xf] }
0x10e8   :  { %2802 = vpow2.f32 %v2531_v24  ;;  %v2660_v24 = vld [vmem:[#allocation6 + $0x14] sm:$0xf0] }
0x10e9   :  { %v1114_v7 = vpop.f32.mrf.mxu0  ;;  %v1127_v3 = vpop.f32.mrf.mxu1 }
0x10ea   :  { %v2670_v7 = vld [vmem:[#allocation8 + $0x24] sm:$0xf0]  ;;  %v2556_v3 = vor.u32 %v2661_v6, %v2553_v13 }
0x10ec   :  { %v2799_v11 = vpop.eup %2798  ;;  %1314 = vmatpush.bf16.msra.mxu3 %v2556_v3 }
0x10ed   :  { %v2801_v15 = vpop.eup %2800  ;;  %1182 = vrot.lane.b32.xlu2 %v2799_v11, %s3024_s3  ;;  %v3390_v11 = vor.u32 %v2670_v7, %v2585_v14 }
0x10ee   :  { %1196 = vrot.lane.b32.xlu0 %v2801_v15, %s3024_s3  ;;  %v2803_v16 = vpop.eup %2802  ;;  %v2543_v15 = vld [vmem:[#allocation6 + $0x10] sm:$0xf] }
0x10ef   :  { %v1143_v32 = vadd.f32 1.0, %v2803_v16  ;;  %1368 = vmatpush.bf16.msrb.mxu0 %v3390_v11  ;;  %v2659_v16 = vld [vmem:[#allocation6 + $0x14] sm:$0xf] }
0x10f1   :  { %2804 = vrcp.f32 %v1143_v32  ;;  %v1156_v30 = vand.u32 2147483648, %v1143_v32  ;;  %vm1150_vm14 = vweird.f32 %v1143_v32  ;;  %v1154_v44 = vand.u32 2147483647, %v1143_v32 }
0x10f2   :  { %2806 = vpow2.f32 %v2532_v10  ;;  %v2577_v10 = vld [vmem:[#allocation8 + $0x10] sm:$0xf] }
0x10f3   :  { %v1157_v17 = vor.u32 1.1754944e-38, %v1156_v30  ;;  %vm1155_vm0 = vcmp.eq.f32.partialorder %v1154_v44, 8.507059e+37  ;;  %v2537_v44 = vld [vmem:[#allocation6 + $0x8] sm:$0xf0] }
0x10f7   :  { %v2805_v36 = vpop.eup %2804 }
0x10f8   :  { %v1146_v47 = vmul.f32 %v2805_v36, %v1143_v32  ;;  %v2807_v23 = vpop.eup %2806  ;;  %vm1151_vm6 = vweird.f32 %v2805_v36  ;;  %v2544_v32 = vor.u32 %v2660_v24, %v2543_v15 }
0x10f9   :  { %v1144_v29 = vadd.f32 1.0, %v2807_v23  ;;  %vm1152_vm15 = vmor %vm1150_vm14, %vm1151_vm6  ;;  %v2535_v23 = vld [vmem:[#allocation6] sm:$0xf]  ;;  %vm3714_vm6 = vcmask 523526  }
0x10fa   :  { %v1147_v35 = vsub.f32 1.0, %v1146_v47  ;;  %v2668_v47 = vld [vmem:[#allocation8 + $0x14] sm:$0xf0]  ;;  %1301 = vmatpush.bf16.msra.mxu2 %v2544_v32 }
0x10fb   :  { %2808 = vrcp.f32 %v1144_v29  ;;  %v1171_v27 = vand.u32 2147483648, %v1144_v29  ;;  %vm1165_vm2 = vweird.f32 %v1144_v29  ;;  %v1169_v33 = vand.u32 2147483647, %v1144_v29 }
0x10fc   :  { %v1148_v8 = vmul.f32 %v2805_v36, %v1147_v35 }
0x10fd   :  { %v1172_v37 = vor.u32 1.1754944e-38, %v1171_v27  ;;  %vm1170_vm8 = vcmp.eq.f32.partialorder %v1169_v33, 8.507059e+37  ;;  %v2667_v33 = vld [vmem:[#allocation8 + $0x14] sm:$0xf] }
0x10fe   :  { %v1149_v12 = vadd.f32 %v2805_v36, %v1148_v8  ;;  %v3393_v8 = vor.u32 %v2668_v47, %v2577_v10 }
0x1100   :  { %v1153_v39 = vsel %vm1152_vm15, %v2805_v36, %v1149_v12  ;;  %v2545_v36 = vld [vmem:[#allocation6 + $0x18] sm:$0xf0]  ;;  %v2657_v12 = vld [vmem:[#allocation6 + $0x4] sm:$0xf]  ;;  %1369 = vmatpush.bf16.msrb.mxu0 %v3393_v8 }
0x1101   :  { %v1158_v50 = vsel %vm1155_vm0, %v1157_v17, %v1153_v39  ;;  %v2809_v19 = vpop.eup %2808  ;;  %v2548_v35 = vor.u32 %v2659_v16, %v2545_v36  ;;  %v2569_v39 = vld [vmem:[#allocation8] sm:$0xf]  ;;  %v2666_v17 = vld [vmem:[#allocation8 + $0x4] sm:$0xf0] }
0x1102   :  { %v1161_v20 = vmul.f32 %v2809_v19, %v1144_v29  ;;  %vm1166_vm1 = vweird.f32 %v2809_v19  ;;  %v1180_v46 = vmul.f32 %v1178_v43, %v1158_v50  ;;  %v2658_v29 = vld [vmem:[#allocation6 + $0x4] sm:$0xf0] }
0x1103   :  { %vm1167_vm13 = vmor %vm1165_vm2, %vm1166_vm1  ;;  %v2536_v30 = vor.u32 %v2658_v29, %v2535_v23  ;;  %1315 = vmatpush.bf16.msra.mxu3 %v2548_v35 }
0x1104   :  { %v1162_v21 = vsub.f32 1.0, %v1161_v20  ;;  %v2595_v20 = vld [vmem:[#allocation8 + $0x38] sm:$0xf0] }
0x1105   :  { %1302 = vmatpush.bf16.msra.mxu2 %v2536_v30 }
0x1106   :  { %v1163_v25 = vmul.f32 %v2809_v19, %v1162_v21  ;;  %v2669_v21 = vld [vmem:[#allocation8 + $0x24] sm:$0xf] }
0x1108   :  { %v1164_v26 = vadd.f32 %v2809_v19, %v1163_v25 }
0x1109   :  { %1487 = vmatpush.bf16.msrb.mxu2 %v3387_v5 }
0x110a   :  { %v1168_v34 = vsel %vm1167_vm13, %v2809_v19, %v1164_v26  ;;  %v2671_v19 = vld [vmem:[#allocation8 + $0x34] sm:$0xf]  ;;  %v2587_v26 = vld [vmem:[#allocation8 + $0x28] sm:$0xf0] }
0x110b   :  { %v1173_v41 = vsel %vm1170_vm8, %v1172_v37, %v1168_v34  ;;  %v3403_v25 = vor.u32 %v2671_v19, %v2595_v20  ;;  %v3406_v27 = vor.u32 %v2669_v21, %v2587_v26  ;;  %v2579_v34 = vld [vmem:[#allocation8 + $0x18] sm:$0xf0] }
0x110c   :  { %v1194_v48 = vmul.f32 %v1192_v45, %v1173_v41  ;;  %v3412_v37 = vor.u32 %v2667_v33, %v2579_v34 }
0x110d   :  { %1380 = vmatpush.bf16.msrb.mxu1 %v3403_v25  ;;  %1488 = vmatpush.bf16.msrb.mxu2 %v3390_v11 }
0x1111   :  { %1381 = vmatpush.bf16.msrb.mxu1 %v3406_v27  ;;  %1489 = vmatpush.bf16.msrb.mxu2 %v3393_v8 }
0x1115   :  { %1382 = vmatpush.bf16.msrb.mxu1 %v3412_v37 }
0x1147   :  { %v1183_v40 = vpop.permute.xlu2 %1182 }
0x1148   :  { %v1185_v18 = vmul.f32 %v1183_v40, %v1158_v50  ;;  %v2540_v40 = vor.u32 %v2657_v12, %v2537_v44 }
0x114a   :  { %1187 = vrot.lane.b32.xlu1 %v1185_v18, %s3025_s12  ;;  %1316 = vmatpush.bf16.msra.mxu3 %v2540_v40 }
0x114e   :  { %1500 = vmatpush.bf16.msrb.mxu3 %v3403_v25 }
0x1152   :  { %1501 = vmatpush.bf16.msrb.mxu3 %v3406_v27 }
0x1156   :  { %1502 = vmatpush.bf16.msrb.mxu3 %v3412_v37 }
0x1160   :  { %v1197_v38 = vpop.permute.xlu0 %1196 }
0x1161   :  { %v1199_v42 = vmul.f32 %v1197_v38, %v1173_v41  ;;  %v2665_v38 = vld [vmem:[#allocation8 + $0x4] sm:$0xf] }
0x1163   :  { %1201 = vrot.lane.b32.xlu2 %v1199_v42, %s3025_s12 }
0x11bc   :  { %v1188_v52 = vpop.permute.xlu1 %1187 }
0x11bd   :  { %v1202_v53 = vpop.permute.xlu2 %1201  ;;  %v1190_v22 = vadd.f32 %v1188_v52, %v1180_v46 }
0x11be   :  { %v1204_v55 = vadd.f32 %v1202_v53, %v1194_v48 }
0x11bf   :  { %2810 = vtanh.f32 %v1190_v22 }
0x11c0   :  { %2812 = vtanh.f32 %v1204_v55  ;;  %v3452_v55 = vld [vmem:[%s3708_s6] sm:$0x3] }
0x11c5   :  { %v2811_v56 = vpop.eup %2810 }
0x11c6   :  { %v2813_v60 = vpop.eup %2812  ;;  %1207 = vrot.lane.b32.xlu0 %v2811_v56, %s3024_s3  ;;  %v1248_v56 = vperm.slane %v3452_v55, 0 }
0x11c7   :  { %1213 = vrot.lane.b32.xlu1 %v2813_v60, %s3024_s3  ;;  %v1249_v60 = vperm.slane %v3452_v55, 1 }
0x1238   :  { %v1208_v62 = vpop.permute.xlu0 %1207 }
0x1239   :  { %v1214_v61 = vpop.permute.xlu1 %1213  ;;  %v1210_v0 = vmul.f32 %v1208_v62, %v1158_v50  ;;  %v3396_v50 = vor.u32 %v2666_v17, %v2569_v39 }
0x123a   :  { %v1216_v28 = vmul.f32 %v1214_v61, %v1173_v41  ;;  %v2571_v41 = vld [vmem:[#allocation8 + $0x8] sm:$0xf0] }
0x123b   :  { %1218 = vrot.lane.b32.xlu2 %v1210_v0, %s3025_s12  ;;  %1370 = vmatpush.bf16.msrb.mxu0 %v3396_v50  ;;  %v3418_v42 = vor.u32 %v2665_v38, %v2571_v41 }
0x123c   :  { %1223 = vrot.lane.b32.xlu0 %v1216_v28, %s3024_s3  ;;  %1490 = vmatpush.bf16.msrb.mxu2 %v3396_v50 }
0x123d   :  { %1383 = vmatpush.bf16.msrb.mxu1 %v3418_v42  ;;  %1503 = vmatpush.bf16.msrb.mxu3 %v3418_v42 }
0x123e   :  { %1371 = vmatmul.bf16.vlgmr.msrb.gmra.mxu0 %v3023_v31 }
0x123f   :  { %1620 = vmatpush.bf16.msra.mxu0 %v3387_v5 }
0x1240   :  { %1384 = vmatmul.bf16.vlgmr.msrb.gmra.mxu1 %v3023_v31 }
0x1241   :  { %1633 = vmatpush.bf16.msra.mxu1 %v3403_v25 }
0x1243   :  { %1621 = vmatpush.bf16.msra.mxu0 %v3390_v11 }
0x1245   :  { %1634 = vmatpush.bf16.msra.mxu1 %v3406_v27 }
0x1247   :  { %1622 = vmatpush.bf16.msra.mxu0 %v3393_v8 }
0x1249   :  { %1635 = vmatpush.bf16.msra.mxu1 %v3412_v37 }
0x124b   :  { %1623 = vmatpush.bf16.msra.mxu0 %v3396_v50 }
0x124d   :  { %1636 = vmatpush.bf16.msra.mxu1 %v3418_v42 }
0x124f   :  { %1882 = vmatpush.bf16.msrb.mxu0 %v3387_v5 }
0x1251   :  { %1895 = vmatpush.bf16.msrb.mxu1 %v3403_v25 }
0x1253   :  { %1883 = vmatpush.bf16.msrb.mxu0 %v3390_v11 }
0x1255   :  { %1896 = vmatpush.bf16.msrb.mxu1 %v3406_v27 }
0x1257   :  { %1884 = vmatpush.bf16.msrb.mxu0 %v3393_v8 }
0x1259   :  { %1897 = vmatpush.bf16.msrb.mxu1 %v3412_v37 }
0x125b   :  { %1885 = vmatpush.bf16.msrb.mxu0 %v3396_v50 }
0x125d   :  { %1898 = vmatpush.bf16.msrb.mxu1 %v3418_v42 }
0x1295   :  { %v1219_v18 = vpop.permute.xlu2 %1218 }
0x1296   :  { %1221 = vst.msk [vmem:[#allocation2 + $0x8] sm:$0xc0] %vm703_vm7, %v1219_v18 }
0x129d   :  { %v1245_v46 = vld [vmem:[#allocation2 + $0x8] sm:$0xff] }
0x12ae   :  { %v1224_v43 = vpop.permute.xlu0 %1223 }
0x12af   :  { %1226 = vst.msk [vmem:[#allocation2 - $0x6] sm:$0xc0] %vm3714_vm6, %v1224_v43 }
0x12b6   :  { %v1244_v45 = vld [vmem:[#allocation2] sm:$0xff] }
0x12b7   :  { %v1246_v48 = vpack.c.bf16 %v1245_v46, %v1244_v45 }
0x12b9   :  { %2565 = vmatmul.msk.bf16.vlgmr.msra.gmra.mxu2 %vm185_vm12, %v1246_v48  ;;  %2566 = vmatmul.msk.bf16.vlgmr.msra.gmra.mxu3 %vm185_vm12, %v1246_v48 }
0x12ba   :  { %1751 = vmatpush.bf16.msra.mxu2 %v3387_v5  ;;  %1764 = vmatpush.bf16.msra.mxu3 %v3403_v25 }
0x12bb   :  { %v1372_v31 = vpop.f32.mrf.mxu0 }
0x12bd   :  { %v1385_v53 = vpop.f32.mrf.mxu1 }
0x12be   :  { %1752 = vmatpush.bf16.msra.mxu2 %v3390_v11  ;;  %1765 = vmatpush.bf16.msra.mxu3 %v3406_v27 }
0x12c2   :  { %1753 = vmatpush.bf16.msra.mxu2 %v3393_v8  ;;  %1766 = vmatpush.bf16.msra.mxu3 %v3412_v37 }
0x12c3   :  { %v1374_v52 = vpop.f32.mrf.mxu0 }
0x12c5   :  { %v1387_v22 = vpop.f32.mrf.mxu1 }
0x12c6   :  { %1754 = vmatpush.bf16.msra.mxu2 %v3396_v50  ;;  %1767 = vmatpush.bf16.msra.mxu3 %v3418_v42 }
0x133c   :  { %v1304_v62 = vpop.f32.mrf.mxu2  ;;  %v1318_v61 = vpop.f32.mrf.mxu3 }
0x133d   :  { %v3458_v0 = vadd.f32 %v1304_v62, %v1248_v56  ;;  %v3460_v28 = vadd.f32 %v1318_v61, %v1249_v60 }
0x133f   :  { %v1392_v59 = vadd.f32 %v1372_v31, %v3458_v0 }
0x1341   :  { %2814 = vtanh.f32 %v1392_v59  ;;  %v2599_v6 = vmul.f32 -1.442695, %v1392_v59 }
0x1344   :  { %v1320_v51 = vpop.f32.mrf.mxu3 }
0x1345   :  { %v3463_v1 = vadd.f32 %v1320_v51, %v1249_v60  ;;  %v3495_v51 = vpop.f32.mrf.mxu2 }
0x1347   :  { %v2815_v63 = vpop.eup %2814  ;;  %v1390_v2 = vrot.slane %v3463_v1, 6 }
0x1348   :  { %1436 = vrot.lane.b32.xlu1 %v2815_v63, %s3024_s3 }
0x1349   :  { %v1393_v54 = vadd.f32 %v1390_v2, %v1385_v53 }
0x134b   :  { %2816 = vtanh.f32 %v1393_v54  ;;  %v2600_v4 = vmul.f32 -1.442695, %v1393_v54 }
0x134d   :  { %2818 = vpow2.f32 %v2600_v4 }
0x1351   :  { %v2817_v57 = vpop.eup %2816 }
0x1352   :  { %1447 = vrot.lane.b32.xlu2 %v2817_v57, %s3024_s3  ;;  %v1509_v57 = vrot.slane %v3463_v1, 2 }
0x1353   :  { %v2819_v58 = vpop.eup %2818 }
0x1354   :  { %v1401_v49 = vadd.f32 1.0, %v2819_v58 }
0x1356   :  { %2820 = vrcp.f32 %v1401_v49  ;;  %v1428_v32 = vand.u32 2147483648, %v1401_v49  ;;  %vm1422_vm15 = vweird.f32 %v1401_v49  ;;  %v1426_v36 = vand.u32 2147483647, %v1401_v49 }
0x1357   :  { %2822 = vpow2.f32 %v2599_v6 }
0x1358   :  { %v1429_v35 = vor.u32 1.1754944e-38, %v1428_v32  ;;  %vm1427_vm1 = vcmp.eq.f32.partialorder %v1426_v36, 8.507059e+37 }
0x135c   :  { %v2821_v9 = vpop.eup %2820 }
0x135d   :  { %v2823_v13 = vpop.eup %2822  ;;  %v1418_v14 = vmul.f32 %v2821_v9, %v1401_v49  ;;  %vm1423_vm14 = vweird.f32 %v2821_v9 }
0x135e   :  { %v1400_v7 = vadd.f32 1.0, %v2823_v13  ;;  %vm1424_vm0 = vmor %vm1422_vm15, %vm1423_vm14 }
0x135f   :  { %v1419_v3 = vsub.f32 1.0, %v1418_v14 }
0x1360   :  { %2824 = vrcp.f32 %v1400_v7  ;;  %v1413_v17 = vand.u32 2147483648, %v1400_v7  ;;  %vm1407_vm13 = vweird.f32 %v1400_v7  ;;  %v1411_v40 = vand.u32 2147483647, %v1400_v7 }
0x1361   :  { %v1420_v15 = vmul.f32 %v2821_v9, %v1419_v3 }
0x1362   :  { %v1414_v19 = vor.u32 1.1754944e-38, %v1413_v17  ;;  %vm1412_vm6 = vcmp.eq.f32.partialorder %v1411_v40, 8.507059e+37 }
0x1363   :  { %v1421_v16 = vadd.f32 %v2821_v9, %v1420_v15 }
0x1365   :  { %v1425_v47 = vsel %vm1424_vm0, %v2821_v9, %v1421_v16 }
0x1366   :  { %v2825_v24 = vpop.eup %2824  ;;  %v1430_v12 = vsel %vm1427_vm1, %v1429_v35, %v1425_v47 }
0x1367   :  { %v1403_v10 = vmul.f32 %v2825_v24, %v1400_v7  ;;  %vm1408_vm2 = vweird.f32 %v2825_v24  ;;  %v1445_v33 = vmul.f32 0.0, %v1430_v12 }
0x1368   :  { %vm1409_vm8 = vmor %vm1407_vm13, %vm1408_vm2 }
0x1369   :  { %v1404_v23 = vsub.f32 1.0, %v1403_v10 }
0x136b   :  { %v1405_v44 = vmul.f32 %v2825_v24, %v1404_v23 }
0x136d   :  { %v1406_v39 = vadd.f32 %v2825_v24, %v1405_v44 }
0x136f   :  { %v1410_v18 = vsel %vm1409_vm8, %v2825_v24, %v1406_v39 }
0x1370   :  { %v1415_v21 = vsel %vm1412_vm6, %v1414_v19, %v1410_v18 }
0x1371   :  { %v1434_v43 = vmul.f32 0.0, %v1415_v21 }
0x13ac   :  { %v1448_v29 = vpop.permute.xlu2 %1447 }
0x13ad   :  { %v1450_v30 = vmul.f32 %v1448_v29, %v1430_v12 }
0x13af   :  { %1452 = vrot.lane.b32.xlu1 %v1450_v30, %s3025_s12 }
0x13ba   :  { %v1437_v20 = vpop.permute.xlu1 %1436 }
0x13bb   :  { %v1439_v26 = vmul.f32 %v1437_v20, %v1415_v21 }
0x13bd   :  { %1441 = vrot.lane.b32.xlu0 %v1439_v26, %s3025_s12 }
0x1421   :  { %v1453_v34 = vpop.permute.xlu1 %1452 }
0x1422   :  { %v3472_v38 = vadd.f32 %v1453_v34, %v1445_v33 }
0x1424   :  { %2826 = vtanh.f32 %v3472_v38 }
0x142a   :  { %v2827_v41 = vpop.eup %2826 }
0x142b   :  { %1464 = vrot.lane.b32.xlu0 %v2827_v41, %s3024_s3 }
0x142f   :  { %v1442_v45 = vpop.permute.xlu0 %1441 }
0x1430   :  { %v3476_v46 = vadd.f32 %v1442_v45, %v1434_v43 }
0x1432   :  { %2828 = vtanh.f32 %v3476_v46 }
0x1438   :  { %v2829_v48 = vpop.eup %2828 }
0x1439   :  { %1458 = vrot.lane.b32.xlu2 %v2829_v48, %s3024_s3 }
0x1493   :  { %v1459_v31 = vpop.permute.xlu2 %1458 }
0x1494   :  { %v1461_v52 = vmul.f32 %v1459_v31, %v1415_v21 }
0x1496   :  { %1469 = vrot.lane.b32.xlu1 %v1461_v52, %s3025_s12 }
0x149d   :  { %v1465_v53 = vpop.permute.xlu0 %1464 }
0x149e   :  { %v1467_v22 = vmul.f32 %v1465_v53, %v1430_v12  ;;  %v1560_v53 = vrot.slane %v3476_v46, 6 }
0x14a0   :  { %1473 = vrot.lane.b32.xlu2 %v1467_v22, %s3024_s3 }
0x14fa   :  { %v1474_v60 = vpop.permute.xlu2 %1473 }
0x14fb   :  { %1478 = vst.msk [vmem:[#allocation3 + $0xe] sm:$0x3] %vm306_vm11, %v1474_v60 }
0x1508   :  { %v1470_v62 = vpop.permute.xlu1 %1469 }
0x1509   :  { %v1476_v61 = vsel %vm302_vm10, %v1470_v62, %v1474_v60  ;;  %1477 = vst.msk [vmem:[#allocation3] sm:$0x3] %vm304_vm9, %v1470_v62 }
0x150a   :  { %v1479_v59 = vpack.c.bf16 %v1476_v61, %v1476_v61 }
0x150c   :  { %2601 = vmatmul.msk.bf16.vlgmr.msrb.gmra.mxu2 %vm185_vm12, %v1479_v59  ;;  %2602 = vmatmul.msk.bf16.vlgmr.msrb.gmra.mxu3 %vm185_vm12, %v1479_v59  ;;  %v1574_v59 = vrot.slane %v3472_v38, 6 }
0x150d   :  { %2021 = vmatpush.bf16.msrb.mxu3 %v3403_v25  ;;  %2008 = vmatpush.bf16.msrb.mxu2 %v3387_v5 }
0x1511   :  { %2022 = vmatpush.bf16.msrb.mxu3 %v3406_v27  ;;  %2009 = vmatpush.bf16.msrb.mxu2 %v3390_v11 }
0x1515   :  { %2023 = vmatpush.bf16.msrb.mxu3 %v3412_v37  ;;  %2010 = vmatpush.bf16.msrb.mxu2 %v3393_v8 }
0x1519   :  { %2024 = vmatpush.bf16.msrb.mxu3 %v3418_v42  ;;  %2011 = vmatpush.bf16.msrb.mxu2 %v3396_v50 }
0x158f   :  { %v1492_v63 = vpop.f32.mrf.mxu2  ;;  %v1505_v54 = vpop.f32.mrf.mxu3 }
0x1590   :  { %v1513_v4 = vrot.slane %v1492_v63, 6  ;;  %v1514_v58 = vrot.slane %v1505_v54, 6 }
0x1592   :  { %v1517_v49 = vadd.f32 %v1513_v4, %v3458_v0  ;;  %v1518_v6 = vadd.f32 %v1514_v58, %v1509_v57 }
0x1594   :  { %2830 = vtanh.f32 %v1517_v49  ;;  %v2603_v3 = vmul.f32 -1.442695, %v1517_v49  ;;  %v2604_v15 = vmul.f32 -1.442695, %v1518_v6 }
0x1595   :  { %2832 = vtanh.f32 %v1518_v6 }
0x1596   :  { %2834 = vpow2.f32 %v2603_v3 }
0x1597   :  { %v1494_v9 = vpop.f32.mrf.mxu2  ;;  %v1507_v13 = vpop.f32.mrf.mxu3  ;;  %2836 = vpow2.f32 %v2604_v15 }
0x159a   :  { %v2831_v14 = vpop.eup %2830 }
0x159b   :  { %v2833_v7 = vpop.eup %2832  ;;  %1564 = vrot.lane.b32.xlu0 %v2831_v14, %s3024_s3 }
0x159c   :  { %1578 = vrot.lane.b32.xlu1 %v2833_v7, %s3024_s3  ;;  %v2835_v24 = vpop.eup %2834 }
0x159d   :  { %v2837_v16 = vpop.eup %2836  ;;  %v1525_v32 = vadd.f32 1.0, %v2835_v24 }
0x159e   :  { %v1526_v36 = vadd.f32 1.0, %v2837_v16 }
0x159f   :  { %2838 = vrcp.f32 %v1525_v32  ;;  %v1538_v40 = vand.u32 2147483648, %v1525_v32  ;;  %vm1532_vm0 = vweird.f32 %v1525_v32  ;;  %v1536_v19 = vand.u32 2147483647, %v1525_v32 }
0x15a0   :  { %2840 = vrcp.f32 %v1526_v36  ;;  %v1553_v18 = vand.u32 2147483648, %v1526_v36  ;;  %vm1547_vm1 = vweird.f32 %v1526_v36  ;;  %v1551_v20 = vand.u32 2147483647, %v1526_v36 }
0x15a1   :  { %v1539_v33 = vor.u32 1.1754944e-38, %v1538_v40  ;;  %vm1537_vm8 = vcmp.eq.f32.partialorder %v1536_v19, 8.507059e+37 }
0x15a2   :  { %v1554_v34 = vor.u32 1.1754944e-38, %v1553_v18  ;;  %vm1552_vm6 = vcmp.eq.f32.partialorder %v1551_v20, 8.507059e+37 }
0x15a5   :  { %v2839_v10 = vpop.eup %2838 }
0x15a6   :  { %v2841_v47 = vpop.eup %2840  ;;  %v1528_v35 = vmul.f32 %v2839_v10, %v1525_v32  ;;  %vm1533_vm14 = vweird.f32 %v2839_v10 }
0x15a7   :  { %v1543_v23 = vmul.f32 %v2841_v47, %v1526_v36  ;;  %vm1548_vm15 = vweird.f32 %v2841_v47  ;;  %vm1534_vm2 = vmor %vm1532_vm0, %vm1533_vm14  ;;  %vm3715_vm14 = vcmask 519426  }
0x15a8   :  { %v1529_v29 = vsub.f32 1.0, %v1528_v35  ;;  %vm1549_vm13 = vmor %vm1547_vm1, %vm1548_vm15 }
0x15a9   :  { %v1544_v12 = vsub.f32 1.0, %v1543_v23 }
0x15aa   :  { %v1530_v30 = vmul.f32 %v2839_v10, %v1529_v29 }
0x15ab   :  { %v1545_v44 = vmul.f32 %v2841_v47, %v1544_v12 }
0x15ac   :  { %v1531_v39 = vadd.f32 %v2839_v10, %v1530_v30 }
0x15ad   :  { %v1546_v17 = vadd.f32 %v2841_v47, %v1545_v44 }
0x15ae   :  { %v1535_v21 = vsel %vm1534_vm2, %v2839_v10, %v1531_v39 }
0x15af   :  { %v1550_v26 = vsel %vm1549_vm13, %v2841_v47, %v1546_v17  ;;  %v1540_v43 = vsel %vm1537_vm8, %v1539_v33, %v1535_v21 }
0x15b0   :  { %v1555_v48 = vsel %vm1552_vm6, %v1554_v34, %v1550_v26  ;;  %v1562_v22 = vmul.f32 %v1560_v53, %v1540_v43 }
0x15b1   :  { %v1576_v63 = vmul.f32 %v1574_v59, %v1555_v48 }
0x160d   :  { %v1565_v41 = vpop.permute.xlu0 %1564 }
0x160e   :  { %v1579_v45 = vpop.permute.xlu1 %1578  ;;  %v1567_v31 = vmul.f32 %v1565_v41, %v1540_v43 }
0x160f   :  { %v1581_v52 = vmul.f32 %v1579_v45, %v1555_v48 }
0x1610   :  { %1569 = vrot.lane.b32.xlu2 %v1567_v31, %s3025_s12 }
0x1611   :  { %1583 = vrot.lane.b32.xlu0 %v1581_v52, %s3025_s12 }
0x166a   :  { %v1570_v60 = vpop.permute.xlu2 %1569 }
0x166b   :  { %v3506_v62 = vadd.f32 %v1570_v60, %v1562_v22 }
0x166d   :  { %2842 = vtanh.f32 %v3506_v62 }
0x1673   :  { %v2843_v61 = vpop.eup %2842 }
0x1674   :  { %1589 = vrot.lane.b32.xlu1 %v2843_v61, %s3024_s3 }
0x1683   :  { %v1584_v54 = vpop.permute.xlu0 %1583 }
0x1684   :  { %v3511_v4 = vadd.f32 %v1584_v54, %v1576_v63 }
0x1686   :  { %2844 = vtanh.f32 %v3511_v4 }
0x168c   :  { %v2845_v58 = vpop.eup %2844 }
0x168d   :  { %1595 = vrot.lane.b32.xlu2 %v2845_v58, %s3024_s3 }
0x16e6   :  { %v1590_v46 = vpop.permute.xlu1 %1589 }
0x16e7   :  { %v1596_v49 = vpop.permute.xlu2 %1595  ;;  %v1592_v6 = vmul.f32 %v1590_v46, %v1540_v43 }
0x16e8   :  { %v1598_v9 = vmul.f32 %v1596_v49, %v1555_v48 }
0x16e9   :  { %1600 = vrot.lane.b32.xlu0 %v1592_v6, %s3025_s12  ;;  %v1691_v6 = vrot.slane %v3506_v62, 6 }
0x16ea   :  { %1604 = vrot.lane.b32.xlu1 %v1598_v9, %s3024_s3  ;;  %v1705_v9 = vrot.slane %v3511_v4, 6 }
0x175b   :  { %v1601_v13 = vpop.permute.xlu0 %1600 }
0x175c   :  { %1608 = vst.msk [vmem:[#allocation3] sm:$0xc] %vm437_vm5, %v1601_v13  ;;  %v1605_v38 = vpop.permute.xlu1 %1604 }
0x175d   :  { %v1607_v14 = vsel %vm302_vm10, %v1601_v13, %v1605_v38  ;;  %1609 = vst.msk [vmem:[#allocation3 + $0xa] sm:$0xc] %vm3715_vm14, %v1605_v38 }
0x175e   :  { %v1610_v7 = vpack.c.bf16 %v1607_v14, %v1607_v14 }
0x1760   :  { %v1612_v3 = vrot.slane %v1610_v7, 1 }
0x1762   :  { %2605 = vmatmul.msk.bf16.vlgmr.msra.gmra.mxu0 %vm185_vm12, %v1612_v3  ;;  %2606 = vmatmul.msk.bf16.vlgmr.msra.gmra.mxu1 %vm185_vm12, %v1612_v3 }
0x1763   :  { %2141 = vmatpush.bf16.msra.mxu0 %v3387_v5  ;;  %2154 = vmatpush.bf16.msra.mxu1 %v3403_v25 }
0x1767   :  { %2142 = vmatpush.bf16.msra.mxu0 %v3390_v11  ;;  %2155 = vmatpush.bf16.msra.mxu1 %v3406_v27 }
0x176b   :  { %2143 = vmatpush.bf16.msra.mxu0 %v3393_v8  ;;  %2156 = vmatpush.bf16.msra.mxu1 %v3412_v37 }
0x176f   :  { %2144 = vmatpush.bf16.msra.mxu0 %v3396_v50  ;;  %2157 = vmatpush.bf16.msra.mxu1 %v3418_v42 }
0x17df   :  { %v1625_v15 = vpop.f32.mrf.mxu0  ;;  %v1638_v24 = vpop.f32.mrf.mxu1 }
0x17e0   :  { %v1644_v16 = vrot.slane %v1625_v15, 4  ;;  %v1645_v32 = vrot.slane %v1638_v24, 4 }
0x17e2   :  { %v1648_v36 = vadd.f32 %v1644_v16, %v3458_v0  ;;  %v1649_v10 = vadd.f32 %v1645_v32, %v1390_v2 }
0x17e4   :  { %2846 = vtanh.f32 %v1648_v36  ;;  %v2607_v12 = vmul.f32 -1.442695, %v1648_v36  ;;  %v2608_v17 = vmul.f32 -1.442695, %v1649_v10 }
0x17e5   :  { %2848 = vtanh.f32 %v1649_v10 }
0x17e6   :  { %2850 = vpow2.f32 %v2607_v12 }
0x17e7   :  { %v1627_v47 = vpop.f32.mrf.mxu0  ;;  %v1640_v35 = vpop.f32.mrf.mxu1 }
0x17ea   :  { %v2847_v23 = vpop.eup %2846 }
0x17eb   :  { %v2849_v29 = vpop.eup %2848  ;;  %1695 = vrot.lane.b32.xlu2 %v2847_v23, %s3024_s3 }
0x17ec   :  { %1709 = vrot.lane.b32.xlu0 %v2849_v29, %s3024_s3  ;;  %v2851_v30 = vpop.eup %2850 }
0x17ed   :  { %v1656_v44 = vadd.f32 1.0, %v2851_v30 }
0x17ef   :  { %2852 = vrcp.f32 %v1656_v44  ;;  %v1669_v26 = vand.u32 2147483648, %v1656_v44  ;;  %vm1663_vm0 = vweird.f32 %v1656_v44  ;;  %v1667_v33 = vand.u32 2147483647, %v1656_v44 }
0x17f0   :  { %2854 = vpow2.f32 %v2608_v17 }
0x17f1   :  { %v1670_v41 = vor.u32 1.1754944e-38, %v1669_v26  ;;  %vm1668_vm2 = vcmp.eq.f32.partialorder %v1667_v33, 8.507059e+37 }
0x17f5   :  { %v2853_v39 = vpop.eup %2852 }
0x17f6   :  { %v1659_v40 = vmul.f32 %v2853_v39, %v1656_v44  ;;  %v2855_v19 = vpop.eup %2854  ;;  %vm1664_vm15 = vweird.f32 %v2853_v39 }
0x17f7   :  { %v1657_v20 = vadd.f32 1.0, %v2855_v19  ;;  %vm1665_vm1 = vmor %vm1663_vm0, %vm1664_vm15 }
0x17f8   :  { %v1660_v2 = vsub.f32 1.0, %v1659_v40 }
0x17f9   :  { %2856 = vrcp.f32 %v1657_v20  ;;  %v1684_v61 = vand.u32 2147483648, %v1657_v20  ;;  %vm1678_vm8 = vweird.f32 %v1657_v20  ;;  %v1682_v59 = vand.u32 2147483647, %v1657_v20 }
0x17fa   :  { %v1661_v18 = vmul.f32 %v2853_v39, %v1660_v2 }
0x17fb   :  { %v1685_v54 = vor.u32 1.1754944e-38, %v1684_v61  ;;  %vm1683_vm14 = vcmp.eq.f32.partialorder %v1682_v59, 8.507059e+37 }
0x17fc   :  { %v1662_v21 = vadd.f32 %v2853_v39, %v1661_v18 }
0x17fe   :  { %v1666_v34 = vsel %vm1665_vm1, %v2853_v39, %v1662_v21 }
0x17ff   :  { %v1671_v45 = vsel %vm1668_vm2, %v1670_v41, %v1666_v34  ;;  %v2857_v31 = vpop.eup %2856 }
0x1800   :  { %v1674_v52 = vmul.f32 %v2857_v31, %v1657_v20  ;;  %vm1679_vm13 = vweird.f32 %v2857_v31  ;;  %v1693_v13 = vmul.f32 %v1691_v6, %v1671_v45 }
0x1801   :  { %vm1680_vm6 = vmor %vm1678_vm8, %vm1679_vm13 }
0x1802   :  { %v1675_v53 = vsub.f32 1.0, %v1674_v52 }
0x1804   :  { %v1676_v22 = vmul.f32 %v2857_v31, %v1675_v53 }
0x1806   :  { %v1677_v60 = vadd.f32 %v2857_v31, %v1676_v22 }
0x1808   :  { %v1681_v63 = vsel %vm1680_vm6, %v2857_v31, %v1677_v60 }
0x1809   :  { %v1686_v46 = vsel %vm1683_vm14, %v1685_v54, %v1681_v63 }
0x180a   :  { %v1707_v38 = vmul.f32 %v1705_v9, %v1686_v46 }
0x1845   :  { %v1696_v43 = vpop.permute.xlu2 %1695 }
0x1846   :  { %v1698_v48 = vmul.f32 %v1696_v43, %v1671_v45 }
0x1848   :  { %1700 = vrot.lane.b32.xlu1 %v1698_v48, %s3025_s12 }
0x185e   :  { %v1710_v58 = vpop.permute.xlu0 %1709 }
0x185f   :  { %v1712_v49 = vmul.f32 %v1710_v58, %v1686_v46 }
0x1861   :  { %1714 = vrot.lane.b32.xlu2 %v1712_v49, %s3025_s12 }
0x18ba   :  { %v1701_v14 = vpop.permute.xlu1 %1700 }
0x18bb   :  { %v1715_v7 = vpop.permute.xlu2 %1714  ;;  %v3539_v3 = vadd.f32 %v1701_v14, %v1693_v13 }
0x18bc   :  { %v3541_v15 = vadd.f32 %v1715_v7, %v1707_v38 }
0x18bd   :  { %2858 = vtanh.f32 %v3539_v3  ;;  %v1822_v14 = vrot.slane %v3539_v3, 6 }
0x18be   :  { %2860 = vtanh.f32 %v3541_v15  ;;  %v1836_v49 = vrot.slane %v3541_v15, 6 }
0x18c3   :  { %v2859_v24 = vpop.eup %2858 }
0x18c4   :  { %v2861_v16 = vpop.eup %2860  ;;  %1720 = vrot.lane.b32.xlu0 %v2859_v24, %s3024_s3 }
0x18c5   :  { %1726 = vrot.lane.b32.xlu1 %v2861_v16, %s3024_s3 }
0x1936   :  { %v1721_v62 = vpop.permute.xlu0 %1720 }
0x1937   :  { %v1727_v4 = vpop.permute.xlu1 %1726  ;;  %v1723_v32 = vmul.f32 %v1721_v62, %v1671_v45 }
0x1938   :  { %v1729_v36 = vmul.f32 %v1727_v4, %v1686_v46 }
0x1939   :  { %1731 = vrot.lane.b32.xlu2 %v1723_v32, %s3025_s12 }
0x193a   :  { %1735 = vrot.lane.b32.xlu0 %v1729_v36, %s3024_s3 }
0x1993   :  { %v1732_v10 = vpop.permute.xlu2 %1731 }
0x1994   :  { %1739 = vst.msk [vmem:[#allocation3] sm:$0x30] %vm570_vm4, %v1732_v10 }
0x19ac   :  { %v1736_v47 = vpop.permute.xlu0 %1735 }
0x19ad   :  { %v1738_v35 = vsel %vm302_vm10, %v1732_v10, %v1736_v47  ;;  %1740 = vst.msk [vmem:[#allocation3 + $0x6] sm:$0x30] %vm572_vm3, %v1736_v47 }
0x19ae   :  { %v1741_v23 = vpack.c.bf16 %v1738_v35, %v1738_v35 }
0x19b0   :  { %v1743_v29 = vrot.slane %v1741_v23, 2 }
0x19b2   :  { %2609 = vmatmul.msk.bf16.vlgmr.msra.gmra.mxu2 %vm185_vm12, %v1743_v29  ;;  %2610 = vmatmul.msk.bf16.vlgmr.msra.gmra.mxu3 %vm185_vm12, %v1743_v29  ;;  %v3589_v29 = vadd.f32 %v3495_v51, %v1248_v56 }
0x19b3   :  { %2272 = vmatpush.bf16.msra.mxu2 %v3387_v5  ;;  %2285 = vmatpush.bf16.msra.mxu3 %v3403_v25 }
0x19b7   :  { %2273 = vmatpush.bf16.msra.mxu2 %v3390_v11  ;;  %2286 = vmatpush.bf16.msra.mxu3 %v3406_v27 }
0x19bb   :  { %2274 = vmatpush.bf16.msra.mxu2 %v3393_v8  ;;  %2287 = vmatpush.bf16.msra.mxu3 %v3412_v37 }
0x19bf   :  { %2275 = vmatpush.bf16.msra.mxu2 %v3396_v50  ;;  %2288 = vmatpush.bf16.msra.mxu3 %v3418_v42 }
0x1a35   :  { %v1756_v12 = vpop.f32.mrf.mxu2  ;;  %v1769_v30 = vpop.f32.mrf.mxu3 }
0x1a36   :  { %v1775_v44 = vrot.slane %v1756_v12, 2  ;;  %v1776_v39 = vrot.slane %v1769_v30, 2  ;;  %v1905_v12 = vrot.slane %v3460_v28, 6 }
0x1a38   :  { %v1779_v5 = vadd.f32 %v1775_v44, %v3458_v0  ;;  %v1780_v25 = vadd.f32 %v1776_v39, %v1509_v57 }
0x1a3a   :  { %2862 = vtanh.f32 %v1779_v5  ;;  %v2612_v50 = vmul.f32 -1.442695, %v1780_v25  ;;  %v2611_v0 = vmul.f32 -1.442695, %v1779_v5 }
0x1a3b   :  { %2864 = vtanh.f32 %v1780_v25 }
0x1a3c   :  { %2866 = vpow2.f32 %v2612_v50 }
0x1a3d   :  { %v1758_v11 = vpop.f32.mrf.mxu2  ;;  %v1771_v27 = vpop.f32.mrf.mxu3 }
0x1a40   :  { %v2863_v8 = vpop.eup %2862 }
0x1a41   :  { %v2865_v17 = vpop.eup %2864  ;;  %1826 = vrot.lane.b32.xlu1 %v2863_v8, %s3024_s3 }
0x1a42   :  { %1840 = vrot.lane.b32.xlu2 %v2865_v17, %s3024_s3  ;;  %v2867_v37 = vpop.eup %2866 }
0x1a43   :  { %v1788_v42 = vadd.f32 1.0, %v2867_v37 }
0x1a45   :  { %2868 = vrcp.f32 %v1788_v42  ;;  %v1815_v21 = vand.u32 2147483648, %v1788_v42  ;;  %vm1809_vm0 = vweird.f32 %v1788_v42  ;;  %v1813_v26 = vand.u32 2147483647, %v1788_v42 }
0x1a46   :  { %2870 = vpow2.f32 %v2611_v0 }
0x1a47   :  { %v1816_v34 = vor.u32 1.1754944e-38, %v1815_v21  ;;  %vm1814_vm2 = vcmp.eq.f32.partialorder %v1813_v26, 8.507059e+37 }
0x1a4b   :  { %v2869_v40 = vpop.eup %2868 }
0x1a4c   :  { %v1805_v2 = vmul.f32 %v2869_v40, %v1788_v42  ;;  %v2871_v57 = vpop.eup %2870  ;;  %vm1810_vm15 = vweird.f32 %v2869_v40 }
0x1a4d   :  { %v1787_v19 = vadd.f32 1.0, %v2871_v57  ;;  %vm1811_vm1 = vmor %vm1809_vm0, %vm1810_vm15  ;;  %vm3716_vm15 = vcmask 523526  }
0x1a4e   :  { %v1806_v1 = vsub.f32 1.0, %v1805_v2 }
0x1a4f   :  { %2872 = vrcp.f32 %v1787_v19  ;;  %v1800_v60 = vand.u32 2147483648, %v1787_v19  ;;  %vm1794_vm8 = vweird.f32 %v1787_v19  ;;  %v1798_v61 = vand.u32 2147483647, %v1787_v19 }
0x1a50   :  { %v1807_v18 = vmul.f32 %v2869_v40, %v1806_v1 }
0x1a51   :  { %v1801_v63 = vor.u32 1.1754944e-38, %v1800_v60  ;;  %vm1799_vm14 = vcmp.eq.f32.partialorder %v1798_v61, 8.507059e+37 }
0x1a52   :  { %v1808_v20 = vadd.f32 %v2869_v40, %v1807_v18 }
0x1a54   :  { %v1812_v33 = vsel %vm1811_vm1, %v2869_v40, %v1808_v20 }
0x1a55   :  { %v1817_v43 = vsel %vm1814_vm2, %v1816_v34, %v1812_v33  ;;  %v2873_v45 = vpop.eup %2872 }
0x1a56   :  { %v1790_v31 = vmul.f32 %v2873_v45, %v1787_v19  ;;  %vm1795_vm13 = vweird.f32 %v2873_v45  ;;  %v1838_v6 = vmul.f32 %v1836_v49, %v1817_v43 }
0x1a57   :  { %vm1796_vm6 = vmor %vm1794_vm8, %vm1795_vm13 }
0x1a58   :  { %v1791_v52 = vsub.f32 1.0, %v1790_v31 }
0x1a5a   :  { %v1792_v53 = vmul.f32 %v2873_v45, %v1791_v52 }
0x1a5c   :  { %v1793_v22 = vadd.f32 %v2873_v45, %v1792_v53 }
0x1a5e   :  { %v1797_v59 = vsel %vm1796_vm6, %v2873_v45, %v1793_v22 }
0x1a5f   :  { %v1802_v58 = vsel %vm1799_vm14, %v1801_v63, %v1797_v59 }
0x1a60   :  { %v1824_v7 = vmul.f32 %v1822_v14, %v1802_v58 }
0x1a9c   :  { %v1841_v41 = vpop.permute.xlu2 %1840 }
0x1a9d   :  { %v1843_v48 = vmul.f32 %v1841_v41, %v1817_v43 }
0x1a9f   :  { %1845 = vrot.lane.b32.xlu1 %v1843_v48, %s3025_s12 }
0x1ab3   :  { %v1827_v54 = vpop.permute.xlu1 %1826 }
0x1ab4   :  { %v1829_v46 = vmul.f32 %v1827_v54, %v1802_v58 }
0x1ab6   :  { %1831 = vrot.lane.b32.xlu0 %v1829_v46, %s3025_s12 }
0x1b11   :  { %v1846_v9 = vpop.permute.xlu1 %1845 }
0x1b12   :  { %v3570_v13 = vadd.f32 %v1846_v9, %v1838_v6 }
0x1b14   :  { %2874 = vtanh.f32 %v3570_v13  ;;  %v1964_v6 = vrot.slane %v3570_v13, 6 }
0x1b1a   :  { %v2875_v38 = vpop.eup %2874 }
0x1b1b   :  { %1857 = vrot.lane.b32.xlu0 %v2875_v38, %s3024_s3 }
0x1b28   :  { %v1832_v24 = vpop.permute.xlu0 %1831 }
0x1b29   :  { %v3575_v16 = vadd.f32 %v1832_v24, %v1824_v7 }
0x1b2b   :  { %2876 = vtanh.f32 %v3575_v16  ;;  %v1950_v63 = vrot.slane %v3575_v16, 6 }
0x1b31   :  { %v2877_v62 = vpop.eup %2876 }
0x1b32   :  { %1851 = vrot.lane.b32.xlu2 %v2877_v62, %s3024_s3 }
0x1b8c   :  { %v1852_v15 = vpop.permute.xlu2 %1851 }
0x1b8d   :  { %v1858_v4 = vpop.permute.xlu0 %1857  ;;  %v1854_v32 = vmul.f32 %v1852_v15, %v1802_v58 }
0x1b8e   :  { %v1860_v36 = vmul.f32 %v1858_v4, %v1817_v43 }
0x1b8f   :  { %1862 = vrot.lane.b32.xlu1 %v1854_v32, %s3025_s12 }
0x1b90   :  { %1866 = vrot.lane.b32.xlu2 %v1860_v36, %s3024_s3 }
0x1bea   :  { %v1867_v10 = vpop.permute.xlu2 %1866 }
0x1beb   :  { %1871 = vst.msk [vmem:[#allocation3 + $0x2] sm:$0xc0] %vm3716_vm15, %v1867_v10 }
0x1c01   :  { %v1863_v3 = vpop.permute.xlu1 %1862 }
0x1c02   :  { %v1869_v47 = vsel %vm302_vm10, %v1863_v3, %v1867_v10  ;;  %1870 = vst.msk [vmem:[#allocation3] sm:$0xc0] %vm703_vm7, %v1863_v3 }
0x1c03   :  { %v1872_v35 = vpack.c.bf16 %v1869_v47, %v1869_v47  ;;  %v2030_v47 = vrot.slane %v3460_v28, 2 }
0x1c05   :  { %v1874_v23 = vrot.slane %v1872_v35, 3 }
0x1c07   :  { %2613 = vmatmul.msk.bf16.vlgmr.msrb.gmra.mxu0 %vm185_vm12, %v1874_v23  ;;  %2614 = vmatmul.msk.bf16.vlgmr.msrb.gmra.mxu1 %vm185_vm12, %v1874_v23 }
0x1c84   :  { %v1887_v30 = vpop.f32.mrf.mxu0  ;;  %v1900_v44 = vpop.f32.mrf.mxu1 }
0x1c85   :  { %v1907_v39 = vadd.f32 %v1887_v30, %v3589_v29  ;;  %v1908_v5 = vadd.f32 %v1905_v12, %v1900_v44 }
0x1c87   :  { %2878 = vtanh.f32 %v1907_v39  ;;  %v2615_v55 = vmul.f32 -1.442695, %v1907_v39  ;;  %v2616_v56 = vmul.f32 -1.442695, %v1908_v5 }
0x1c88   :  { %2880 = vtanh.f32 %v1908_v5 }
0x1c89   :  { %2882 = vpow2.f32 %v2615_v55 }
0x1c8a   :  { %2884 = vpow2.f32 %v2616_v56 }
0x1c8c   :  { %v1889_v25 = vpop.f32.mrf.mxu0  ;;  %v1902_v11 = vpop.f32.mrf.mxu1 }
0x1c8d   :  { %v2879_v27 = vpop.eup %2878 }
0x1c8e   :  { %v2881_v8 = vpop.eup %2880  ;;  %1954 = vrot.lane.b32.xlu0 %v2879_v27, %s3024_s3 }
0x1c8f   :  { %1968 = vrot.lane.b32.xlu1 %v2881_v8, %s3024_s3  ;;  %v2883_v51 = vpop.eup %2882 }
0x1c90   :  { %v2885_v17 = vpop.eup %2884  ;;  %v1915_v50 = vadd.f32 1.0, %v2883_v51 }
0x1c91   :  { %v1916_v37 = vadd.f32 1.0, %v2885_v17 }
0x1c92   :  { %2886 = vrcp.f32 %v1915_v50  ;;  %v1928_v26 = vand.u32 2147483648, %v1915_v50  ;;  %vm1922_vm2 = vweird.f32 %v1915_v50  ;;  %v1926_v34 = vand.u32 2147483647, %v1915_v50 }
0x1c93   :  { %2888 = vrcp.f32 %v1916_v37  ;;  %v1943_v33 = vand.u32 2147483648, %v1916_v37  ;;  %vm1937_vm13 = vweird.f32 %v1916_v37  ;;  %v1941_v41 = vand.u32 2147483647, %v1916_v37 }
0x1c94   :  { %v1929_v48 = vor.u32 1.1754944e-38, %v1928_v26  ;;  %vm1927_vm14 = vcmp.eq.f32.partialorder %v1926_v34, 8.507059e+37 }
0x1c95   :  { %v1944_v31 = vor.u32 1.1754944e-38, %v1943_v33  ;;  %vm1942_vm15 = vcmp.eq.f32.partialorder %v1941_v41, 8.507059e+37 }
0x1c98   :  { %v2887_v42 = vpop.eup %2886 }
0x1c99   :  { %v2889_v40 = vpop.eup %2888  ;;  %v1918_v0 = vmul.f32 %v2887_v42, %v1915_v50  ;;  %vm1923_vm0 = vweird.f32 %v2887_v42 }
0x1c9a   :  { %v1933_v2 = vmul.f32 %v2889_v40, %v1916_v37  ;;  %vm1938_vm1 = vweird.f32 %v2889_v40  ;;  %vm1924_vm8 = vmor %vm1922_vm2, %vm1923_vm0 }
0x1c9b   :  { %v1919_v1 = vsub.f32 1.0, %v1918_v0  ;;  %vm1939_vm6 = vmor %vm1937_vm13, %vm1938_vm1 }
0x1c9c   :  { %v1934_v57 = vsub.f32 1.0, %v1933_v2 }
0x1c9d   :  { %v1920_v18 = vmul.f32 %v2887_v42, %v1919_v1 }
0x1c9e   :  { %v1935_v19 = vmul.f32 %v2889_v40, %v1934_v57 }
0x1c9f   :  { %v1921_v20 = vadd.f32 %v2887_v42, %v1920_v18 }
0x1ca0   :  { %v1936_v21 = vadd.f32 %v2889_v40, %v1935_v19 }
0x1ca1   :  { %v1925_v43 = vsel %vm1924_vm8, %v2887_v42, %v1921_v20 }
0x1ca2   :  { %v1940_v45 = vsel %vm1939_vm6, %v2889_v40, %v1936_v21  ;;  %v1930_v53 = vsel %vm1927_vm14, %v1929_v48, %v1925_v43  ;;  %vm3717_vm14 = vcmask 519426  }
0x1ca3   :  { %v1945_v60 = vsel %vm1942_vm15, %v1944_v31, %v1940_v45  ;;  %v1952_v54 = vmul.f32 %v1950_v63, %v1930_v53 }
0x1ca4   :  { %v1966_v9 = vmul.f32 %v1964_v6, %v1945_v60 }
0x1d00   :  { %v1955_v52 = vpop.permute.xlu0 %1954 }
0x1d01   :  { %v1969_v22 = vpop.permute.xlu1 %1968  ;;  %v1957_v61 = vmul.f32 %v1955_v52, %v1930_v53 }
0x1d02   :  { %v1971_v59 = vmul.f32 %v1969_v22, %v1945_v60 }
0x1d03   :  { %1959 = vrot.lane.b32.xlu2 %v1957_v61, %s3025_s12 }
0x1d04   :  { %1973 = vrot.lane.b32.xlu0 %v1971_v59, %s3025_s12 }
0x1d5d   :  { %v1960_v58 = vpop.permute.xlu2 %1959 }
0x1d5e   :  { %v3600_v46 = vadd.f32 %v1960_v58, %v1952_v54 }
0x1d60   :  { %2890 = vtanh.f32 %v3600_v46  ;;  %v2081_v61 = vrot.slane %v3600_v46, 6 }
0x1d66   :  { %v2891_v49 = vpop.eup %2890 }
0x1d67   :  { %1979 = vrot.lane.b32.xlu1 %v2891_v49, %s3024_s3 }
0x1d76   :  { %v1974_v38 = vpop.permute.xlu0 %1973 }
0x1d77   :  { %v3605_v14 = vadd.f32 %v1974_v38, %v1966_v9 }
0x1d79   :  { %2892 = vtanh.f32 %v3605_v14  ;;  %v2095_v59 = vrot.slane %v3605_v14, 6 }
0x1d7f   :  { %v2893_v7 = vpop.eup %2892 }
0x1d80   :  { %1985 = vrot.lane.b32.xlu2 %v2893_v7, %s3024_s3 }
0x1dd9   :  { %v1980_v24 = vpop.permute.xlu1 %1979 }
0x1dda   :  { %v1986_v16 = vpop.permute.xlu2 %1985  ;;  %v1982_v62 = vmul.f32 %v1980_v24, %v1930_v53 }
0x1ddb   :  { %v1988_v15 = vmul.f32 %v1986_v16, %v1945_v60 }
0x1ddc   :  { %1990 = vrot.lane.b32.xlu0 %v1982_v62, %s3025_s12 }
0x1ddd   :  { %1994 = vrot.lane.b32.xlu1 %v1988_v15, %s3024_s3 }
0x1e4e   :  { %v1991_v4 = vpop.permute.xlu0 %1990 }
0x1e4f   :  { %1998 = vst.msk [vmem:[#allocation3 + $0x8] sm:$0x3] %vm304_vm9, %v1991_v4  ;;  %v1995_v13 = vpop.permute.xlu1 %1994 }
0x1e50   :  { %v1997_v32 = vsel %vm302_vm10, %v1991_v4, %v1995_v13  ;;  %1999 = vst.msk [vmem:[#allocation3 + $0x6] sm:$0x3] %vm306_vm11, %v1995_v13 }
0x1e51   :  { %v2000_v36 = vpack.c.bf16 %v1997_v32, %v1997_v32 }
0x1e53   :  { %2617 = vmatmul.msk.bf16.vlgmr.msrb.gmra.mxu2 %vm185_vm12, %v2000_v36  ;;  %2618 = vmatmul.msk.bf16.vlgmr.msrb.gmra.mxu3 %vm185_vm12, %v2000_v36 }
0x1ed6   :  { %v2013_v10 = vpop.f32.mrf.mxu2  ;;  %v2026_v3 = vpop.f32.mrf.mxu3 }
0x1ed7   :  { %v2034_v35 = vrot.slane %v2013_v10, 6  ;;  %v2035_v23 = vrot.slane %v2026_v3, 6 }
0x1ed9   :  { %v2038_v30 = vadd.f32 %v2034_v35, %v3589_v29  ;;  %v2039_v44 = vadd.f32 %v2035_v23, %v2030_v47 }
0x1edb   :  { %2894 = vtanh.f32 %v2038_v30  ;;  %v2619_v27 = vmul.f32 -1.442695, %v2038_v30  ;;  %v2620_v51 = vmul.f32 -1.442695, %v2039_v44 }
0x1edc   :  { %2896 = vtanh.f32 %v2039_v44 }
0x1edd   :  { %2898 = vpow2.f32 %v2619_v27 }
0x1ede   :  { %v2015_v39 = vpop.f32.mrf.mxu2  ;;  %v2028_v5 = vpop.f32.mrf.mxu3 }
0x1ee1   :  { %v2895_v25 = vpop.eup %2894 }
0x1ee2   :  { %v2897_v11 = vpop.eup %2896  ;;  %2085 = vrot.lane.b32.xlu2 %v2895_v25, %s3024_s3 }
0x1ee3   :  { %2099 = vrot.lane.b32.xlu0 %v2897_v11, %s3024_s3  ;;  %v2899_v8 = vpop.eup %2898 }
0x1ee4   :  { %v2046_v55 = vadd.f32 1.0, %v2899_v8 }
0x1ee6   :  { %2900 = vrcp.f32 %v2046_v55  ;;  %v2059_v2 = vand.u32 2147483648, %v2046_v55  ;;  %vm2053_vm11 = vweird.f32 %v2046_v55  ;;  %v2057_v1 = vand.u32 2147483647, %v2046_v55 }
0x1ee7   :  { %2902 = vpow2.f32 %v2620_v51 }
0x1ee8   :  { %v2060_v18 = vor.u32 1.1754944e-38, %v2059_v2  ;;  %vm2058_vm1 = vcmp.eq.f32.partialorder %v2057_v1, 8.507059e+37 }
0x1eec   :  { %v2901_v56 = vpop.eup %2900 }
0x1eed   :  { %v2049_v17 = vmul.f32 %v2901_v56, %v2046_v55  ;;  %v2903_v42 = vpop.eup %2902  ;;  %vm2054_vm9 = vweird.f32 %v2901_v56 }
0x1eee   :  { %v2047_v40 = vadd.f32 1.0, %v2903_v42  ;;  %vm2055_vm0 = vmor %vm2053_vm11, %vm2054_vm9 }
0x1eef   :  { %v2050_v50 = vsub.f32 1.0, %v2049_v17 }
0x1ef0   :  { %2904 = vrcp.f32 %v2047_v40  ;;  %v2074_v45 = vand.u32 2147483648, %v2047_v40  ;;  %vm2068_vm13 = vweird.f32 %v2047_v40  ;;  %v2072_v48 = vand.u32 2147483647, %v2047_v40 }
0x1ef1   :  { %v2051_v37 = vmul.f32 %v2901_v56, %v2050_v50 }
0x1ef2   :  { %v2075_v52 = vor.u32 1.1754944e-38, %v2074_v45  ;;  %vm2073_vm6 = vcmp.eq.f32.partialorder %v2072_v48, 8.507059e+37 }
0x1ef3   :  { %v2052_v0 = vadd.f32 %v2901_v56, %v2051_v37 }
0x1ef5   :  { %v2056_v57 = vsel %vm2055_vm0, %v2901_v56, %v2052_v0 }
0x1ef6   :  { %v2061_v20 = vsel %vm2058_vm1, %v2060_v18, %v2056_v57  ;;  %v2905_v26 = vpop.eup %2904 }
0x1ef7   :  { %v2064_v33 = vmul.f32 %v2905_v26, %v2047_v40  ;;  %vm2069_vm2 = vweird.f32 %v2905_v26  ;;  %v2083_v63 = vmul.f32 %v2081_v61, %v2061_v20 }
0x1ef8   :  { %vm2070_vm8 = vmor %vm2068_vm13, %vm2069_vm2 }
0x1ef9   :  { %v2065_v34 = vsub.f32 1.0, %v2064_v33 }
0x1efb   :  { %v2066_v41 = vmul.f32 %v2905_v26, %v2065_v34 }
0x1efd   :  { %v2067_v43 = vadd.f32 %v2905_v26, %v2066_v41 }
0x1eff   :  { %v2071_v31 = vsel %vm2070_vm8, %v2905_v26, %v2067_v43 }
0x1f00   :  { %v2076_v22 = vsel %vm2073_vm6, %v2075_v52, %v2071_v31 }
0x1f01   :  { %v2097_v54 = vmul.f32 %v2095_v59, %v2076_v22 }
0x1f3c   :  { %v2086_v19 = vpop.permute.xlu2 %2085 }
0x1f3d   :  { %v2088_v21 = vmul.f32 %v2086_v19, %v2061_v20 }
0x1f3f   :  { %2090 = vrot.lane.b32.xlu1 %v2088_v21, %s3025_s12 }
0x1f55   :  { %v2100_v53 = vpop.permute.xlu0 %2099 }
0x1f56   :  { %v2102_v60 = vmul.f32 %v2100_v53, %v2076_v22 }
0x1f58   :  { %2104 = vrot.lane.b32.xlu2 %v2102_v60, %s3025_s12 }
0x1fb1   :  { %v2091_v58 = vpop.permute.xlu1 %2090 }
0x1fb2   :  { %v2105_v49 = vpop.permute.xlu2 %2104  ;;  %v3626_v6 = vadd.f32 %v2091_v58, %v2083_v63 }
0x1fb3   :  { %v3628_v9 = vadd.f32 %v2105_v49, %v2097_v54 }
0x1fb4   :  { %2906 = vtanh.f32 %v3626_v6  ;;  %v2212_v54 = vrot.slane %v3626_v6, 6 }
0x1fb5   :  { %2908 = vtanh.f32 %v3628_v9 }
0x1fba   :  { %v2907_v38 = vpop.eup %2906 }
0x1fbb   :  { %v2909_v7 = vpop.eup %2908  ;;  %2110 = vrot.lane.b32.xlu0 %v2907_v38, %s3024_s3 }
0x1fbc   :  { %2116 = vrot.lane.b32.xlu1 %v2909_v7, %s3024_s3 }
0x202d   :  { %v2111_v46 = vpop.permute.xlu0 %2110 }
0x202e   :  { %v2117_v14 = vpop.permute.xlu1 %2116  ;;  %v2113_v24 = vmul.f32 %v2111_v46, %v2061_v20 }
0x202f   :  { %v2119_v16 = vmul.f32 %v2117_v14, %v2076_v22  ;;  %v2226_v22 = vrot.slane %v3628_v9, 6 }
0x2030   :  { %2121 = vrot.lane.b32.xlu2 %v2113_v24, %s3025_s12 }
0x2031   :  { %2125 = vrot.lane.b32.xlu0 %v2119_v16, %s3024_s3 }
0x208a   :  { %v2122_v62 = vpop.permute.xlu2 %2121 }
0x208b   :  { %2129 = vst.msk [vmem:[#allocation3 + $0x8] sm:$0xc] %vm437_vm5, %v2122_v62 }
0x20a3   :  { %v2126_v15 = vpop.permute.xlu0 %2125 }
0x20a4   :  { %v2128_v4 = vsel %vm302_vm10, %v2122_v62, %v2126_v15  ;;  %2130 = vst.msk [vmem:[#allocation3 + $0x2] sm:$0xc] %vm3717_vm14, %v2126_v15 }
0x20a5   :  { %v2131_v13 = vpack.c.bf16 %v2128_v4, %v2128_v4 }
0x20a7   :  { %v2133_v32 = vrot.slane %v2131_v13, 1 }
0x20a9   :  { %2621 = vmatmul.msk.bf16.vlgmr.msra.gmra.mxu0 %vm185_vm12, %v2133_v32  ;;  %2622 = vmatmul.msk.bf16.vlgmr.msra.gmra.mxu1 %vm185_vm12, %v2133_v32 }
0x2126   :  { %v2146_v36 = vpop.f32.mrf.mxu0  ;;  %v2159_v10 = vpop.f32.mrf.mxu1 }
0x2127   :  { %v2165_v3 = vrot.slane %v2146_v36, 4  ;;  %v2166_v35 = vrot.slane %v2159_v10, 4 }
0x2129   :  { %v2169_v23 = vadd.f32 %v2165_v3, %v3589_v29  ;;  %v2170_v30 = vadd.f32 %v2166_v35, %v1905_v12 }
0x212b   :  { %2910 = vtanh.f32 %v2169_v23  ;;  %v2624_v11 = vmul.f32 -1.442695, %v2170_v30  ;;  %v2623_v56 = vmul.f32 -1.442695, %v2169_v23 }
0x212c   :  { %2912 = vtanh.f32 %v2170_v30 }
0x212d   :  { %2914 = vpow2.f32 %v2624_v11 }
0x212e   :  { %v2148_v44 = vpop.f32.mrf.mxu0  ;;  %v2161_v39 = vpop.f32.mrf.mxu1 }
0x2131   :  { %v2911_v5 = vpop.eup %2910 }
0x2132   :  { %v2913_v25 = vpop.eup %2912  ;;  %2216 = vrot.lane.b32.xlu1 %v2911_v5, %s3024_s3 }
0x2133   :  { %2230 = vrot.lane.b32.xlu2 %v2913_v25, %s3024_s3  ;;  %v2915_v27 = vpop.eup %2914 }
0x2134   :  { %v2178_v8 = vadd.f32 1.0, %v2915_v27 }
0x2136   :  { %2916 = vrcp.f32 %v2178_v8  ;;  %v2205_v40 = vand.u32 2147483648, %v2178_v8  ;;  %vm2199_vm15 = vweird.f32 %v2178_v8  ;;  %v2203_v0 = vand.u32 2147483647, %v2178_v8 }
0x2137   :  { %2918 = vpow2.f32 %v2623_v56 }
0x2138   :  { %v2206_v1 = vor.u32 1.1754944e-38, %v2205_v40  ;;  %vm2204_vm11 = vcmp.eq.f32.partialorder %v2203_v0, 8.507059e+37 }
0x213c   :  { %v2917_v55 = vpop.eup %2916 }
0x213d   :  { %v2195_v51 = vmul.f32 %v2917_v55, %v2178_v8  ;;  %v2919_v17 = vpop.eup %2918  ;;  %vm2200_vm5 = vweird.f32 %v2917_v55 }
0x213e   :  { %v2177_v37 = vadd.f32 1.0, %v2919_v17  ;;  %vm2201_vm9 = vmor %vm2199_vm15, %vm2200_vm5 }
0x213f   :  { %v2196_v12 = vsub.f32 1.0, %v2195_v51 }
0x2140   :  { %2920 = vrcp.f32 %v2177_v37  ;;  %v2190_v41 = vand.u32 2147483648, %v2177_v37  ;;  %vm2184_vm1 = vweird.f32 %v2177_v37  ;;  %v2188_v43 = vand.u32 2147483647, %v2177_v37 }
0x2141   :  { %v2197_v50 = vmul.f32 %v2917_v55, %v2196_v12 }
0x2142   :  { %v2191_v48 = vor.u32 1.1754944e-38, %v2190_v41  ;;  %vm2189_vm13 = vcmp.eq.f32.partialorder %v2188_v43, 8.507059e+37 }
0x2143   :  { %v2198_v42 = vadd.f32 %v2917_v55, %v2197_v50 }
0x2145   :  { %v2202_v2 = vsel %vm2201_vm9, %v2917_v55, %v2198_v42  ;;  %vm3718_vm9 = vcmask 523526  }
0x2146   :  { %v2207_v18 = vsel %vm2204_vm11, %v2206_v1, %v2202_v2  ;;  %v2921_v19 = vpop.eup %2920  ;;  %vm2448_vm11 = vcmask 64512  }
0x2147   :  { %v2180_v21 = vmul.f32 %v2921_v19, %v2177_v37  ;;  %vm2185_vm0 = vweird.f32 %v2921_v19  ;;  %v2228_v60 = vmul.f32 %v2226_v22, %v2207_v18 }
0x2148   :  { %vm2186_vm2 = vmor %vm2184_vm1, %vm2185_vm0 }
0x2149   :  { %v2181_v26 = vsub.f32 1.0, %v2180_v21 }
0x214b   :  { %v2182_v33 = vmul.f32 %v2921_v19, %v2181_v26 }
0x214d   :  { %v2183_v34 = vadd.f32 %v2921_v19, %v2182_v33 }
0x214f   :  { %v2187_v45 = vsel %vm2186_vm2, %v2921_v19, %v2183_v34 }
0x2150   :  { %v2192_v52 = vsel %vm2189_vm13, %v2191_v48, %v2187_v45 }
0x2151   :  { %v2214_v58 = vmul.f32 %v2212_v54, %v2192_v52 }
0x218d   :  { %v2231_v57 = vpop.permute.xlu2 %2230 }
0x218e   :  { %v2233_v20 = vmul.f32 %v2231_v57, %v2207_v18 }
0x2190   :  { %2235 = vrot.lane.b32.xlu1 %v2233_v20, %s3025_s12 }
0x21a4   :  { %v2217_v31 = vpop.permute.xlu1 %2216 }
0x21a5   :  { %v2219_v53 = vmul.f32 %v2217_v31, %v2192_v52 }
0x21a7   :  { %2221 = vrot.lane.b32.xlu0 %v2219_v53, %s3025_s12 }
0x2202   :  { %v2236_v61 = vpop.permute.xlu1 %2235 }
0x2203   :  { %v3649_v59 = vadd.f32 %v2236_v61, %v2228_v60 }
0x2205   :  { %2922 = vtanh.f32 %v3649_v59  ;;  %v2357_v22 = vrot.slane %v3649_v59, 6 }
0x220b   :  { %v2923_v63 = vpop.eup %2922 }
0x220c   :  { %2247 = vrot.lane.b32.xlu0 %v2923_v63, %s3024_s3 }
0x2219   :  { %v2222_v49 = vpop.permute.xlu0 %2221 }
0x221a   :  { %v3654_v38 = vadd.f32 %v2222_v49, %v2214_v58  ;;  %v2676_v58 = vld [vmem:[%s3709_s7 + $0x18] sm:$0xff]  ;;  %v2675_v49 = vld [vmem:[%s3709_s7 + $0x10] sm:$0xff] }
0x221b   :  { %2438 = vmatpush.bf16.msrb.mxu0 %v2676_v58 }
0x221c   :  { %2924 = vtanh.f32 %v3654_v38  ;;  %v2343_v45 = vrot.slane %v3654_v38, 6 }
0x221f   :  { %2439 = vmatpush.bf16.msrb.mxu0 %v2675_v49 }
0x2222   :  { %v2925_v7 = vpop.eup %2924 }
0x2223   :  { %2241 = vrot.lane.b32.xlu2 %v2925_v7, %s3024_s3 }
0x227d   :  { %v2242_v9 = vpop.permute.xlu2 %2241 }
0x227e   :  { %v2248_v46 = vpop.permute.xlu0 %2247  ;;  %v2244_v14 = vmul.f32 %v2242_v9, %v2192_v52 }
0x227f   :  { %v2250_v24 = vmul.f32 %v2248_v46, %v2207_v18  ;;  %v2674_v46 = vld [vmem:[%s3709_s7 + $0x8] sm:$0xff] }
0x2280   :  { %2252 = vrot.lane.b32.xlu1 %v2244_v14, %s3025_s12  ;;  %2440 = vmatpush.bf16.msrb.mxu0 %v2674_v46  ;;  %v2673_v14 = vld [vmem:[%s3709_s7] sm:$0xff] }
0x2281   :  { %2256 = vrot.lane.b32.xlu2 %v2250_v24, %s3024_s3 }
0x2284   :  { %2441 = vmatpush.bf16.msrb.mxu0 %v2673_v14 }
0x22db   :  { %v2257_v16 = vpop.permute.xlu2 %2256 }
0x22dc   :  { %2261 = vst.msk [vmem:[#allocation3 - $0x2] sm:$0x30] %vm572_vm3, %v2257_v16 }
0x22f2   :  { %v2253_v6 = vpop.permute.xlu1 %2252 }
0x22f3   :  { %v2259_v62 = vsel %vm302_vm10, %v2253_v6, %v2257_v16  ;;  %2260 = vst.msk [vmem:[#allocation3 + $0x8] sm:$0x30] %vm570_vm4, %v2253_v6 }
0x22f4   :  { %v2262_v15 = vpack.c.bf16 %v2259_v62, %v2259_v62 }
0x22f6   :  { %v2264_v4 = vrot.slane %v2262_v15, 2 }
0x22f8   :  { %2625 = vmatmul.msk.bf16.vlgmr.msra.gmra.mxu2 %vm185_vm12, %v2264_v4  ;;  %2626 = vmatmul.msk.bf16.vlgmr.msra.gmra.mxu3 %vm185_vm12, %v2264_v4  ;;  %v2685_v4 = vld [vmem:[%s3710_s8] ss:$0 sm:$0xff] }
0x237b   :  { %v2277_v13 = vpop.f32.mrf.mxu2  ;;  %v2290_v32 = vpop.f32.mrf.mxu3 }
0x237c   :  { %v2296_v36 = vrot.slane %v2277_v13, 2  ;;  %v2297_v10 = vrot.slane %v2290_v32, 2 }
0x237e   :  { %v2300_v3 = vadd.f32 %v2296_v36, %v3589_v29  ;;  %v2301_v35 = vadd.f32 %v2297_v10, %v2030_v47 }
0x2380   :  { %2926 = vtanh.f32 %v2300_v3  ;;  %v2627_v5 = vmul.f32 -1.442695, %v2300_v3  ;;  %v2628_v25 = vmul.f32 -1.442695, %v2301_v35 }
0x2381   :  { %2928 = vtanh.f32 %v2301_v35 }
0x2382   :  { %2930 = vpow2.f32 %v2627_v5 }
0x2383   :  { %v2279_v23 = vpop.f32.mrf.mxu2  ;;  %v2292_v30 = vpop.f32.mrf.mxu3  ;;  %2932 = vpow2.f32 %v2628_v25 }
0x2386   :  { %v2927_v44 = vpop.eup %2926 }
0x2387   :  { %v2929_v39 = vpop.eup %2928  ;;  %2347 = vrot.lane.b32.xlu0 %v2927_v44, %s3024_s3 }
0x2388   :  { %2361 = vrot.lane.b32.xlu1 %v2929_v39, %s3024_s3  ;;  %v2931_v11 = vpop.eup %2930 }
0x2389   :  { %v2933_v27 = vpop.eup %2932  ;;  %v2308_v29 = vadd.f32 1.0, %v2931_v11 }
0x238a   :  { %v2309_v8 = vadd.f32 1.0, %v2933_v27 }
0x238b   :  { %2934 = vrcp.f32 %v2308_v29  ;;  %v2321_v40 = vand.u32 2147483648, %v2308_v29  ;;  %vm2315_vm4 = vweird.f32 %v2308_v29  ;;  %v2319_v2 = vand.u32 2147483647, %v2308_v29 }
0x238c   :  { %2936 = vrcp.f32 %v2309_v8  ;;  %v2336_v0 = vand.u32 2147483648, %v2309_v8  ;;  %vm2330_vm8 = vweird.f32 %v2309_v8  ;;  %v2334_v1 = vand.u32 2147483647, %v2309_v8 }
0x238d   :  { %v2322_v19 = vor.u32 1.1754944e-38, %v2321_v40  ;;  %vm2320_vm5 = vcmp.eq.f32.partialorder %v2319_v2, 8.507059e+37 }
0x238e   :  { %v2337_v20 = vor.u32 1.1754944e-38, %v2336_v0  ;;  %vm2335_vm15 = vcmp.eq.f32.partialorder %v2334_v1, 8.507059e+37 }
0x2391   :  { %v2935_v28 = vpop.eup %2934 }
0x2392   :  { %v2937_v47 = vpop.eup %2936  ;;  %v2311_v55 = vmul.f32 %v2935_v28, %v2308_v29  ;;  %vm2316_vm10 = vweird.f32 %v2935_v28 }
0x2393   :  { %v2326_v56 = vmul.f32 %v2937_v47, %v2309_v8  ;;  %vm2331_vm3 = vweird.f32 %v2937_v47  ;;  %vm2317_vm6 = vmor %vm2315_vm4, %vm2316_vm10 }
0x2394   :  { %v2312_v51 = vsub.f32 1.0, %v2311_v55  ;;  %vm2332_vm14 = vmor %vm2330_vm8, %vm2331_vm3 }
0x2395   :  { %v2327_v12 = vsub.f32 1.0, %v2326_v56 }
0x2396   :  { %v2313_v17 = vmul.f32 %v2935_v28, %v2312_v51 }
0x2397   :  { %v2328_v50 = vmul.f32 %v2937_v47, %v2327_v12 }
0x2398   :  { %v2314_v37 = vadd.f32 %v2935_v28, %v2313_v17 }
0x2399   :  { %v2329_v42 = vadd.f32 %v2937_v47, %v2328_v50 }
0x239a   :  { %v2318_v57 = vsel %vm2317_vm6, %v2935_v28, %v2314_v37 }
0x239b   :  { %v2333_v18 = vsel %vm2332_vm14, %v2937_v47, %v2329_v42  ;;  %v2323_v26 = vsel %vm2320_vm5, %v2322_v19, %v2318_v57 }
0x239c   :  { %v2338_v34 = vsel %vm2335_vm15, %v2337_v20, %v2333_v18  ;;  %v2345_v48 = vmul.f32 %v2343_v45, %v2323_v26 }
0x239d   :  { %v2359_v60 = vmul.f32 %v2357_v22, %v2338_v34 }
0x23f9   :  { %v2348_v21 = vpop.permute.xlu0 %2347 }
0x23fa   :  { %v2362_v33 = vpop.permute.xlu1 %2361  ;;  %v2350_v41 = vmul.f32 %v2348_v21, %v2323_v26 }
0x23fb   :  { %v2364_v43 = vmul.f32 %v2362_v33, %v2338_v34 }
0x23fc   :  { %2352 = vrot.lane.b32.xlu2 %v2350_v41, %s3025_s12 }
0x23fd   :  { %2366 = vrot.lane.b32.xlu0 %v2364_v43, %s3025_s12 }
0x2456   :  { %v2353_v31 = vpop.permute.xlu2 %2352 }
0x2457   :  { %v2355_v52 = vadd.f32 %v2353_v31, %v2345_v48 }
0x2459   :  { %2938 = vtanh.f32 %v2355_v52 }
0x245f   :  { %v2939_v53 = vpop.eup %2938 }
0x2460   :  { %2372 = vrot.lane.b32.xlu1 %v2939_v53, %s3024_s3 }
0x246f   :  { %v2367_v61 = vpop.permute.xlu0 %2366 }
0x2470   :  { %v2369_v63 = vadd.f32 %v2367_v61, %v2359_v60 }
0x2472   :  { %2940 = vtanh.f32 %v2369_v63 }
0x2478   :  { %v2941_v54 = vpop.eup %2940 }
0x2479   :  { %2378 = vrot.lane.b32.xlu2 %v2941_v54, %s3024_s3 }
0x24d2   :  { %v2373_v38 = vpop.permute.xlu1 %2372 }
0x24d3   :  { %v2379_v7 = vpop.permute.xlu2 %2378  ;;  %v2375_v59 = vmul.f32 %v2373_v38, %v2323_v26 }
0x24d4   :  { %v2381_v9 = vmul.f32 %v2379_v7, %v2338_v34 }
0x24d5   :  { %2383 = vrot.lane.b32.xlu0 %v2375_v59, %s3025_s12 }
0x24d6   :  { %2388 = vrot.lane.b32.xlu1 %v2381_v9, %s3024_s3 }
0x2547   :  { %v2384_v24 = vpop.permute.xlu0 %2383 }
0x2548   :  { %2386 = vst.msk [vmem:[#allocation3 + $0x8] sm:$0xc0] %vm703_vm7, %v2384_v24  ;;  %v2389_v16 = vpop.permute.xlu1 %2388 }
0x2549   :  { %2391 = vst.msk [vmem:[#allocation3 - $0x6] sm:$0xc0] %vm3718_vm9, %v2389_v16 }
0x254f   :  { %v2402_v6 = vld [vmem:[#allocation3 + $0x8] sm:$0xff] }
0x2550   :  { %v2401_v62 = vld [vmem:[#allocation3] sm:$0xff] }
0x2551   :  { %v2403_v15 = vpack.c.bf16 %v2402_v6, %v2401_v62 }
0x2553   :  { %2645 = vmatmul.msk.bf16.vlgmr.msrb.gmra.mxu0 %vm185_vm12, %v2403_v15 }
0x25d0   :  { %v2443_v13 = vpop.f32.mrf.mxu0 }
0x25d1   :  { %v2444_v32 = vadd.f32 %v2685_v4, %v2443_v13 }
0x25d3   :  { %2449 = vst.msk [vmem:[%s3711_s9] sm:$0xff] %vm2448_vm11, %v2444_v32 }
0x25d8   :  { %v2445_v36 = vpop.f32.mrf.mxu0 }
0x25d9   :  { %v2446_v10 = vadd.f32 %v2685_v4, %v2445_v36 }
0x25db   :  { %2450 = vst.msk [vmem:[%s3711_s9 + $0x8] sm:$0xff] %vm2448_vm11, %v2446_v10 }
0x25dc   :  { %2455 = vsyncpa [#allocation5], 1 }
0x25dd   :  { %2456 = vsyncpa [#allocation7], 1 }

</bundles_post_ra>
